<compile_context>
chip_gen: v7x
topology: tpu7x:2x2x1
jax: 0.10.0
libtpu: 0.0.40
codegen_flags: <defaults>
</compile_context>

<pallas_src>
import functools
import math

import jax
import jax.numpy as jnp
from jax.experimental import pallas as pl
from jax.experimental.pallas import tpu as pltpu

# ------------------------- model configuration (small) -------------------------
CHANNELS = (8, 16, 32, 64)      # ResNet(channels=...)
LAYERS = (1, 1, 1, 1)           # ResNet(layers=...)
NUM_CLASSES = 10                # num_classes != 1  ->  log_softmax head
SAMPLE_SIZE = (16, 16, 16)      # sample_size; input spatial dims match it
BN_EPS = 1e-5

VMEM_LIMIT = 32 * 1024 * 1024   # safe on v5e/v6e (128 MiB) and v7x (64 MiB physical)


# ------------------------------- Pallas kernels --------------------------------


def _conv_mm_kernel(*refs, relu, res_mode):
    """out = act(W @ A + shift [+ residual]).

    W: (Cout, K) bf16 (BN scale pre-folded), A: (K, tm) bf16, shift: (Cout, 1) f32.
    Residual is either a bf16 (Cout, tm) slab ("slab") or a fused 1x1x1 downsample
    conv ("conv": Ad (Cin, tm) bf16, Wd (Cout, Cin) bf16, shiftd (Cout, 1) f32).
    Epilogue math is kept strictly in f32 (portable across v5e/v6e/v7x VPUs)."""
    if res_mode == "slab":
        a_ref, w_ref, b_ref, r_ref, o_ref = refs
    elif res_mode == "conv":
        a_ref, w_ref, b_ref, ad_ref, wd_ref, bd_ref, o_ref = refs
    else:
        a_ref, w_ref, b_ref, o_ref = refs

    acc = jnp.dot(w_ref[...], a_ref[...], preferred_element_type=jnp.float32)
    acc = acc + b_ref[...]
    if res_mode == "slab":
        acc = acc + r_ref[...].astype(jnp.float32)          # upcast residual in-kernel
    elif res_mode == "conv":
        acc = acc + (jnp.dot(wd_ref[...], ad_ref[...],
                             preferred_element_type=jnp.float32) + bd_ref[...])
    if relu:
        acc = jnp.maximum(acc, 0.0)
    o_ref[...] = acc.astype(o_ref.dtype)


def _maxpool_kernel(x_ref, o_ref):
    """x: (k^3, tr, 128) -> max over the window axis; fully lane-dense reduction."""
    o_ref[...] = jnp.max(x_ref[...].astype(jnp.float32), axis=0).astype(o_ref.dtype)


def _head_kernel(x_ref, w_ref, b_ref, o_ref, *, log_softmax, sigmoid):
    """Fused global avg-pool + Linear + (log_softmax | sigmoid), channel-major.

    x: (C, N, S) bf16, W: (ncls, C) f32, b: (ncls, 1) f32 -> out (ncls, N) f32."""
    feat = jnp.mean(x_ref[...].astype(jnp.float32), axis=2)           # (C, N)
    out = jnp.dot(w_ref[...], feat, preferred_element_type=jnp.float32) + b_ref[...]
    if sigmoid:
        out = jax.nn.sigmoid(out)
    if log_softmax:
        m = jnp.max(out, axis=0, keepdims=True)
        z = out - m
        out = z - jnp.log(jnp.sum(jnp.exp(z), axis=0, keepdims=True))
    o_ref[...] = out.astype(o_ref.dtype)


# ------------------------------ kernel wrappers ---------------------------------


def _pick_tm(mpad):
    """Largest lane-aligned M tile, keeping >=2 grid steps when mpad >= 256 (v7x)."""
    if mpad <= 128:
        return mpad
    cap = min(1024, mpad // 2)
    tm = 128
    for cand in range(128, cap + 1, 128):
        if mpad % cand == 0:
            tm = cand
    return tm


def matmul_bias_act(a_t, wmat, shift, *, relu, residual=None, ds=None):
    """Fused conv-as-matmul + BN-shift (+ residual slab | + fused downsample conv)
    (+ ReLU), tiled over M with M zero-padded to a multiple of 128 (lane-dense)."""
    K, M = a_t.shape
    Cout = wmat.shape[0]
    Mpad = max(128, ((M + 127) // 128) * 128)
    if Mpad != M:
        a_t = jnp.pad(a_t, ((0, 0), (0, Mpad - M)))
        if residual is not None:
            residual = jnp.pad(residual, ((0, 0), (0, Mpad - M)))
        if ds is not None:
            ad, wd, bd = ds
            ds = (jnp.pad(ad, ((0, 0), (0, Mpad - M))), wd, bd)

    tm = _pick_tm(Mpad)
    nsteps = Mpad // tm

    # Triple-buffer the A tile on long grids (small-K convs are DMA-latency exposed).
    if nsteps >= 3:
        a_spec = pl.BlockSpec((K, tm), lambda i: (0, i), pipeline_mode=pl.Buffered(3))
    else:
        a_spec = pl.BlockSpec((K, tm), lambda i: (0, i))

    in_specs = [
        a_spec,                                         # A tile (lane-dense)
        pl.BlockSpec((Cout, K), lambda i: (0, 0)),      # folded weights (resident)
        pl.BlockSpec((Cout, 1), lambda i: (0, 0)),      # BN shift
    ]
    args = [a_t, wmat, shift]
    res_mode = "none"
    if residual is not None:
        res_mode = "slab"
        in_specs.append(pl.BlockSpec((Cout, tm), lambda i: (0, i)))
        args.append(residual)
    elif ds is not None:
        res_mode = "conv"
        ad, wd, bd = ds
        Kd = ad.shape[0]
        in_specs += [pl.BlockSpec((Kd, tm), lambda i: (0, i)),
                     pl.BlockSpec((Cout, Kd), lambda i: (0, 0)),
                     pl.BlockSpec((Cout, 1), lambda i: (0, 0))]
        args += [ad, wd, bd]

    kernel = functools.partial(_conv_mm_kernel, relu=relu, res_mode=res_mode)
    out = pl.pallas_call(
        kernel,
        out_shape=jax.ShapeDtypeStruct((Cout, Mpad), jnp.bfloat16),
        grid=(nsteps,),
        in_specs=in_specs,
        out_specs=pl.BlockSpec((Cout, tm), lambda i: (0, i)),
        compiler_params=pltpu.CompilerParams(
            dimension_semantics=("parallel",),
            vmem_limit_bytes=VMEM_LIMIT),
    )(*args)
    if Mpad != M:
        out = out[:, :M]
    return out


def head(x_cns, w, b, *, log_softmax, sigmoid):
    """Fused avgpool (mean over S) + fc + log_softmax/sigmoid.  x: (C, N, S) bf16."""
    C, N, S = x_cns.shape
    ncls = w.shape[0]
    kernel = functools.partial(_head_kernel, log_softmax=log_softmax, sigmoid=sigmoid)
    return pl.pallas_call(
        kernel,
        out_shape=jax.ShapeDtypeStruct((ncls, N), jnp.float32),
        grid=(1,),
        in_specs=[pl.BlockSpec((C, N, S), lambda i: (0, 0, 0)),
                  pl.BlockSpec((ncls, C), lambda i: (0, 0)),
                  pl.BlockSpec((ncls, 1), lambda i: (0, 0))],
        out_specs=pl.BlockSpec((ncls, N), lambda i: (0, 0)),
        compiler_params=pltpu.CompilerParams(vmem_limit_bytes=VMEM_LIMIT),
    )(x_cns, w, b)


# ------------------------------- plain-JAX glue ---------------------------------


def _gather_taps_cm(x, k, stride, pad, pad_value):
    """x: (C,N,D,H,W) -> (k^3, C, N, Do, Ho, Wo) shifted tap views (dz, dy, dx order).

    Channel-major layout means the subsequent reshape to (k^3*C, M) needs NO transpose."""
    if pad > 0:
        x = jnp.pad(x, ((0, 0), (0, 0), (pad, pad), (pad, pad), (pad, pad)),
                    constant_values=pad_value)
    C, N, D, H, W = x.shape
    Do = (D - k) // stride + 1
    Ho = (H - k) // stride + 1
    Wo = (W - k) // stride + 1
    cols = []
    for dz in range(k):
        for dy in range(k):
            for dx in range(k):
                cols.append(x[:, :, dz:dz + stride * (Do - 1) + 1:stride,
                                    dy:dy + stride * (Ho - 1) + 1:stride,
                                    dx:dx + stride * (Wo - 1) + 1:stride])
    return jnp.stack(cols, axis=0), (Do, Ho, Wo)


def conv_bn_act_cm(x, wmat, shift, *, k, stride, pad, relu, residual_cm=None, ds=None):
    """Conv3d (no bias) + folded BatchNorm3d + optional residual + optional ReLU.

    x: (Cin, N, D, H, W) bf16 channel-major; returns (Cout, N, Do, Ho, Wo) bf16."""
    Cin, N = x.shape[0], x.shape[1]
    taps, (Do, Ho, Wo) = _gather_taps_cm(x, k, stride, pad, 0.0)      # bf16 taps
    a_t = taps.reshape(k * k * k * Cin, N * Do * Ho * Wo)             # (K, M), no transpose
    Cout = wmat.shape[0]
    out_cm = matmul_bias_act(a_t, wmat, shift, relu=relu, residual=residual_cm, ds=ds)
    return out_cm.reshape(Cout, N, Do, Ho, Wo)


def maxpool3d_cm(x, *, k, stride, pad):
    """MaxPool3d on a channel-major bf16 slab; lane-dense tiled reduction kernel."""
    # bf16-min padding matches PyTorch's implicit -inf padding (inputs are post-ReLU >= 0).
    neg = float(jnp.finfo(jnp.bfloat16).min)
    taps, (Do, Ho, Wo) = _gather_taps_cm(x, k, stride, pad, neg)
    k3 = k * k * k
    C, N = x.shape[0], x.shape[1]
    P = C * N * Do * Ho * Wo
    flat = taps.reshape(k3, P)

    L, RB = 128, 8
    Ppad = -(-P // (RB * L)) * (RB * L)
    if Ppad != P:
        flat = jnp.pad(flat, ((0, 0), (0, Ppad - P)), constant_values=neg)
    R = Ppad // L
    tr = RB
    while tr * 2 <= min(R, 512) and R % (tr * 2) == 0:
        tr *= 2
    blocks = flat.reshape(k3, R, L)

    out = pl.pallas_call(
        _maxpool_kernel,
        out_shape=jax.ShapeDtypeStruct((R, L), x.dtype),
        grid=(R // tr,),
        in_specs=[pl.BlockSpec((k3, tr, L), lambda i: (0, i, 0))],
        out_specs=pl.BlockSpec((tr, L), lambda i: (i, 0)),
        compiler_params=pltpu.CompilerParams(
            dimension_semantics=("parallel",),
            vmem_limit_bytes=VMEM_LIMIT),
    )(blocks)
    return out.reshape(Ppad)[:P].reshape(C, N, Do, Ho, Wo)


def basic_block(x, blk):
    """x: (Cin, N, D, H, W) bf16 channel-major."""
    stride = blk["stride"]
    w1, b1 = blk["c1"]
    w2, b2 = blk["c2"]
    out1 = conv_bn_act_cm(x, w1, b1, k=3, stride=stride, pad=1, relu=True)
    if "ds" in blk:
        # shortcut_type 'B': 1x1x1 conv + BN fused into conv2's epilogue (no extra call)
        wd, bd = blk["ds"]
        dtaps, _ = _gather_taps_cm(x, 1, stride, 0, 0.0)
        ad = dtaps.reshape(x.shape[0], -1)                            # (Cin, M)
        return conv_bn_act_cm(out1, w2, b2, k=3, stride=1, pad=1, relu=True,
                              ds=(ad, wd, bd))
    # identity shortcut: zero-cost channel-major view, passed bf16, upcast in-kernel
    res = x.reshape(x.shape[0], -1)
    return conv_bn_act_cm(out1, w2, b2, k=3, stride=1, pad=1, relu=True,
                          residual_cm=res)


# ------------------------------ params / folding --------------------------------


def _bn_init(c):
    return {"gamma": jnp.ones((c,), jnp.float32),
            "beta": jnp.zeros((c,), jnp.float32),
            "mean": jnp.zeros((c,), jnp.float32),
            "var": jnp.ones((c,), jnp.float32)}


def _fold_conv_bn(w, bn):
    """Fold eval-mode BN scale into the conv weight matrix (tap-major, channel-minor)."""
    scale = bn["gamma"] / jnp.sqrt(bn["var"] + BN_EPS)                # (Cout,)
    shift = bn["beta"] - bn["mean"] * scale
    cout, cin, k, _, _ = w.shape
    wmat = jnp.transpose(w, (0, 2, 3, 4, 1)).reshape(cout, k * k * k * cin)
    wmat = (wmat * scale[:, None]).astype(jnp.bfloat16)
    return wmat, shift.reshape(cout, 1).astype(jnp.float32)


def _kaiming_conv(key, shape):
    # nn.init.kaiming_normal(mode='fan_out'): std = sqrt(2 / (Cout * kD*kH*kW))
    fan_out = shape[0] * shape[2] * shape[3] * shape[4]
    std = math.sqrt(2.0 / fan_out)
    return std * jax.random.normal(key, shape, dtype=jnp.float32)


def init_params(key):
    ki = iter(jax.random.split(key, 64))
    params = {
        "conv1_w": _kaiming_conv(next(ki), (CHANNELS[0], 1, 7, 7, 7)),
        "bn1": _bn_init(CHANNELS[0]),
    }
    inplanes = CHANNELS[0]
    layers = []
    for li, (planes, nblocks) in enumerate(zip(CHANNELS, LAYERS)):
        layer_stride = 1 if li == 0 else 2
        layer = []
        for bi in range(nblocks):
            stride = layer_stride if bi == 0 else 1
            blk = {
                "stride": stride,
                "conv1_w": _kaiming_conv(next(ki), (planes, inplanes, 3, 3, 3)),
                "bn1": _bn_init(planes),
                "conv2_w": _kaiming_conv(next(ki), (planes, planes, 3, 3, 3)),
                "bn2": _bn_init(planes),
            }
            if stride != 1 or inplanes != planes:
                blk["ds_w"] = _kaiming_conv(next(ki), (planes, inplanes, 1, 1, 1))
                blk["ds_bn"] = _bn_init(planes)
            layer.append(blk)
            inplanes = planes
        layers.append(layer)
    params["layers"] = layers

    fc_size = CHANNELS[[i for i, l in enumerate(LAYERS) if l > 0][-1]]  # * expansion(=1)
    bound = 1.0 / math.sqrt(fc_size)
    params["fc_w"] = jax.random.uniform(next(ki), (NUM_CLASSES, fc_size),
                                        jnp.float32, -bound, bound)
    params["fc_b"] = jax.random.uniform(next(ki), (NUM_CLASSES,),
                                        jnp.float32, -bound, bound)
    return params


def fold_params(params):
    """One-time parameter prep: fold BN scales into bf16 weight matrices."""
    fp = {"conv1": _fold_conv_bn(params["conv1_w"], params["bn1"])}
    layers = []
    for layer in params["layers"]:
        blocks = []
        for blk in layer:
            b = {"stride": blk["stride"],
                 "c1": _fold_conv_bn(blk["conv1_w"], blk["bn1"]),
                 "c2": _fold_conv_bn(blk["conv2_w"], blk["bn2"])}
            if "ds_w" in blk:
                b["ds"] = _fold_conv_bn(blk["ds_w"], blk["ds_bn"])
            blocks.append(b)
        layers.append(blocks)
    fp["layers"] = layers
    fp["fc_w"] = params["fc_w"].astype(jnp.float32)                    # (ncls, fc_size)
    fp["fc_b"] = params["fc_b"].reshape(-1, 1).astype(jnp.float32)     # (ncls, 1)
    return fp


# --------------------------------- forward ---------------------------------------


def resnet_forward(fparams, x_ncdhw):
    # NCDHW -> channel-major (C, N, D, H, W) bf16; stays channel-major bf16 throughout.
    x = jnp.transpose(x_ncdhw, (1, 0, 2, 3, 4)).astype(jnp.bfloat16)
    w1, b1 = fparams["conv1"]
    x = conv_bn_act_cm(x, w1, b1, k=7, stride=2, pad=3, relu=True)
    x = maxpool3d_cm(x, k=3, stride=2, pad=1)
    for layer in fparams["layers"]:
        for blk in layer:
            x = basic_block(x, blk)

    # sanity: final spatial extent equals last_size computed from sample_size
    last_size = [int(math.ceil(s / 2 ** (sum(l > 0 for l in LAYERS) + 1)))
                 for s in SAMPLE_SIZE]
    assert tuple(x.shape[2:5]) == tuple(last_size)

    C, N, D, H, W = x.shape
    logits_t = head(x.reshape(C, N, D * H * W), fparams["fc_w"], fparams["fc_b"],
                    log_softmax=(NUM_CLASSES != 1), sigmoid=(NUM_CLASSES == 1))
    return (logits_t.T,)                                               # (N, ncls)


# ------------------------------------ main ---------------------------------------

if __name__ == "__main__":
    key = jax.random.PRNGKey(0)
    pkey, xkey = jax.random.split(key)
    params = init_params(pkey)
    fparams = fold_params(params)
    x = jax.random.normal(xkey, (2, 1) + SAMPLE_SIZE, dtype=jnp.float32)

    fwd = jax.jit(functools.partial(resnet_forward, fparams))
    (out,) = fwd(x)
    out = jax.block_until_ready(out)

    assert out.shape == (2, NUM_CLASSES), out.shape
    # log_softmax rows must exponentiate to a probability distribution
    assert bool(jnp.allclose(jnp.exp(out).sum(axis=1), 1.0, atol=1e-3))
    print("KERNEL_OK")
</pallas_src>

<mosaic_0001>
module attributes {stable_mosaic.version = 11 : i64} {
  func.func @_conv_mm_kernel(%arg0: i32, %arg1: memref<343x512xbf16, #tpu.memory_space<vmem>>, %arg2: memref<8x343xbf16, #tpu.memory_space<vmem>>, %arg3: memref<8x1xf32, #tpu.memory_space<vmem>>, %arg4: memref<8x512xbf16, #tpu.memory_space<vmem>>) attributes {dimension_semantics = [#tpu.dimension_semantics<parallel>], iteration_bounds = array<i64: 2>, scalar_prefetch = 0 : i64, scratch_operands = 0 : i64, tpu.core_type = #tpu.core_type<tc>, window_params = [{transform_indices = @transform_0, window_bounds = array<i64: 343, 512>}, {pipeline_mode = #tpu.pipeline_mode<synchronous>, transform_indices = @transform_1, window_bounds = array<i64: 8, 343>}, {pipeline_mode = #tpu.pipeline_mode<synchronous>, transform_indices = @transform_2, window_bounds = array<i64: 8, 1>}, {transform_indices = @transform_3, window_bounds = array<i64: 8, 512>}]} {
    %c0 = arith.constant 0 : index
    %c0_0 = arith.constant 0 : index
    %0 = vector.load %arg2[%c0, %c0_0] : memref<8x343xbf16, #tpu.memory_space<vmem>>, vector<8x343xbf16>
    %c0_1 = arith.constant 0 : index
    %c0_2 = arith.constant 0 : index
    %1 = vector.load %arg1[%c0_1, %c0_2] : memref<343x512xbf16, #tpu.memory_space<vmem>>, vector<343x512xbf16>
    %cst = arith.constant dense<0.000000e+00> : vector<8x512xf32>
    %2 = tpu.matmul %0, %1, %cst {dimension_numbers = #tpu.dot_dimension_numbers<[1], [0], [0], [1], [0, 0, 1, 1], [], []>} : vector<8x343xbf16>, vector<343x512xbf16>, vector<8x512xf32> -> vector<8x512xf32>
    %c0_3 = arith.constant 0 : index
    %c0_4 = arith.constant 0 : index
    %3 = vector.load %arg3[%c0_3, %c0_4] : memref<8x1xf32, #tpu.memory_space<vmem>>, vector<8x1xf32>
    %4 = vector.broadcast %3 : vector<8x1xf32> to vector<8x512xf32>
    %5 = arith.addf %2, %4 : vector<8x512xf32>
    %cst_5 = arith.constant 0.000000e+00 : f32
    %6 = vector.broadcast %cst_5 : f32 to vector<8x512xf32>
    %7 = arith.maximumf %5, %6 : vector<8x512xf32>
    %8 = arith.truncf %7 : vector<8x512xf32> to vector<8x512xbf16>
    %c0_6 = arith.constant 0 : index
    %c0_7 = arith.constant 0 : index
    %9 = vector.load %arg4[%c0_6, %c0_7] : memref<8x512xbf16, #tpu.memory_space<vmem>>, vector<8x512xbf16>
    tpu.vector_store %arg4[%c0_6, %c0_7], %8 {strides = array<i32>} : memref<8x512xbf16, #tpu.memory_space<vmem>>, vector<8x512xbf16>,
    return
  }
  func.func @transform_0(%arg0: i32) -> (i32, i32) {
    %c0_i32 = arith.constant 0 : i32
    %c0_i32_0 = arith.constant 0 : i32
    return %c0_i32, %arg0 : i32, i32
  }
  func.func @transform_1(%arg0: i32) -> (i32, i32) {
    %c0_i32 = arith.constant 0 : i32
    %c0_i32_0 = arith.constant 0 : i32
    %c0_i32_1 = arith.constant 0 : i32
    return %c0_i32, %c0_i32_0 : i32, i32
  }
  func.func @transform_2(%arg0: i32) -> (i32, i32) {
    %c0_i32 = arith.constant 0 : i32
    %c0_i32_0 = arith.constant 0 : i32
    %c0_i32_1 = arith.constant 0 : i32
    return %c0_i32, %c0_i32_0 : i32, i32
  }
  func.func @transform_3(%arg0: i32) -> (i32, i32) {
    %c0_i32 = arith.constant 0 : i32
    %c0_i32_0 = arith.constant 0 : i32
    return %c0_i32, %arg0 : i32, i32
  }
}

module attributes {stable_mosaic.version = 11 : i64} {
  func.func @_maxpool_kernel(%arg0: i32, %arg1: memref<27x8x128xbf16, #tpu.memory_space<vmem>>, %arg2: memref<8x128xbf16, #tpu.memory_space<vmem>>) attributes {dimension_semantics = [#tpu.dimension_semantics<parallel>], iteration_bounds = array<i64: 1>, scalar_prefetch = 0 : i64, scratch_operands = 0 : i64, tpu.core_type = #tpu.core_type<tc>, window_params = [{transform_indices = @transform_0, window_bounds = array<i64: 27, 8, 128>}, {transform_indices = @transform_1, window_bounds = array<i64: 8, 128>}]} {
    %c0 = arith.constant 0 : index
    %c0_0 = arith.constant 0 : index
    %c0_1 = arith.constant 0 : index
    %0 = vector.load %arg1[%c0, %c0_0, %c0_1] : memref<27x8x128xbf16, #tpu.memory_space<vmem>>, vector<27x8x128xbf16>
    %1 = arith.extf %0 : vector<27x8x128xbf16> to vector<27x8x128xf32>
    %cst = arith.constant dense<0xFF800000> : vector<8x128xf32>
    %2 = vector.multi_reduction <maximumf>, %1, %cst [0] : vector<27x8x128xf32> to vector<8x128xf32>
    %3 = arith.truncf %2 : vector<8x128xf32> to vector<8x128xbf16>
    %c0_2 = arith.constant 0 : index
    %c0_3 = arith.constant 0 : index
    %4 = vector.load %arg2[%c0_2, %c0_3] : memref<8x128xbf16, #tpu.memory_space<vmem>>, vector<8x128xbf16>
    tpu.vector_store %arg2[%c0_2, %c0_3], %3 {strides = array<i32>} : memref<8x128xbf16, #tpu.memory_space<vmem>>, vector<8x128xbf16>,
    return
  }
  func.func @transform_0(%arg0: i32) -> (i32, i32, i32) {
    %c0_i32 = arith.constant 0 : i32
    %c0_i32_0 = arith.constant 0 : i32
    %c0_i32_1 = arith.constant 0 : i32
    return %c0_i32, %arg0, %c0_i32_0 : i32, i32, i32
  }
  func.func @transform_1(%arg0: i32) -> (i32, i32) {
    %c0_i32 = arith.constant 0 : i32
    %c0_i32_0 = arith.constant 0 : i32
    return %arg0, %c0_i32 : i32, i32
  }
}

module attributes {stable_mosaic.version = 11 : i64} {
  func.func @_conv_mm_kernel(%arg0: i32, %arg1: memref<216x128xbf16, #tpu.memory_space<vmem>>, %arg2: memref<8x216xbf16, #tpu.memory_space<vmem>>, %arg3: memref<8x1xf32, #tpu.memory_space<vmem>>, %arg4: memref<8x128xbf16, #tpu.memory_space<vmem>>, %arg5: memref<8x128xbf16, #tpu.memory_space<vmem>>) attributes {dimension_semantics = [#tpu.dimension_semantics<parallel>], iteration_bounds = array<i64: 1>, scalar_prefetch = 0 : i64, scratch_operands = 0 : i64, tpu.core_type = #tpu.core_type<tc>, window_params = [{transform_indices = @transform_0, window_bounds = array<i64: 216, 128>}, {pipeline_mode = #tpu.pipeline_mode<synchronous>, transform_indices = @transform_1, window_bounds = array<i64: 8, 216>}, {pipeline_mode = #tpu.pipeline_mode<synchronous>, transform_indices = @transform_2, window_bounds = array<i64: 8, 1>}, {transform_indices = @transform_3, window_bounds = array<i64: 8, 128>}, {transform_indices = @transform_4, window_bounds = array<i64: 8, 128>}]} {
    %c0 = arith.constant 0 : index
    %c0_0 = arith.constant 0 : index
    %0 = vector.load %arg2[%c0, %c0_0] : memref<8x216xbf16, #tpu.memory_space<vmem>>, vector<8x216xbf16>
    %c0_1 = arith.constant 0 : index
    %c0_2 = arith.constant 0 : index
    %1 = vector.load %arg1[%c0_1, %c0_2] : memref<216x128xbf16, #tpu.memory_space<vmem>>, vector<216x128xbf16>
    %cst = arith.constant dense<0.000000e+00> : vector<8x128xf32>
    %2 = tpu.matmul %0, %1, %cst {dimension_numbers = #tpu.dot_dimension_numbers<[1], [0], [0], [1], [0, 0, 1, 1], [], []>} : vector<8x216xbf16>, vector<216x128xbf16>, vector<8x128xf32> -> vector<8x128xf32>
    %c0_3 = arith.constant 0 : index
    %c0_4 = arith.constant 0 : index
    %3 = vector.load %arg3[%c0_3, %c0_4] : memref<8x1xf32, #tpu.memory_space<vmem>>, vector<8x1xf32>
    %4 = vector.broadcast %3 : vector<8x1xf32> to vector<8x128xf32>
    %5 = arith.addf %2, %4 : vector<8x128xf32>
    %c0_5 = arith.constant 0 : index
    %c0_6 = arith.constant 0 : index
    %6 = vector.load %arg4[%c0_5, %c0_6] : memref<8x128xbf16, #tpu.memory_space<vmem>>, vector<8x128xbf16>
    %7 = arith.extf %6 : vector<8x128xbf16> to vector<8x128xf32>
    %8 = arith.addf %5, %7 : vector<8x128xf32>
    %cst_7 = arith.constant 0.000000e+00 : f32
    %9 = vector.broadcast %cst_7 : f32 to vector<8x128xf32>
    %10 = arith.maximumf %8, %9 : vector<8x128xf32>
    %11 = arith.truncf %10 : vector<8x128xf32> to vector<8x128xbf16>
    %c0_8 = arith.constant 0 : index
    %c0_9 = arith.constant 0 : index
    %12 = vector.load %arg5[%c0_8, %c0_9] : memref<8x128xbf16, #tpu.memory_space<vmem>>, vector<8x128xbf16>
    tpu.vector_store %arg5[%c0_8, %c0_9], %11 {strides = array<i32>} : memref<8x128xbf16, #tpu.memory_space<vmem>>, vector<8x128xbf16>,
    return
  }
  func.func @transform_0(%arg0: i32) -> (i32, i32) {
    %c0_i32 = arith.constant 0 : i32
    %c0_i32_0 = arith.constant 0 : i32
    return %c0_i32, %arg0 : i32, i32
  }
  func.func @transform_1(%arg0: i32) -> (i32, i32) {
    %c0_i32 = arith.constant 0 : i32
    %c0_i32_0 = arith.constant 0 : i32
    %c0_i32_1 = arith.constant 0 : i32
    return %c0_i32, %c0_i32_0 : i32, i32
  }
  func.func @transform_2(%arg0: i32) -> (i32, i32) {
    %c0_i32 = arith.constant 0 : i32
    %c0_i32_0 = arith.constant 0 : i32
    %c0_i32_1 = arith.constant 0 : i32
    return %c0_i32, %c0_i32_0 : i32, i32
  }
  func.func @transform_3(%arg0: i32) -> (i32, i32) {
    %c0_i32 = arith.constant 0 : i32
    %c0_i32_0 = arith.constant 0 : i32
    return %c0_i32, %arg0 : i32, i32
  }
  func.func @transform_4(%arg0: i32) -> (i32, i32) {
    %c0_i32 = arith.constant 0 : i32
    %c0_i32_0 = arith.constant 0 : i32
    return %c0_i32, %arg0 : i32, i32
  }
}

module attributes {stable_mosaic.version = 11 : i64} {
  func.func @_conv_mm_kernel(%arg0: i32, %arg1: memref<216x128xbf16, #tpu.memory_space<vmem>>, %arg2: memref<8x216xbf16, #tpu.memory_space<vmem>>, %arg3: memref<8x1xf32, #tpu.memory_space<vmem>>, %arg4: memref<8x128xbf16, #tpu.memory_space<vmem>>) attributes {dimension_semantics = [#tpu.dimension_semantics<parallel>], iteration_bounds = array<i64: 1>, scalar_prefetch = 0 : i64, scratch_operands = 0 : i64, tpu.core_type = #tpu.core_type<tc>, window_params = [{transform_indices = @transform_0, window_bounds = array<i64: 216, 128>}, {pipeline_mode = #tpu.pipeline_mode<synchronous>, transform_indices = @transform_1, window_bounds = array<i64: 8, 216>}, {pipeline_mode = #tpu.pipeline_mode<synchronous>, transform_indices = @transform_2, window_bounds = array<i64: 8, 1>}, {transform_indices = @transform_3, window_bounds = array<i64: 8, 128>}]} {
    %c0 = arith.constant 0 : index
    %c0_0 = arith.constant 0 : index
    %0 = vector.load %arg2[%c0, %c0_0] : memref<8x216xbf16, #tpu.memory_space<vmem>>, vector<8x216xbf16>
    %c0_1 = arith.constant 0 : index
    %c0_2 = arith.constant 0 : index
    %1 = vector.load %arg1[%c0_1, %c0_2] : memref<216x128xbf16, #tpu.memory_space<vmem>>, vector<216x128xbf16>
    %cst = arith.constant dense<0.000000e+00> : vector<8x128xf32>
    %2 = tpu.matmul %0, %1, %cst {dimension_numbers = #tpu.dot_dimension_numbers<[1], [0], [0], [1], [0, 0, 1, 1], [], []>} : vector<8x216xbf16>, vector<216x128xbf16>, vector<8x128xf32> -> vector<8x128xf32>
    %c0_3 = arith.constant 0 : index
    %c0_4 = arith.constant 0 : index
    %3 = vector.load %arg3[%c0_3, %c0_4] : memref<8x1xf32, #tpu.memory_space<vmem>>, vector<8x1xf32>
    %4 = vector.broadcast %3 : vector<8x1xf32> to vector<8x128xf32>
    %5 = arith.addf %2, %4 : vector<8x128xf32>
    %cst_5 = arith.constant 0.000000e+00 : f32
    %6 = vector.broadcast %cst_5 : f32 to vector<8x128xf32>
    %7 = arith.maximumf %5, %6 : vector<8x128xf32>
    %8 = arith.truncf %7 : vector<8x128xf32> to vector<8x128xbf16>
    %c0_6 = arith.constant 0 : index
    %c0_7 = arith.constant 0 : index
    %9 = vector.load %arg4[%c0_6, %c0_7] : memref<8x128xbf16, #tpu.memory_space<vmem>>, vector<8x128xbf16>
    tpu.vector_store %arg4[%c0_6, %c0_7], %8 {strides = array<i32>} : memref<8x128xbf16, #tpu.memory_space<vmem>>, vector<8x128xbf16>,
    return
  }
  func.func @transform_0(%arg0: i32) -> (i32, i32) {
    %c0_i32 = arith.constant 0 : i32
    %c0_i32_0 = arith.constant 0 : i32
    return %c0_i32, %arg0 : i32, i32
  }
  func.func @transform_1(%arg0: i32) -> (i32, i32) {
    %c0_i32 = arith.constant 0 : i32
    %c0_i32_0 = arith.constant 0 : i32
    %c0_i32_1 = arith.constant 0 : i32
    return %c0_i32, %c0_i32_0 : i32, i32
  }
  func.func @transform_2(%arg0: i32) -> (i32, i32) {
    %c0_i32 = arith.constant 0 : i32
    %c0_i32_0 = arith.constant 0 : i32
    %c0_i32_1 = arith.constant 0 : i32
    return %c0_i32, %c0_i32_0 : i32, i32
  }
  func.func @transform_3(%arg0: i32) -> (i32, i32) {
    %c0_i32 = arith.constant 0 : i32
    %c0_i32_0 = arith.constant 0 : i32
    return %c0_i32, %arg0 : i32, i32
  }
}

module attributes {stable_mosaic.version = 11 : i64} {
  func.func @_conv_mm_kernel(%arg0: i32, %arg1: memref<216x128xbf16, #tpu.memory_space<vmem>>, %arg2: memref<16x216xbf16, #tpu.memory_space<vmem>>, %arg3: memref<16x1xf32, #tpu.memory_space<vmem>>, %arg4: memref<16x128xbf16, #tpu.memory_space<vmem>>) attributes {dimension_semantics = [#tpu.dimension_semantics<parallel>], iteration_bounds = array<i64: 1>, scalar_prefetch = 0 : i64, scratch_operands = 0 : i64, tpu.core_type = #tpu.core_type<tc>, window_params = [{transform_indices = @transform_0, window_bounds = array<i64: 216, 128>}, {pipeline_mode = #tpu.pipeline_mode<synchronous>, transform_indices = @transform_1, window_bounds = array<i64: 16, 216>}, {pipeline_mode = #tpu.pipeline_mode<synchronous>, transform_indices = @transform_2, window_bounds = array<i64: 16, 1>}, {transform_indices = @transform_3, window_bounds = array<i64: 16, 128>}]} {
    %c0 = arith.constant 0 : index
    %c0_0 = arith.constant 0 : index
    %0 = vector.load %arg2[%c0, %c0_0] : memref<16x216xbf16, #tpu.memory_space<vmem>>, vector<16x216xbf16>
    %c0_1 = arith.constant 0 : index
    %c0_2 = arith.constant 0 : index
    %1 = vector.load %arg1[%c0_1, %c0_2] : memref<216x128xbf16, #tpu.memory_space<vmem>>, vector<216x128xbf16>
    %cst = arith.constant dense<0.000000e+00> : vector<16x128xf32>
    %2 = tpu.matmul %0, %1, %cst {dimension_numbers = #tpu.dot_dimension_numbers<[1], [0], [0], [1], [0, 0, 1, 1], [], []>} : vector<16x216xbf16>, vector<216x128xbf16>, vector<16x128xf32> -> vector<16x128xf32>
    %c0_3 = arith.constant 0 : index
    %c0_4 = arith.constant 0 : index
    %3 = vector.load %arg3[%c0_3, %c0_4] : memref<16x1xf32, #tpu.memory_space<vmem>>, vector<16x1xf32>
    %4 = vector.broadcast %3 : vector<16x1xf32> to vector<16x128xf32>
    %5 = arith.addf %2, %4 : vector<16x128xf32>
    %cst_5 = arith.constant 0.000000e+00 : f32
    %6 = vector.broadcast %cst_5 : f32 to vector<16x128xf32>
    %7 = arith.maximumf %5, %6 : vector<16x128xf32>
    %8 = arith.truncf %7 : vector<16x128xf32> to vector<16x128xbf16>
    %c0_6 = arith.constant 0 : index
    %c0_7 = arith.constant 0 : index
    %9 = vector.load %arg4[%c0_6, %c0_7] : memref<16x128xbf16, #tpu.memory_space<vmem>>, vector<16x128xbf16>
    tpu.vector_store %arg4[%c0_6, %c0_7], %8 {strides = array<i32>} : memref<16x128xbf16, #tpu.memory_space<vmem>>, vector<16x128xbf16>,
    return
  }
  func.func @transform_0(%arg0: i32) -> (i32, i32) {
    %c0_i32 = arith.constant 0 : i32
    %c0_i32_0 = arith.constant 0 : i32
    return %c0_i32, %arg0 : i32, i32
  }
  func.func @transform_1(%arg0: i32) -> (i32, i32) {
    %c0_i32 = arith.constant 0 : i32
    %c0_i32_0 = arith.constant 0 : i32
    %c0_i32_1 = arith.constant 0 : i32
    return %c0_i32, %c0_i32_0 : i32, i32
  }
  func.func @transform_2(%arg0: i32) -> (i32, i32) {
    %c0_i32 = arith.constant 0 : i32
    %c0_i32_0 = arith.constant 0 : i32
    %c0_i32_1 = arith.constant 0 : i32
    return %c0_i32, %c0_i32_0 : i32, i32
  }
  func.func @transform_3(%arg0: i32) -> (i32, i32) {
    %c0_i32 = arith.constant 0 : i32
    %c0_i32_0 = arith.constant 0 : i32
    return %c0_i32, %arg0 : i32, i32
  }
}

module attributes {stable_mosaic.version = 11 : i64} {
  func.func @_conv_mm_kernel(%arg0: i32, %arg1: memref<432x128xbf16, #tpu.memory_space<vmem>>, %arg2: memref<16x432xbf16, #tpu.memory_space<vmem>>, %arg3: memref<16x1xf32, #tpu.memory_space<vmem>>, %arg4: memref<8x128xbf16, #tpu.memory_space<vmem>>, %arg5: memref<16x8xbf16, #tpu.memory_space<vmem>>, %arg6: memref<16x1xf32, #tpu.memory_space<vmem>>, %arg7: memref<16x128xbf16, #tpu.memory_space<vmem>>) attributes {dimension_semantics = [#tpu.dimension_semantics<parallel>], iteration_bounds = array<i64: 1>, scalar_prefetch = 0 : i64, scratch_operands = 0 : i64, tpu.core_type = #tpu.core_type<tc>, window_params = [{transform_indices = @transform_0, window_bounds = array<i64: 432, 128>}, {pipeline_mode = #tpu.pipeline_mode<synchronous>, transform_indices = @transform_1, window_bounds = array<i64: 16, 432>}, {pipeline_mode = #tpu.pipeline_mode<synchronous>, transform_indices = @transform_2, window_bounds = array<i64: 16, 1>}, {transform_indices = @transform_3, window_bounds = array<i64: 8, 128>}, {pipeline_mode = #tpu.pipeline_mode<synchronous>, transform_indices = @transform_4, window_bounds = array<i64: 16, 8>}, {pipeline_mode = #tpu.pipeline_mode<synchronous>, transform_indices = @transform_5, window_bounds = array<i64: 16, 1>}, {transform_indices = @transform_6, window_bounds = array<i64: 16, 128>}]} {
    %c0 = arith.constant 0 : index
    %c0_0 = arith.constant 0 : index
    %0 = vector.load %arg2[%c0, %c0_0] : memref<16x432xbf16, #tpu.memory_space<vmem>>, vector<16x432xbf16>
    %c0_1 = arith.constant 0 : index
    %c0_2 = arith.constant 0 : index
    %1 = vector.load %arg1[%c0_1, %c0_2] : memref<432x128xbf16, #tpu.memory_space<vmem>>, vector<432x128xbf16>
    %cst = arith.constant dense<0.000000e+00> : vector<16x128xf32>
    %2 = tpu.matmul %0, %1, %cst {dimension_numbers = #tpu.dot_dimension_numbers<[1], [0], [0], [1], [0, 0, 1, 1], [], []>} : vector<16x432xbf16>, vector<432x128xbf16>, vector<16x128xf32> -> vector<16x128xf32>
    %c0_3 = arith.constant 0 : index
    %c0_4 = arith.constant 0 : index
    %3 = vector.load %arg3[%c0_3, %c0_4] : memref<16x1xf32, #tpu.memory_space<vmem>>, vector<16x1xf32>
    %4 = vector.broadcast %3 : vector<16x1xf32> to vector<16x128xf32>
    %5 = arith.addf %2, %4 : vector<16x128xf32>
    %c0_5 = arith.constant 0 : index
    %c0_6 = arith.constant 0 : index
    %6 = vector.load %arg5[%c0_5, %c0_6] : memref<16x8xbf16, #tpu.memory_space<vmem>>, vector<16x8xbf16>
    %c0_7 = arith.constant 0 : index
    %c0_8 = arith.constant 0 : index
    %7 = vector.load %arg4[%c0_7, %c0_8] : memref<8x128xbf16, #tpu.memory_space<vmem>>, vector<8x128xbf16>
    %cst_9 = arith.constant dense<0.000000e+00> : vector<16x128xf32>
    %8 = tpu.matmul %6, %7, %cst_9 {dimension_numbers = #tpu.dot_dimension_numbers<[1], [0], [0], [1], [0, 0, 1, 1], [], []>} : vector<16x8xbf16>, vector<8x128xbf16>, vector<16x128xf32> -> vector<16x128xf32>
    %c0_10 = arith.constant 0 : index
    %c0_11 = arith.constant 0 : index
    %9 = vector.load %arg6[%c0_10, %c0_11] : memref<16x1xf32, #tpu.memory_space<vmem>>, vector<16x1xf32>
    %10 = vector.broadcast %9 : vector<16x1xf32> to vector<16x128xf32>
    %11 = arith.addf %8, %10 : vector<16x128xf32>
    %12 = arith.addf %5, %11 : vector<16x128xf32>
    %cst_12 = arith.constant 0.000000e+00 : f32
    %13 = vector.broadcast %cst_12 : f32 to vector<16x128xf32>
    %14 = arith.maximumf %12, %13 : vector<16x128xf32>
    %15 = arith.truncf %14 : vector<16x128xf32> to vector<16x128xbf16>
    %c0_13 = arith.constant 0 : index
    %c0_14 = arith.constant 0 : index
    %16 = vector.load %arg7[%c0_13, %c0_14] : memref<16x128xbf16, #tpu.memory_space<vmem>>, vector<16x128xbf16>
    tpu.vector_store %arg7[%c0_13, %c0_14], %15 {strides = array<i32>} : memref<16x128xbf16, #tpu.memory_space<vmem>>, vector<16x128xbf16>,
    return
  }
  func.func @transform_0(%arg0: i32) -> (i32, i32) {
    %c0_i32 = arith.constant 0 : i32
    %c0_i32_0 = arith.constant 0 : i32
    return %c0_i32, %arg0 : i32, i32
  }
  func.func @transform_1(%arg0: i32) -> (i32, i32) {
    %c0_i32 = arith.constant 0 : i32
    %c0_i32_0 = arith.constant 0 : i32
    %c0_i32_1 = arith.constant 0 : i32
    return %c0_i32, %c0_i32_0 : i32, i32
  }
  func.func @transform_2(%arg0: i32) -> (i32, i32) {
    %c0_i32 = arith.constant 0 : i32
    %c0_i32_0 = arith.constant 0 : i32
    %c0_i32_1 = arith.constant 0 : i32
    return %c0_i32, %c0_i32_0 : i32, i32
  }
  func.func @transform_3(%arg0: i32) -> (i32, i32) {
    %c0_i32 = arith.constant 0 : i32
    %c0_i32_0 = arith.constant 0 : i32
    return %c0_i32, %arg0 : i32, i32
  }
  func.func @transform_4(%arg0: i32) -> (i32, i32) {
    %c0_i32 = arith.constant 0 : i32
    %c0_i32_0 = arith.constant 0 : i32
    %c0_i32_1 = arith.constant 0 : i32
    return %c0_i32, %c0_i32_0 : i32, i32
  }
  func.func @transform_5(%arg0: i32) -> (i32, i32) {
    %c0_i32 = arith.constant 0 : i32
    %c0_i32_0 = arith.constant 0 : i32
    %c0_i32_1 = arith.constant 0 : i32
    return %c0_i32, %c0_i32_0 : i32, i32
  }
  func.func @transform_6(%arg0: i32) -> (i32, i32) {
    %c0_i32 = arith.constant 0 : i32
    %c0_i32_0 = arith.constant 0 : i32
    return %c0_i32, %arg0 : i32, i32
  }
}

module attributes {stable_mosaic.version = 11 : i64} {
  func.func @_conv_mm_kernel(%arg0: i32, %arg1: memref<432x128xbf16, #tpu.memory_space<vmem>>, %arg2: memref<32x432xbf16, #tpu.memory_space<vmem>>, %arg3: memref<32x1xf32, #tpu.memory_space<vmem>>, %arg4: memref<32x128xbf16, #tpu.memory_space<vmem>>) attributes {dimension_semantics = [#tpu.dimension_semantics<parallel>], iteration_bounds = array<i64: 1>, scalar_prefetch = 0 : i64, scratch_operands = 0 : i64, tpu.core_type = #tpu.core_type<tc>, window_params = [{transform_indices = @transform_0, window_bounds = array<i64: 432, 128>}, {pipeline_mode = #tpu.pipeline_mode<synchronous>, transform_indices = @transform_1, window_bounds = array<i64: 32, 432>}, {pipeline_mode = #tpu.pipeline_mode<synchronous>, transform_indices = @transform_2, window_bounds = array<i64: 32, 1>}, {transform_indices = @transform_3, window_bounds = array<i64: 32, 128>}]} {
    %c0 = arith.constant 0 : index
    %c0_0 = arith.constant 0 : index
    %0 = vector.load %arg2[%c0, %c0_0] : memref<32x432xbf16, #tpu.memory_space<vmem>>, vector<32x432xbf16>
    %c0_1 = arith.constant 0 : index
    %c0_2 = arith.constant 0 : index
    %1 = vector.load %arg1[%c0_1, %c0_2] : memref<432x128xbf16, #tpu.memory_space<vmem>>, vector<432x128xbf16>
    %cst = arith.constant dense<0.000000e+00> : vector<32x128xf32>
    %2 = tpu.matmul %0, %1, %cst {dimension_numbers = #tpu.dot_dimension_numbers<[1], [0], [0], [1], [0, 0, 1, 1], [], []>} : vector<32x432xbf16>, vector<432x128xbf16>, vector<32x128xf32> -> vector<32x128xf32>
    %c0_3 = arith.constant 0 : index
    %c0_4 = arith.constant 0 : index
    %3 = vector.load %arg3[%c0_3, %c0_4] : memref<32x1xf32, #tpu.memory_space<vmem>>, vector<32x1xf32>
    %4 = vector.broadcast %3 : vector<32x1xf32> to vector<32x128xf32>
    %5 = arith.addf %2, %4 : vector<32x128xf32>
    %cst_5 = arith.constant 0.000000e+00 : f32
    %6 = vector.broadcast %cst_5 : f32 to vector<32x128xf32>
    %7 = arith.maximumf %5, %6 : vector<32x128xf32>
    %8 = arith.truncf %7 : vector<32x128xf32> to vector<32x128xbf16>
    %c0_6 = arith.constant 0 : index
    %c0_7 = arith.constant 0 : index
    %9 = vector.load %arg4[%c0_6, %c0_7] : memref<32x128xbf16, #tpu.memory_space<vmem>>, vector<32x128xbf16>
    tpu.vector_store %arg4[%c0_6, %c0_7], %8 {strides = array<i32>} : memref<32x128xbf16, #tpu.memory_space<vmem>>, vector<32x128xbf16>,
    return
  }
  func.func @transform_0(%arg0: i32) -> (i32, i32) {
    %c0_i32 = arith.constant 0 : i32
    %c0_i32_0 = arith.constant 0 : i32
    return %c0_i32, %arg0 : i32, i32
  }
  func.func @transform_1(%arg0: i32) -> (i32, i32) {
    %c0_i32 = arith.constant 0 : i32
    %c0_i32_0 = arith.constant 0 : i32
    %c0_i32_1 = arith.constant 0 : i32
    return %c0_i32, %c0_i32_0 : i32, i32
  }
  func.func @transform_2(%arg0: i32) -> (i32, i32) {
    %c0_i32 = arith.constant 0 : i32
    %c0_i32_0 = arith.constant 0 : i32
    %c0_i32_1 = arith.constant 0 : i32
    return %c0_i32, %c0_i32_0 : i32, i32
  }
  func.func @transform_3(%arg0: i32) -> (i32, i32) {
    %c0_i32 = arith.constant 0 : i32
    %c0_i32_0 = arith.constant 0 : i32
    return %c0_i32, %arg0 : i32, i32
  }
}

module attributes {stable_mosaic.version = 11 : i64} {
  func.func @_conv_mm_kernel(%arg0: i32, %arg1: memref<864x128xbf16, #tpu.memory_space<vmem>>, %arg2: memref<32x864xbf16, #tpu.memory_space<vmem>>, %arg3: memref<32x1xf32, #tpu.memory_space<vmem>>, %arg4: memref<16x128xbf16, #tpu.memory_space<vmem>>, %arg5: memref<32x16xbf16, #tpu.memory_space<vmem>>, %arg6: memref<32x1xf32, #tpu.memory_space<vmem>>, %arg7: memref<32x128xbf16, #tpu.memory_space<vmem>>) attributes {dimension_semantics = [#tpu.dimension_semantics<parallel>], iteration_bounds = array<i64: 1>, scalar_prefetch = 0 : i64, scratch_operands = 0 : i64, tpu.core_type = #tpu.core_type<tc>, window_params = [{transform_indices = @transform_0, window_bounds = array<i64: 864, 128>}, {pipeline_mode = #tpu.pipeline_mode<synchronous>, transform_indices = @transform_1, window_bounds = array<i64: 32, 864>}, {pipeline_mode = #tpu.pipeline_mode<synchronous>, transform_indices = @transform_2, window_bounds = array<i64: 32, 1>}, {transform_indices = @transform_3, window_bounds = array<i64: 16, 128>}, {pipeline_mode = #tpu.pipeline_mode<synchronous>, transform_indices = @transform_4, window_bounds = array<i64: 32, 16>}, {pipeline_mode = #tpu.pipeline_mode<synchronous>, transform_indices = @transform_5, window_bounds = array<i64: 32, 1>}, {transform_indices = @transform_6, window_bounds = array<i64: 32, 128>}]} {
    %c0 = arith.constant 0 : index
    %c0_0 = arith.constant 0 : index
    %0 = vector.load %arg2[%c0, %c0_0] : memref<32x864xbf16, #tpu.memory_space<vmem>>, vector<32x864xbf16>
    %c0_1 = arith.constant 0 : index
    %c0_2 = arith.constant 0 : index
    %1 = vector.load %arg1[%c0_1, %c0_2] : memref<864x128xbf16, #tpu.memory_space<vmem>>, vector<864x128xbf16>
    %cst = arith.constant dense<0.000000e+00> : vector<32x128xf32>
    %2 = tpu.matmul %0, %1, %cst {dimension_numbers = #tpu.dot_dimension_numbers<[1], [0], [0], [1], [0, 0, 1, 1], [], []>} : vector<32x864xbf16>, vector<864x128xbf16>, vector<32x128xf32> -> vector<32x128xf32>
    %c0_3 = arith.constant 0 : index
    %c0_4 = arith.constant 0 : index
    %3 = vector.load %arg3[%c0_3, %c0_4] : memref<32x1xf32, #tpu.memory_space<vmem>>, vector<32x1xf32>
    %4 = vector.broadcast %3 : vector<32x1xf32> to vector<32x128xf32>
    %5 = arith.addf %2, %4 : vector<32x128xf32>
    %c0_5 = arith.constant 0 : index
    %c0_6 = arith.constant 0 : index
    %6 = vector.load %arg5[%c0_5, %c0_6] : memref<32x16xbf16, #tpu.memory_space<vmem>>, vector<32x16xbf16>
    %c0_7 = arith.constant 0 : index
    %c0_8 = arith.constant 0 : index
    %7 = vector.load %arg4[%c0_7, %c0_8] : memref<16x128xbf16, #tpu.memory_space<vmem>>, vector<16x128xbf16>
    %cst_9 = arith.constant dense<0.000000e+00> : vector<32x128xf32>
    %8 = tpu.matmul %6, %7, %cst_9 {dimension_numbers = #tpu.dot_dimension_numbers<[1], [0], [0], [1], [0, 0, 1, 1], [], []>} : vector<32x16xbf16>, vector<16x128xbf16>, vector<32x128xf32> -> vector<32x128xf32>
    %c0_10 = arith.constant 0 : index
    %c0_11 = arith.constant 0 : index
    %9 = vector.load %arg6[%c0_10, %c0_11] : memref<32x1xf32, #tpu.memory_space<vmem>>, vector<32x1xf32>
    %10 = vector.broadcast %9 : vector<32x1xf32> to vector<32x128xf32>
    %11 = arith.addf %8, %10 : vector<32x128xf32>
    %12 = arith.addf %5, %11 : vector<32x128xf32>
    %cst_12 = arith.constant 0.000000e+00 : f32
    %13 = vector.broadcast %cst_12 : f32 to vector<32x128xf32>
    %14 = arith.maximumf %12, %13 : vector<32x128xf32>
    %15 = arith.truncf %14 : vector<32x128xf32> to vector<32x128xbf16>
    %c0_13 = arith.constant 0 : index
    %c0_14 = arith.constant 0 : index
    %16 = vector.load %arg7[%c0_13, %c0_14] : memref<32x128xbf16, #tpu.memory_space<vmem>>, vector<32x128xbf16>
    tpu.vector_store %arg7[%c0_13, %c0_14], %15 {strides = array<i32>} : memref<32x128xbf16, #tpu.memory_space<vmem>>, vector<32x128xbf16>,
    return
  }
  func.func @transform_0(%arg0: i32) -> (i32, i32) {
    %c0_i32 = arith.constant 0 : i32
    %c0_i32_0 = arith.constant 0 : i32
    return %c0_i32, %arg0 : i32, i32
  }
  func.func @transform_1(%arg0: i32) -> (i32, i32) {
    %c0_i32 = arith.constant 0 : i32
    %c0_i32_0 = arith.constant 0 : i32
    %c0_i32_1 = arith.constant 0 : i32
    return %c0_i32, %c0_i32_0 : i32, i32
  }
  func.func @transform_2(%arg0: i32) -> (i32, i32) {
    %c0_i32 = arith.constant 0 : i32
    %c0_i32_0 = arith.constant 0 : i32
    %c0_i32_1 = arith.constant 0 : i32
    return %c0_i32, %c0_i32_0 : i32, i32
  }
  func.func @transform_3(%arg0: i32) -> (i32, i32) {
    %c0_i32 = arith.constant 0 : i32
    %c0_i32_0 = arith.constant 0 : i32
    return %c0_i32, %arg0 : i32, i32
  }
  func.func @transform_4(%arg0: i32) -> (i32, i32) {
    %c0_i32 = arith.constant 0 : i32
    %c0_i32_0 = arith.constant 0 : i32
    %c0_i32_1 = arith.constant 0 : i32
    return %c0_i32, %c0_i32_0 : i32, i32
  }
  func.func @transform_5(%arg0: i32) -> (i32, i32) {
    %c0_i32 = arith.constant 0 : i32
    %c0_i32_0 = arith.constant 0 : i32
    %c0_i32_1 = arith.constant 0 : i32
    return %c0_i32, %c0_i32_0 : i32, i32
  }
  func.func @transform_6(%arg0: i32) -> (i32, i32) {
    %c0_i32 = arith.constant 0 : i32
    %c0_i32_0 = arith.constant 0 : i32
    return %c0_i32, %arg0 : i32, i32
  }
}

module attributes {stable_mosaic.version = 11 : i64} {
  func.func @_conv_mm_kernel(%arg0: i32, %arg1: memref<864x128xbf16, #tpu.memory_space<vmem>>, %arg2: memref<64x864xbf16, #tpu.memory_space<vmem>>, %arg3: memref<64x1xf32, #tpu.memory_space<vmem>>, %arg4: memref<64x128xbf16, #tpu.memory_space<vmem>>) attributes {dimension_semantics = [#tpu.dimension_semantics<parallel>], iteration_bounds = array<i64: 1>, scalar_prefetch = 0 : i64, scratch_operands = 0 : i64, tpu.core_type = #tpu.core_type<tc>, window_params = [{transform_indices = @transform_0, window_bounds = array<i64: 864, 128>}, {pipeline_mode = #tpu.pipeline_mode<synchronous>, transform_indices = @transform_1, window_bounds = array<i64: 64, 864>}, {pipeline_mode = #tpu.pipeline_mode<synchronous>, transform_indices = @transform_2, window_bounds = array<i64: 64, 1>}, {transform_indices = @transform_3, window_bounds = array<i64: 64, 128>}]} {
    %c0 = arith.constant 0 : index
    %c0_0 = arith.constant 0 : index
    %0 = vector.load %arg2[%c0, %c0_0] : memref<64x864xbf16, #tpu.memory_space<vmem>>, vector<64x864xbf16>
    %c0_1 = arith.constant 0 : index
    %c0_2 = arith.constant 0 : index
    %1 = vector.load %arg1[%c0_1, %c0_2] : memref<864x128xbf16, #tpu.memory_space<vmem>>, vector<864x128xbf16>
    %cst = arith.constant dense<0.000000e+00> : vector<64x128xf32>
    %2 = tpu.matmul %0, %1, %cst {dimension_numbers = #tpu.dot_dimension_numbers<[1], [0], [0], [1], [0, 0, 1, 1], [], []>} : vector<64x864xbf16>, vector<864x128xbf16>, vector<64x128xf32> -> vector<64x128xf32>
    %c0_3 = arith.constant 0 : index
    %c0_4 = arith.constant 0 : index
    %3 = vector.load %arg3[%c0_3, %c0_4] : memref<64x1xf32, #tpu.memory_space<vmem>>, vector<64x1xf32>
    %4 = vector.broadcast %3 : vector<64x1xf32> to vector<64x128xf32>
    %5 = arith.addf %2, %4 : vector<64x128xf32>
    %cst_5 = arith.constant 0.000000e+00 : f32
    %6 = vector.broadcast %cst_5 : f32 to vector<64x128xf32>
    %7 = arith.maximumf %5, %6 : vector<64x128xf32>
    %8 = arith.truncf %7 : vector<64x128xf32> to vector<64x128xbf16>
    %c0_6 = arith.constant 0 : index
    %c0_7 = arith.constant 0 : index
    %9 = vector.load %arg4[%c0_6, %c0_7] : memref<64x128xbf16, #tpu.memory_space<vmem>>, vector<64x128xbf16>
    tpu.vector_store %arg4[%c0_6, %c0_7], %8 {strides = array<i32>} : memref<64x128xbf16, #tpu.memory_space<vmem>>, vector<64x128xbf16>,
    return
  }
  func.func @transform_0(%arg0: i32) -> (i32, i32) {
    %c0_i32 = arith.constant 0 : i32
    %c0_i32_0 = arith.constant 0 : i32
    return %c0_i32, %arg0 : i32, i32
  }
  func.func @transform_1(%arg0: i32) -> (i32, i32) {
    %c0_i32 = arith.constant 0 : i32
    %c0_i32_0 = arith.constant 0 : i32
    %c0_i32_1 = arith.constant 0 : i32
    return %c0_i32, %c0_i32_0 : i32, i32
  }
  func.func @transform_2(%arg0: i32) -> (i32, i32) {
    %c0_i32 = arith.constant 0 : i32
    %c0_i32_0 = arith.constant 0 : i32
    %c0_i32_1 = arith.constant 0 : i32
    return %c0_i32, %c0_i32_0 : i32, i32
  }
  func.func @transform_3(%arg0: i32) -> (i32, i32) {
    %c0_i32 = arith.constant 0 : i32
    %c0_i32_0 = arith.constant 0 : i32
    return %c0_i32, %arg0 : i32, i32
  }
}

module attributes {stable_mosaic.version = 11 : i64} {
  func.func @_conv_mm_kernel(%arg0: i32, %arg1: memref<1728x128xbf16, #tpu.memory_space<vmem>>, %arg2: memref<64x1728xbf16, #tpu.memory_space<vmem>>, %arg3: memref<64x1xf32, #tpu.memory_space<vmem>>, %arg4: memref<32x128xbf16, #tpu.memory_space<vmem>>, %arg5: memref<64x32xbf16, #tpu.memory_space<vmem>>, %arg6: memref<64x1xf32, #tpu.memory_space<vmem>>, %arg7: memref<64x128xbf16, #tpu.memory_space<vmem>>) attributes {dimension_semantics = [#tpu.dimension_semantics<parallel>], iteration_bounds = array<i64: 1>, scalar_prefetch = 0 : i64, scratch_operands = 0 : i64, tpu.core_type = #tpu.core_type<tc>, window_params = [{transform_indices = @transform_0, window_bounds = array<i64: 1728, 128>}, {pipeline_mode = #tpu.pipeline_mode<synchronous>, transform_indices = @transform_1, window_bounds = array<i64: 64, 1728>}, {pipeline_mode = #tpu.pipeline_mode<synchronous>, transform_indices = @transform_2, window_bounds = array<i64: 64, 1>}, {transform_indices = @transform_3, window_bounds = array<i64: 32, 128>}, {pipeline_mode = #tpu.pipeline_mode<synchronous>, transform_indices = @transform_4, window_bounds = array<i64: 64, 32>}, {pipeline_mode = #tpu.pipeline_mode<synchronous>, transform_indices = @transform_5, window_bounds = array<i64: 64, 1>}, {transform_indices = @transform_6, window_bounds = array<i64: 64, 128>}]} {
    %c0 = arith.constant 0 : index
    %c0_0 = arith.constant 0 : index
    %0 = vector.load %arg2[%c0, %c0_0] : memref<64x1728xbf16, #tpu.memory_space<vmem>>, vector<64x1728xbf16>
    %c0_1 = arith.constant 0 : index
    %c0_2 = arith.constant 0 : index
    %1 = vector.load %arg1[%c0_1, %c0_2] : memref<1728x128xbf16, #tpu.memory_space<vmem>>, vector<1728x128xbf16>
    %cst = arith.constant dense<0.000000e+00> : vector<64x128xf32>
    %2 = tpu.matmul %0, %1, %cst {dimension_numbers = #tpu.dot_dimension_numbers<[1], [0], [0], [1], [0, 0, 1, 1], [], []>} : vector<64x1728xbf16>, vector<1728x128xbf16>, vector<64x128xf32> -> vector<64x128xf32>
    %c0_3 = arith.constant 0 : index
    %c0_4 = arith.constant 0 : index
    %3 = vector.load %arg3[%c0_3, %c0_4] : memref<64x1xf32, #tpu.memory_space<vmem>>, vector<64x1xf32>
    %4 = vector.broadcast %3 : vector<64x1xf32> to vector<64x128xf32>
    %5 = arith.addf %2, %4 : vector<64x128xf32>
    %c0_5 = arith.constant 0 : index
    %c0_6 = arith.constant 0 : index
    %6 = vector.load %arg5[%c0_5, %c0_6] : memref<64x32xbf16, #tpu.memory_space<vmem>>, vector<64x32xbf16>
    %c0_7 = arith.constant 0 : index
    %c0_8 = arith.constant 0 : index
    %7 = vector.load %arg4[%c0_7, %c0_8] : memref<32x128xbf16, #tpu.memory_space<vmem>>, vector<32x128xbf16>
    %cst_9 = arith.constant dense<0.000000e+00> : vector<64x128xf32>
    %8 = tpu.matmul %6, %7, %cst_9 {dimension_numbers = #tpu.dot_dimension_numbers<[1], [0], [0], [1], [0, 0, 1, 1], [], []>} : vector<64x32xbf16>, vector<32x128xbf16>, vector<64x128xf32> -> vector<64x128xf32>
    %c0_10 = arith.constant 0 : index
    %c0_11 = arith.constant 0 : index
    %9 = vector.load %arg6[%c0_10, %c0_11] : memref<64x1xf32, #tpu.memory_space<vmem>>, vector<64x1xf32>
    %10 = vector.broadcast %9 : vector<64x1xf32> to vector<64x128xf32>
    %11 = arith.addf %8, %10 : vector<64x128xf32>
    %12 = arith.addf %5, %11 : vector<64x128xf32>
    %cst_12 = arith.constant 0.000000e+00 : f32
    %13 = vector.broadcast %cst_12 : f32 to vector<64x128xf32>
    %14 = arith.maximumf %12, %13 : vector<64x128xf32>
    %15 = arith.truncf %14 : vector<64x128xf32> to vector<64x128xbf16>
    %c0_13 = arith.constant 0 : index
    %c0_14 = arith.constant 0 : index
    %16 = vector.load %arg7[%c0_13, %c0_14] : memref<64x128xbf16, #tpu.memory_space<vmem>>, vector<64x128xbf16>
    tpu.vector_store %arg7[%c0_13, %c0_14], %15 {strides = array<i32>} : memref<64x128xbf16, #tpu.memory_space<vmem>>, vector<64x128xbf16>,
    return
  }
  func.func @transform_0(%arg0: i32) -> (i32, i32) {
    %c0_i32 = arith.constant 0 : i32
    %c0_i32_0 = arith.constant 0 : i32
    return %c0_i32, %arg0 : i32, i32
  }
  func.func @transform_1(%arg0: i32) -> (i32, i32) {
    %c0_i32 = arith.constant 0 : i32
    %c0_i32_0 = arith.constant 0 : i32
    %c0_i32_1 = arith.constant 0 : i32
    return %c0_i32, %c0_i32_0 : i32, i32
  }
  func.func @transform_2(%arg0: i32) -> (i32, i32) {
    %c0_i32 = arith.constant 0 : i32
    %c0_i32_0 = arith.constant 0 : i32
    %c0_i32_1 = arith.constant 0 : i32
    return %c0_i32, %c0_i32_0 : i32, i32
  }
  func.func @transform_3(%arg0: i32) -> (i32, i32) {
    %c0_i32 = arith.constant 0 : i32
    %c0_i32_0 = arith.constant 0 : i32
    return %c0_i32, %arg0 : i32, i32
  }
  func.func @transform_4(%arg0: i32) -> (i32, i32) {
    %c0_i32 = arith.constant 0 : i32
    %c0_i32_0 = arith.constant 0 : i32
    %c0_i32_1 = arith.constant 0 : i32
    return %c0_i32, %c0_i32_0 : i32, i32
  }
  func.func @transform_5(%arg0: i32) -> (i32, i32) {
    %c0_i32 = arith.constant 0 : i32
    %c0_i32_0 = arith.constant 0 : i32
    %c0_i32_1 = arith.constant 0 : i32
    return %c0_i32, %c0_i32_0 : i32, i32
  }
  func.func @transform_6(%arg0: i32) -> (i32, i32) {
    %c0_i32 = arith.constant 0 : i32
    %c0_i32_0 = arith.constant 0 : i32
    return %c0_i32, %arg0 : i32, i32
  }
}

module attributes {stable_mosaic.version = 11 : i64} {
  func.func @_head_kernel(%arg0: i32, %arg1: memref<64x2x1xbf16, #tpu.memory_space<vmem>>, %arg2: memref<10x64xf32, #tpu.memory_space<vmem>>, %arg3: memref<10x1xf32, #tpu.memory_space<vmem>>, %arg4: memref<10x2xf32, #tpu.memory_space<vmem>>) attributes {dimension_semantics = [#tpu.dimension_semantics<arbitrary>], iteration_bounds = array<i64: 1>, scalar_prefetch = 0 : i64, scratch_operands = 0 : i64, tpu.core_type = #tpu.core_type<tc>, window_params = [{pipeline_mode = #tpu.pipeline_mode<synchronous>, transform_indices = @transform_0, window_bounds = array<i64: 64, 2, 1>}, {pipeline_mode = #tpu.pipeline_mode<synchronous>, transform_indices = @transform_1, window_bounds = array<i64: 10, 64>}, {pipeline_mode = #tpu.pipeline_mode<synchronous>, transform_indices = @transform_2, window_bounds = array<i64: 10, 1>}, {pipeline_mode = #tpu.pipeline_mode<synchronous>, transform_indices = @transform_3, window_bounds = array<i64: 10, 2>}]} {
    %c0 = arith.constant 0 : index
    %c0_0 = arith.constant 0 : index
    %c0_1 = arith.constant 0 : index
    %0 = vector.load %arg1[%c0, %c0_0, %c0_1] : memref<64x2x1xbf16, #tpu.memory_space<vmem>>, vector<64x2x1xbf16>
    %1 = arith.extf %0 : vector<64x2x1xbf16> to vector<64x2x1xf32>
    %cst = arith.constant dense<0.000000e+00> : vector<64x2xf32>
    %2 = vector.multi_reduction <add>, %1, %cst [2] : vector<64x2x1xf32> to vector<64x2xf32>
    %cst_2 = arith.constant 1.000000e+00 : f32
    %3 = vector.broadcast %cst_2 : f32 to vector<64x2xf32>
    %4 = arith.divf %2, %3 : vector<64x2xf32>
    %c0_3 = arith.constant 0 : index
    %c0_4 = arith.constant 0 : index
    %5 = vector.load %arg2[%c0_3, %c0_4] : memref<10x64xf32, #tpu.memory_space<vmem>>, vector<10x64xf32>
    %cst_5 = arith.constant dense<0.000000e+00> : vector<10x2xf32>
    %6 = tpu.matmul %5, %4, %cst_5 {dimension_numbers = #tpu.dot_dimension_numbers<[1], [0], [0], [1], [0, 0, 1, 1], [], []>} : vector<10x64xf32>, vector<64x2xf32>, vector<10x2xf32> -> vector<10x2xf32>
    %c0_6 = arith.constant 0 : index
    %c0_7 = arith.constant 0 : index
    %7 = vector.load %arg3[%c0_6, %c0_7] : memref<10x1xf32, #tpu.memory_space<vmem>>, vector<10x1xf32>
    %8 = vector.broadcast %7 : vector<10x1xf32> to vector<10x2xf32>
    %9 = arith.addf %6, %8 : vector<10x2xf32>
    %cst_8 = arith.constant dense<0xFF800000> : vector<2xf32>
    %10 = vector.multi_reduction <maximumf>, %9, %cst_8 [0] : vector<10x2xf32> to vector<2xf32>
    %11 = vector.shape_cast %10 : vector<2xf32> to vector<1x2xf32>
    %12 = vector.broadcast %11 : vector<1x2xf32> to vector<10x2xf32>
    %13 = arith.subf %9, %12 : vector<10x2xf32>
    %14 = math.exp %13 : vector<10x2xf32>
    %cst_9 = arith.constant dense<0.000000e+00> : vector<2xf32>
    %15 = vector.multi_reduction <add>, %14, %cst_9 [0] : vector<10x2xf32> to vector<2xf32>
    %16 = vector.shape_cast %15 : vector<2xf32> to vector<1x2xf32>
    %17 = math.log %16 : vector<1x2xf32>
    %18 = vector.broadcast %17 : vector<1x2xf32> to vector<10x2xf32>
    %19 = arith.subf %13, %18 : vector<10x2xf32>
    %c0_10 = arith.constant 0 : index
    %c0_11 = arith.constant 0 : index
    %20 = vector.load %arg4[%c0_10, %c0_11] : memref<10x2xf32, #tpu.memory_space<vmem>>, vector<10x2xf32>
    tpu.vector_store %arg4[%c0_10, %c0_11], %19 {strides = array<i32>} : memref<10x2xf32, #tpu.memory_space<vmem>>, vector<10x2xf32>,
    return
  }
  func.func @transform_0(%arg0: i32) -> (i32, i32, i32) {
    %c0_i32 = arith.constant 0 : i32
    %c0_i32_0 = arith.constant 0 : i32
    %c0_i32_1 = arith.constant 0 : i32
    %c0_i32_2 = arith.constant 0 : i32
    return %c0_i32, %c0_i32_0, %c0_i32_1 : i32, i32, i32
  }
  func.func @transform_1(%arg0: i32) -> (i32, i32) {
    %c0_i32 = arith.constant 0 : i32
    %c0_i32_0 = arith.constant 0 : i32
    %c0_i32_1 = arith.constant 0 : i32
    return %c0_i32, %c0_i32_0 : i32, i32
  }
  func.func @transform_2(%arg0: i32) -> (i32, i32) {
    %c0_i32 = arith.constant 0 : i32
    %c0_i32_0 = arith.constant 0 : i32
    %c0_i32_1 = arith.constant 0 : i32
    return %c0_i32, %c0_i32_0 : i32, i32
  }
  func.func @transform_3(%arg0: i32) -> (i32, i32) {
    %c0_i32 = arith.constant 0 : i32
    %c0_i32_0 = arith.constant 0 : i32
    %c0_i32_1 = arith.constant 0 : i32
    return %c0_i32, %c0_i32_0 : i32, i32
  }
}

</mosaic_0001>

<bundles_post_ra>
// kernel: resnet_forward.11
= control target key start
LH: loop header
LB: loop body
LE: loop exit
PB: predicated region body
PF: predicated region fallthrough
CT: control target
= control target key end

     0   :  { %s1495_s12 = smov 0   ;;  %s1497_s13 = smov 0   ;;  %s1829_s0 = inlined_call_operand.vmem [shape: bf16[343,1024], index: 0, kind: input, shape index: {}]   ;;  %s1830_s1 = inlined_call_operand.vmem [shape: bf16[8,343], index: 1, kind: input, shape index: {}]   ;;  %s1831_s2 = inlined_call_operand.vmem [shape: f32[8,1], index: 2, kind: input, shape index: {}]   ;;  %s1832_s3 = inlined_call_operand.vmem [shape: bf16[8,1024], index: 3, kind: output, shape index: {}]  }
   0x1   :  { %s1499_s14 = smov 0  }
   0x2 LB: > { %s1166_s15 = sadd.s32 4294967295, %s1471_s14   ;;  %s1512_s16 = sadd.s32 1, %s1471_s14   ;;  %s1471_s14 = sphi %s1499_s14, %s1835_s14   ;;  %s1467_s13 = sphi %s1497_s13, %s1834_s13   ;;  %s1463_s12 = sphi %s1495_s12, %s1833_s12  }
   0x3   : > { %s17_s17 = ssub.s32 %s1471_s14, %s1512_s16  ;;  %s20_s18 = sadd.s32 1, %s1467_s13 }
   0x4   : > { %p18_p0 = scmp.eq.s32.totalorder %s17_s17, 0  ;;  %p27_p1 = scmp.ne.s32.totalorder %s1467_s13, %s1463_s12 }
   0x5   : > { %p28_p2 = scmp.eq.s32.totalorder %s1471_s14, 0  ;;  %p1169_p4 = scmp.ge.s32.totalorder %s1471_s14, 2 }
   0x6   : > { %s1521_s19 = scalar_select %p18_p0, %s1467_s13, %s20_s18  }
   0x7   : > { %p29_p3 = por %p28_p2, %p27_p1  ;;  %127 = sbr.rel (%p1169_p4) target bundleno = 61 (0x3d), region = 24 }
   0xe   : > { %130 = sbr.rel (!%p29_p3) target bundleno = 61 (0x3d), region = 28  ;;  %s132_s20 = sand.u32 (%p29_p3), 1, %s1467_s13  }
   0xf   : > { %s1272_s21 = sshll.u32 (%p29_p3), %s1471_s14, 4  ;;  %s1287_s22 = smul.u32 (%p29_p3), 688, %s132_s20 }
  0x10   : > { %s1529_s25 = scalar_lea.vmem (%p29_p3), %s1829_s0, %s1272_s21 }
  0x11   : > { %v150_v0 = vld [vmem:[%s1529_s25] sm:$0xff] (%p29_p3)  ;;  %v152_v1 = vld [vmem:[%s1529_s25 + $0x8] sm:$0xff] (%p29_p3)  ;;  %s1537_s26 = scalar_lea.vmem (%p29_p3), [#allocation2], %s1287_s22 }
  0x12   : > { %v154_v2 = vld [vmem:[%s1529_s25 + $0x20] sm:$0xff] (%p29_p3)  ;;  %v156_v3 = vld [vmem:[%s1529_s25 + $0x28] sm:$0xff] (%p29_p3)  ;;  %151 = vst [vmem:[%s1537_s26] sm:$0xff] (%p29_p3), %v150_v0  ;;  %153 = vst [vmem:[%s1537_s26 + $0x8] sm:$0xff] (%p29_p3), %v152_v1 }
  0x13   : > { %v158_v4 = vld [vmem:[%s1529_s25 + $0x40] sm:$0xff] (%p29_p3)  ;;  %v160_v5 = vld [vmem:[%s1529_s25 + $0x48] sm:$0xff] (%p29_p3)  ;;  %155 = vst [vmem:[%s1537_s26 + $0x10] sm:$0xff] (%p29_p3), %v154_v2  ;;  %157 = vst [vmem:[%s1537_s26 + $0x18] sm:$0xff] (%p29_p3), %v156_v3 }
  0x14   : > { %159 = vst [vmem:[%s1537_s26 + $0x20] sm:$0xff] (%p29_p3), %v158_v4  ;;  %161 = vst [vmem:[%s1537_s26 + $0x28] sm:$0xff] (%p29_p3), %v160_v5  ;;  %v162_v6 = vld [vmem:[%s1529_s25 + $0x60] sm:$0xff] (%p29_p3)  ;;  %v164_v7 = vld [vmem:[%s1529_s25 + $0x68] sm:$0xff] (%p29_p3) }
  0x15   : > { %v166_v8 = vld [vmem:[%s1529_s25 + $0x80] sm:$0xff]  ;;  %163 = vst [vmem:[%s1537_s26 + $0x30] sm:$0xff] %v162_v6  ;;  %165 = vst [vmem:[%s1537_s26 + $0x38] sm:$0xff] %v164_v7  ;;  %v168_v9 = vld [vmem:[%s1529_s25 + $0x88] sm:$0xff] }
  0x16   : > { %167 = vst [vmem:[%s1537_s26 + $0x40] sm:$0xff] %v166_v8  ;;  %v170_v10 = vld [vmem:[%s1529_s25 + $0xa0] sm:$0xff]  ;;  %v172_v11 = vld [vmem:[%s1529_s25 + $0xa8] sm:$0xff]  ;;  %169 = vst [vmem:[%s1537_s26 + $0x48] sm:$0xff] %v168_v9 }
  0x17   : > { %171 = vst [vmem:[%s1537_s26 + $0x50] sm:$0xff] %v170_v10  ;;  %173 = vst [vmem:[%s1537_s26 + $0x58] sm:$0xff] %v172_v11  ;;  %v174_v12 = vld [vmem:[%s1529_s25 + $0xc0] sm:$0xff]  ;;  %v176_v13 = vld [vmem:[%s1529_s25 + $0xc8] sm:$0xff] }
  0x18   : > { %v178_v14 = vld [vmem:[%s1529_s25 + $0xe0] sm:$0xff]  ;;  %175 = vst [vmem:[%s1537_s26 + $0x60] sm:$0xff] %v174_v12  ;;  %177 = vst [vmem:[%s1537_s26 + $0x68] sm:$0xff] %v176_v13  ;;  %v180_v15 = vld [vmem:[%s1529_s25 + $0xe8] sm:$0xff] }
  0x19   : > { %179 = vst [vmem:[%s1537_s26 + $0x70] sm:$0xff] %v178_v14  ;;  %v182_v16 = vld [vmem:[%s1529_s25 + $0x100] sm:$0xff]  ;;  %v184_v17 = vld [vmem:[%s1529_s25 + $0x108] sm:$0xff]  ;;  %181 = vst [vmem:[%s1537_s26 + $0x78] sm:$0xff] %v180_v15 }
  0x1a   : > { %183 = vst [vmem:[%s1537_s26 + $0x80] sm:$0xff] %v182_v16  ;;  %185 = vst [vmem:[%s1537_s26 + $0x88] sm:$0xff] %v184_v17  ;;  %v186_v18 = vld [vmem:[%s1529_s25 + $0x120] sm:$0xff]  ;;  %v188_v19 = vld [vmem:[%s1529_s25 + $0x128] sm:$0xff] }
  0x1b   : > { %v190_v20 = vld [vmem:[%s1529_s25 + $0x140] sm:$0xff]  ;;  %187 = vst [vmem:[%s1537_s26 + $0x90] sm:$0xff] %v186_v18  ;;  %189 = vst [vmem:[%s1537_s26 + $0x98] sm:$0xff] %v188_v19  ;;  %v192_v21 = vld [vmem:[%s1529_s25 + $0x148] sm:$0xff] }
  0x1c   : > { %191 = vst [vmem:[%s1537_s26 + $0xa0] sm:$0xff] %v190_v20  ;;  %v194_v22 = vld [vmem:[%s1529_s25 + $0x160] sm:$0xff]  ;;  %v196_v23 = vld [vmem:[%s1529_s25 + $0x168] sm:$0xff]  ;;  %193 = vst [vmem:[%s1537_s26 + $0xa8] sm:$0xff] %v192_v21 }
  0x1d   : > { %195 = vst [vmem:[%s1537_s26 + $0xb0] sm:$0xff] %v194_v22  ;;  %197 = vst [vmem:[%s1537_s26 + $0xb8] sm:$0xff] %v196_v23  ;;  %v198_v24 = vld [vmem:[%s1529_s25 + $0x180] sm:$0xff]  ;;  %v200_v25 = vld [vmem:[%s1529_s25 + $0x188] sm:$0xff] }
  0x1e   : > { %v202_v26 = vld [vmem:[%s1529_s25 + $0x1a0] sm:$0xff]  ;;  %199 = vst [vmem:[%s1537_s26 + $0xc0] sm:$0xff] %v198_v24  ;;  %201 = vst [vmem:[%s1537_s26 + $0xc8] sm:$0xff] %v200_v25  ;;  %v204_v27 = vld [vmem:[%s1529_s25 + $0x1a8] sm:$0xff] }
  0x1f   : > { %203 = vst [vmem:[%s1537_s26 + $0xd0] sm:$0xff] %v202_v26  ;;  %v206_v28 = vld [vmem:[%s1529_s25 + $0x1c0] sm:$0xff]  ;;  %v208_v29 = vld [vmem:[%s1529_s25 + $0x1c8] sm:$0xff]  ;;  %205 = vst [vmem:[%s1537_s26 + $0xd8] sm:$0xff] %v204_v27 }
  0x20   : > { %207 = vst [vmem:[%s1537_s26 + $0xe0] sm:$0xff] %v206_v28  ;;  %209 = vst [vmem:[%s1537_s26 + $0xe8] sm:$0xff] %v208_v29  ;;  %v210_v30 = vld [vmem:[%s1529_s25 + $0x1e0] sm:$0xff]  ;;  %v212_v31 = vld [vmem:[%s1529_s25 + $0x1e8] sm:$0xff] }
  0x21   : > { %v214_v32 = vld [vmem:[%s1529_s25 + $0x200] sm:$0xff]  ;;  %211 = vst [vmem:[%s1537_s26 + $0xf0] sm:$0xff] %v210_v30  ;;  %213 = vst [vmem:[%s1537_s26 + $0xf8] sm:$0xff] %v212_v31  ;;  %v216_v33 = vld [vmem:[%s1529_s25 + $0x208] sm:$0xff] }
  0x22   : > { %215 = vst [vmem:[%s1537_s26 + $0x100] sm:$0xff] %v214_v32  ;;  %v218_v34 = vld [vmem:[%s1529_s25 + $0x220] sm:$0xff]  ;;  %v220_v35 = vld [vmem:[%s1529_s25 + $0x228] sm:$0xff]  ;;  %217 = vst [vmem:[%s1537_s26 + $0x108] sm:$0xff] %v216_v33 }
  0x23   : > { %219 = vst [vmem:[%s1537_s26 + $0x110] sm:$0xff] %v218_v34  ;;  %221 = vst [vmem:[%s1537_s26 + $0x118] sm:$0xff] %v220_v35  ;;  %v222_v36 = vld [vmem:[%s1529_s25 + $0x240] sm:$0xff]  ;;  %v224_v37 = vld [vmem:[%s1529_s25 + $0x248] sm:$0xff] }
  0x24   : > { %v226_v38 = vld [vmem:[%s1529_s25 + $0x260] sm:$0xff]  ;;  %223 = vst [vmem:[%s1537_s26 + $0x120] sm:$0xff] %v222_v36  ;;  %225 = vst [vmem:[%s1537_s26 + $0x128] sm:$0xff] %v224_v37  ;;  %v228_v39 = vld [vmem:[%s1529_s25 + $0x268] sm:$0xff] }
  0x25   : > { %227 = vst [vmem:[%s1537_s26 + $0x130] sm:$0xff] %v226_v38  ;;  %v230_v40 = vld [vmem:[%s1529_s25 + $0x280] sm:$0xff]  ;;  %v232_v41 = vld [vmem:[%s1529_s25 + $0x288] sm:$0xff]  ;;  %229 = vst [vmem:[%s1537_s26 + $0x138] sm:$0xff] %v228_v39 }
  0x26   : > { %231 = vst [vmem:[%s1537_s26 + $0x140] sm:$0xff] %v230_v40  ;;  %233 = vst [vmem:[%s1537_s26 + $0x148] sm:$0xff] %v232_v41  ;;  %v234_v42 = vld [vmem:[%s1529_s25 + $0x2a0] sm:$0xff]  ;;  %v236_v43 = vld [vmem:[%s1529_s25 + $0x2a8] sm:$0xff] }
  0x27   : > { %v238_v44 = vld [vmem:[%s1529_s25 + $0x2c0] sm:$0xff]  ;;  %235 = vst [vmem:[%s1537_s26 + $0x150] sm:$0xff] %v234_v42  ;;  %237 = vst [vmem:[%s1537_s26 + $0x158] sm:$0xff] %v236_v43  ;;  %v240_v45 = vld [vmem:[%s1529_s25 + $0x2c8] sm:$0xff] }
  0x28   : > { %239 = vst [vmem:[%s1537_s26 + $0x160] sm:$0xff] %v238_v44  ;;  %v242_v46 = vld [vmem:[%s1529_s25 + $0x2e0] sm:$0xff]  ;;  %v244_v47 = vld [vmem:[%s1529_s25 + $0x2e8] sm:$0xff]  ;;  %241 = vst [vmem:[%s1537_s26 + $0x168] sm:$0xff] %v240_v45 }
  0x29   : > { %243 = vst [vmem:[%s1537_s26 + $0x170] sm:$0xff] %v242_v46  ;;  %245 = vst [vmem:[%s1537_s26 + $0x178] sm:$0xff] %v244_v47  ;;  %v246_v48 = vld [vmem:[%s1529_s25 + $0x300] sm:$0xff]  ;;  %v248_v49 = vld [vmem:[%s1529_s25 + $0x308] sm:$0xff] }
  0x2a   : > { %v250_v50 = vld [vmem:[%s1529_s25 + $0x320] sm:$0xff]  ;;  %247 = vst [vmem:[%s1537_s26 + $0x180] sm:$0xff] %v246_v48  ;;  %249 = vst [vmem:[%s1537_s26 + $0x188] sm:$0xff] %v248_v49  ;;  %v252_v51 = vld [vmem:[%s1529_s25 + $0x328] sm:$0xff] }
  0x2b   : > { %251 = vst [vmem:[%s1537_s26 + $0x190] sm:$0xff] %v250_v50  ;;  %v254_v52 = vld [vmem:[%s1529_s25 + $0x340] sm:$0xff]  ;;  %v256_v53 = vld [vmem:[%s1529_s25 + $0x348] sm:$0xff]  ;;  %253 = vst [vmem:[%s1537_s26 + $0x198] sm:$0xff] %v252_v51 }
  0x2c   : > { %255 = vst [vmem:[%s1537_s26 + $0x1a0] sm:$0xff] %v254_v52  ;;  %257 = vst [vmem:[%s1537_s26 + $0x1a8] sm:$0xff] %v256_v53  ;;  %v258_v54 = vld [vmem:[%s1529_s25 + $0x360] sm:$0xff]  ;;  %v260_v55 = vld [vmem:[%s1529_s25 + $0x368] sm:$0xff] }
  0x2d   : > { %v262_v56 = vld [vmem:[%s1529_s25 + $0x380] sm:$0xff]  ;;  %259 = vst [vmem:[%s1537_s26 + $0x1b0] sm:$0xff] %v258_v54  ;;  %261 = vst [vmem:[%s1537_s26 + $0x1b8] sm:$0xff] %v260_v55  ;;  %v264_v57 = vld [vmem:[%s1529_s25 + $0x388] sm:$0xff] }
  0x2e   : > { %263 = vst [vmem:[%s1537_s26 + $0x1c0] sm:$0xff] %v262_v56  ;;  %v266_v58 = vld [vmem:[%s1529_s25 + $0x3a0] sm:$0xff]  ;;  %v268_v59 = vld [vmem:[%s1529_s25 + $0x3a8] sm:$0xff]  ;;  %265 = vst [vmem:[%s1537_s26 + $0x1c8] sm:$0xff] %v264_v57 }
  0x2f   : > { %267 = vst [vmem:[%s1537_s26 + $0x1d0] sm:$0xff] %v266_v58  ;;  %269 = vst [vmem:[%s1537_s26 + $0x1d8] sm:$0xff] %v268_v59  ;;  %v270_v60 = vld [vmem:[%s1529_s25 + $0x3c0] sm:$0xff]  ;;  %v272_v61 = vld [vmem:[%s1529_s25 + $0x3c8] sm:$0xff] }
  0x30   : > { %v274_v62 = vld [vmem:[%s1529_s25 + $0x3e0] sm:$0xff]  ;;  %271 = vst [vmem:[%s1537_s26 + $0x1e0] sm:$0xff] %v270_v60  ;;  %273 = vst [vmem:[%s1537_s26 + $0x1e8] sm:$0xff] %v272_v61  ;;  %v276_v63 = vld [vmem:[%s1529_s25 + $0x3e8] sm:$0xff] }
  0x31   : > { %275 = vst [vmem:[%s1537_s26 + $0x1f0] sm:$0xff] %v274_v62  ;;  %v278_v0 = vld [vmem:[%s1529_s25 + $0x400] sm:$0xff]  ;;  %v280_v1 = vld [vmem:[%s1529_s25 + $0x408] sm:$0xff]  ;;  %277 = vst [vmem:[%s1537_s26 + $0x1f8] sm:$0xff] %v276_v63 }
  0x32   : > { %279 = vst [vmem:[%s1537_s26 + $0x200] sm:$0xff] %v278_v0  ;;  %281 = vst [vmem:[%s1537_s26 + $0x208] sm:$0xff] %v280_v1  ;;  %v282_v2 = vld [vmem:[%s1529_s25 + $0x420] sm:$0xff]  ;;  %v284_v3 = vld [vmem:[%s1529_s25 + $0x428] sm:$0xff] }
  0x33   : > { %v286_v4 = vld [vmem:[%s1529_s25 + $0x440] sm:$0xff]  ;;  %283 = vst [vmem:[%s1537_s26 + $0x210] sm:$0xff] %v282_v2  ;;  %285 = vst [vmem:[%s1537_s26 + $0x218] sm:$0xff] %v284_v3  ;;  %v288_v5 = vld [vmem:[%s1529_s25 + $0x448] sm:$0xff] }
  0x34   : > { %287 = vst [vmem:[%s1537_s26 + $0x220] sm:$0xff] %v286_v4  ;;  %v290_v6 = vld [vmem:[%s1529_s25 + $0x460] sm:$0xff]  ;;  %v292_v7 = vld [vmem:[%s1529_s25 + $0x468] sm:$0xff]  ;;  %289 = vst [vmem:[%s1537_s26 + $0x228] sm:$0xff] %v288_v5 }
  0x35   : > { %291 = vst [vmem:[%s1537_s26 + $0x230] sm:$0xff] %v290_v6  ;;  %293 = vst [vmem:[%s1537_s26 + $0x238] sm:$0xff] %v292_v7  ;;  %v294_v8 = vld [vmem:[%s1529_s25 + $0x480] sm:$0xff]  ;;  %v296_v9 = vld [vmem:[%s1529_s25 + $0x488] sm:$0xff] }
  0x36   : > { %v298_v10 = vld [vmem:[%s1529_s25 + $0x4a0] sm:$0xff]  ;;  %295 = vst [vmem:[%s1537_s26 + $0x240] sm:$0xff] %v294_v8  ;;  %297 = vst [vmem:[%s1537_s26 + $0x248] sm:$0xff] %v296_v9  ;;  %v300_v11 = vld [vmem:[%s1529_s25 + $0x4a8] sm:$0xff] }
  0x37   : > { %299 = vst [vmem:[%s1537_s26 + $0x250] sm:$0xff] %v298_v10  ;;  %v302_v12 = vld [vmem:[%s1529_s25 + $0x4c0] sm:$0xff]  ;;  %v304_v13 = vld [vmem:[%s1529_s25 + $0x4c8] sm:$0xff]  ;;  %301 = vst [vmem:[%s1537_s26 + $0x258] sm:$0xff] %v300_v11 }
  0x38   : > { %303 = vst [vmem:[%s1537_s26 + $0x260] sm:$0xff] %v302_v12  ;;  %305 = vst [vmem:[%s1537_s26 + $0x268] sm:$0xff] %v304_v13  ;;  %v306_v14 = vld [vmem:[%s1529_s25 + $0x4e0] sm:$0xff]  ;;  %v308_v15 = vld [vmem:[%s1529_s25 + $0x4e8] sm:$0xff] }
  0x39   : > { %v310_v16 = vld [vmem:[%s1529_s25 + $0x500] sm:$0xff]  ;;  %307 = vst [vmem:[%s1537_s26 + $0x270] sm:$0xff] %v306_v14  ;;  %309 = vst [vmem:[%s1537_s26 + $0x278] sm:$0xff] %v308_v15  ;;  %v312_v17 = vld [vmem:[%s1529_s25 + $0x508] sm:$0xff] }
  0x3a   : > { %311 = vst [vmem:[%s1537_s26 + $0x280] sm:$0xff] %v310_v16  ;;  %v314_v18 = vld [vmem:[%s1529_s25 + $0x520] sm:$0xff]  ;;  %v316_v19 = vld [vmem:[%s1529_s25 + $0x528] sm:$0xff]  ;;  %313 = vst [vmem:[%s1537_s26 + $0x288] sm:$0xff] %v312_v17 }
  0x3b   : > { %315 = vst [vmem:[%s1537_s26 + $0x290] sm:$0xff] %v314_v18  ;;  %317 = vst [vmem:[%s1537_s26 + $0x298] sm:$0xff] %v316_v19  ;;  %v318_v20 = vld [vmem:[%s1529_s25 + $0x540] sm:$0xff]  ;;  %v320_v21 = vld [vmem:[%s1529_s25 + $0x548] sm:$0xff] }
  0x3c   : > { %319 = vst [vmem:[%s1537_s26 + $0x2a0] sm:$0xff] %v318_v20  ;;  %321 = vst [vmem:[%s1537_s26 + $0x2a8] sm:$0xff] %v320_v21 }
  0x3d PF: > { %p1172_p5 = scmp.ge.s32.totalorder %s1471_s14, 1  ;;  %p326_p6 = scmp.lt.s32.totalorder %s1471_s14, 3 }
  0x3f   : > { %p327_p7 = pnand %p1172_p5, %p326_p6 }
  0x40   : > { %s333_s27 = sand.u32 (!%p327_p7), 1, %s1463_s12   ;;  %v1711_v22 = vld [vmem:[%s1830_s1] sm:$0xff] (!%p327_p7)  ;;  %v1473_v24 = vmov (!%p327_p7), 0   ;;  %vm902_vm0 = vcmask (!%p327_p7), 1042432   ;;  %vm903_vm1 = vcmask (!%p327_p7), 1043456   ;;  %vm898_vm2 = vcmask (!%p327_p7), 711680  }
  0x41   : > { %330 = sbr.rel (%p327_p7) target bundleno = 378 (0x17a), region = 51  ;;  %v1176_v23 = vcombine.high (!%p327_p7), %v1711_v22, %v1711_v22  ;;  %1315 = vset.pattern.permute.xlu0 (!%p327_p7), %v1473_v24  ;;  %v452_v25 = vld [vmem:[%s1831_s2] sm:$0xff] (!%p327_p7)  ;;  %s1173_s9 = sshll.u32 (!%p327_p7), %s1166_s15, 2 }
  0x42   : > { %s1288_s30 = smul.u32 (!%p327_p7), 688, %s333_s27  ;;  %455 = vperm.xlu0 (!%p327_p7), %1315, %v452_v25   ;;  %p358_p8 = scmp.lt.s32.totalorder (!%p327_p7), %s1173_s9, 7 }
  0x43   : > { %950 = vmatprep.mubr.bf16.mxu0 (!%p327_p7), %v1176_v23  ;;  %1032 = vmatprep.mubr.bf16.mxu1 (!%p327_p7), %v1176_v23 }
  0x44   : > { %s1719_s6 = scalar_lea.vmem (!%p327_p7), [#allocation2], %s1288_s30 }
  0x45   : > { %v1316_v26 = vld [vmem:[%s1719_s6 + $0x4] ss:$16 sps:$4 sm:$0xff] (!%p327_p7)   ;;  %v1318_v27 = vld [vmem:[%s1719_s6 + $0xc] ss:$16 sps:$4 sm:$0xff] (!%p327_p7)   ;;  %v1320_v28 = vld [vmem:[%s1719_s6] ss:$16 sps:$4 sm:$0xff] (!%p327_p7)  }
  0x46   : > { %918 = vmatprep.subr.bf16.mxu0 (!%p327_p7), %v1316_v26  ;;  %v1321_v29 = vld [vmem:[%s1719_s6 + $0x8] ss:$16 sps:$4 sm:$0xff] (!%p327_p7)   ;;  %1000 = vmatprep.subr.bf16.mxu1 (!%p327_p7), %v1318_v27  ;;  %v1322_v30 = vld [vmem:[%s1719_s6 + $0x24] ss:$16 sps:$4 sm:$0xff] (!%p327_p7)   ;;  %v1324_v31 = vld [vmem:[%s1719_s6 + $0x2c] ss:$16 sps:$4 sm:$0xff] (!%p327_p7)  }
  0x47   : > { %919 = vmatpush1.bf16.msra.mxu0 (!%p327_p7), %v1320_v28  ;;  %1001 = vmatpush1.bf16.msra.mxu1 (!%p327_p7), %v1321_v29  ;;  %v1326_v32 = vld [vmem:[%s1719_s6 + $0x20] ss:$16 sps:$4 sm:$0xff] (!%p327_p7)   ;;  %v1327_v33 = vld [vmem:[%s1719_s6 + $0x28] ss:$16 sps:$4 sm:$0xff] (!%p327_p7)   ;;  %v1328_v34 = vld [vmem:[%s1719_s6 + $0x44] ss:$16 sps:$4 sm:$0xff] (!%p327_p7)  }
  0x48   : > { %920 = vmatprep.subr.bf16.mxu0 %v1322_v30  ;;  %1002 = vmatprep.subr.bf16.mxu1 %v1324_v31  ;;  %v1330_v35 = vld [vmem:[%s1719_s6 + $0x4c] ss:$16 sps:$4 sm:$0xff]   ;;  %v1332_v36 = vld [vmem:[%s1719_s6 + $0x40] ss:$16 sps:$4 sm:$0xff]   ;;  %v1333_v37 = vld [vmem:[%s1719_s6 + $0x48] ss:$16 sps:$4 sm:$0xff]   ;;  %v1175_v30 = vcombine.low %v1711_v22, %v1711_v22 }
  0x49   : > { %v1334_v38 = vld [vmem:[%s1719_s6 + $0x64] ss:$16 sps:$4 sm:$0xff]   ;;  %v1336_v39 = vld [vmem:[%s1719_s6 + $0x6c] ss:$16 sps:$4 sm:$0xff]   ;;  %v1338_v40 = vld [vmem:[%s1719_s6 + $0x60] ss:$16 sps:$4 sm:$0xff]  }
  0x4a   : > { %v1339_v41 = vld [vmem:[%s1719_s6 + $0x68] ss:$16 sps:$4 sm:$0xff]   ;;  %v1340_v42 = vld [vmem:[%s1719_s6 + $0x84] ss:$16 sps:$4 sm:$0xff]   ;;  %v1342_v43 = vld [vmem:[%s1719_s6 + $0x8c] ss:$16 sps:$4 sm:$0xff]  }
  0x4b   : > { %921 = vmatpush1.bf16.msra.mxu0 %v1326_v32  ;;  %1003 = vmatpush1.bf16.msra.mxu1 %v1327_v33  ;;  %v1344_v44 = vld [vmem:[%s1719_s6 + $0x80] ss:$16 sps:$4 sm:$0xff]   ;;  %v1345_v45 = vld [vmem:[%s1719_s6 + $0x88] ss:$16 sps:$4 sm:$0xff]   ;;  %v1346_v46 = vld [vmem:[%s1719_s6 + $0xa4] ss:$16 sps:$4 sm:$0xff]  }
  0x4c   : > { %922 = vmatprep.subr.bf16.mxu0 %v1328_v34  ;;  %1004 = vmatprep.subr.bf16.mxu1 %v1330_v35  ;;  %v1348_v47 = vld [vmem:[%s1719_s6 + $0xac] ss:$16 sps:$4 sm:$0xff]   ;;  %v1350_v48 = vld [vmem:[%s1719_s6 + $0xa0] ss:$16 sps:$4 sm:$0xff]   ;;  %v1351_v49 = vld [vmem:[%s1719_s6 + $0xa8] ss:$16 sps:$4 sm:$0xff]  }
  0x4d   : > { %v1352_v50 = vld [vmem:[%s1719_s6 + $0xc4] ss:$16 sps:$4 sm:$0xff]   ;;  %v1354_v51 = vld [vmem:[%s1719_s6 + $0xcc] ss:$16 sps:$4 sm:$0xff]   ;;  %v1356_v52 = vld [vmem:[%s1719_s6 + $0xc0] ss:$16 sps:$4 sm:$0xff]  }
  0x4e   : > { %v1357_v53 = vld [vmem:[%s1719_s6 + $0xc8] ss:$16 sps:$4 sm:$0xff]   ;;  %v1358_v54 = vld [vmem:[%s1719_s6 + $0xe4] ss:$16 sps:$4 sm:$0xff]   ;;  %v1360_v55 = vld [vmem:[%s1719_s6 + $0xec] ss:$16 sps:$4 sm:$0xff]  }
  0x4f   : > { %923 = vmatpush1.bf16.msra.mxu0 %v1332_v36  ;;  %1005 = vmatpush1.bf16.msra.mxu1 %v1333_v37  ;;  %v1362_v56 = vld [vmem:[%s1719_s6 + $0xe0] ss:$16 sps:$4 sm:$0xff]   ;;  %v1363_v57 = vld [vmem:[%s1719_s6 + $0xe8] ss:$16 sps:$4 sm:$0xff]   ;;  %v1364_v58 = vld [vmem:[%s1719_s6 + $0x104] ss:$16 sps:$4 sm:$0xff]  }
  0x50   : > { %924 = vmatprep.subr.bf16.mxu0 %v1334_v38  ;;  %1006 = vmatprep.subr.bf16.mxu1 %v1336_v39  ;;  %v1366_v59 = vld [vmem:[%s1719_s6 + $0x10c] ss:$16 sps:$4 sm:$0xff]   ;;  %v1368_v60 = vld [vmem:[%s1719_s6 + $0x100] ss:$16 sps:$4 sm:$0xff]   ;;  %v1369_v61 = vld [vmem:[%s1719_s6 + $0x108] ss:$16 sps:$4 sm:$0xff]  }
  0x51   : > { %v1370_v62 = vld [vmem:[%s1719_s6 + $0x124] ss:$16 sps:$4 sm:$0xff]   ;;  %v1372_v63 = vld [vmem:[%s1719_s6 + $0x12c] ss:$16 sps:$4 sm:$0xff]   ;;  %v1374_v0 = vld [vmem:[%s1719_s6 + $0x120] ss:$16 sps:$4 sm:$0xff]  }
  0x52   : > { %v1375_v1 = vld [vmem:[%s1719_s6 + $0x128] ss:$16 sps:$4 sm:$0xff]   ;;  %v1376_v2 = vld [vmem:[%s1719_s6 + $0x144] ss:$16 sps:$4 sm:$0xff]   ;;  %v1378_v3 = vld [vmem:[%s1719_s6 + $0x14c] ss:$16 sps:$4 sm:$0xff]  }
  0x53   : > { %925 = vmatpush1.bf16.msra.mxu0 %v1338_v40  ;;  %1007 = vmatpush1.bf16.msra.mxu1 %v1339_v41  ;;  %v1380_v4 = vld [vmem:[%s1719_s6 + $0x140] ss:$16 sps:$4 sm:$0xff]   ;;  %v1381_v5 = vld [vmem:[%s1719_s6 + $0x148] ss:$16 sps:$4 sm:$0xff]   ;;  %v1382_v6 = vld [vmem:[%s1719_s6 + $0x164] ss:$16 sps:$4 sm:$0xff]  }
  0x54   : > { %926 = vmatprep.subr.bf16.mxu0 %v1340_v42  ;;  %1008 = vmatprep.subr.bf16.mxu1 %v1342_v43  ;;  %v1384_v7 = vld [vmem:[%s1719_s6 + $0x16c] ss:$16 sps:$4 sm:$0xff]   ;;  %v1386_v8 = vld [vmem:[%s1719_s6 + $0x160] ss:$16 sps:$4 sm:$0xff]   ;;  %v1387_v9 = vld [vmem:[%s1719_s6 + $0x168] ss:$16 sps:$4 sm:$0xff]  }
  0x55   : > { %v1388_v10 = vld [vmem:[%s1719_s6 + $0x184] ss:$16 sps:$4 sm:$0xff]   ;;  %v1390_v11 = vld [vmem:[%s1719_s6 + $0x18c] ss:$16 sps:$4 sm:$0xff]   ;;  %v1392_v12 = vld [vmem:[%s1719_s6 + $0x180] ss:$16 sps:$4 sm:$0xff]  }
  0x56   : > { %v1393_v13 = vld [vmem:[%s1719_s6 + $0x188] ss:$16 sps:$4 sm:$0xff]   ;;  %v1394_v14 = vld [vmem:[%s1719_s6 + $0x1a4] ss:$16 sps:$4 sm:$0xff]   ;;  %v1396_v15 = vld [vmem:[%s1719_s6 + $0x1ac] ss:$16 sps:$4 sm:$0xff]  }
  0x57   : > { %927 = vmatpush1.bf16.msra.mxu0 %v1344_v44  ;;  %1009 = vmatpush1.bf16.msra.mxu1 %v1345_v45  ;;  %v1398_v16 = vld [vmem:[%s1719_s6 + $0x1a0] ss:$16 sps:$4 sm:$0xff]   ;;  %v1399_v17 = vld [vmem:[%s1719_s6 + $0x1a8] ss:$16 sps:$4 sm:$0xff]   ;;  %v1400_v18 = vld [vmem:[%s1719_s6 + $0x1c4] ss:$16 sps:$4 sm:$0xff]  }
  0x58   : > { %928 = vmatprep.subr.bf16.mxu0 %v1346_v46  ;;  %1010 = vmatprep.subr.bf16.mxu1 %v1348_v47  ;;  %v1402_v19 = vld [vmem:[%s1719_s6 + $0x1cc] ss:$16 sps:$4 sm:$0xff]   ;;  %v1404_v20 = vld [vmem:[%s1719_s6 + $0x1c0] ss:$16 sps:$4 sm:$0xff]   ;;  %v1405_v21 = vld [vmem:[%s1719_s6 + $0x1c8] ss:$16 sps:$4 sm:$0xff]  }
  0x59   : > { %v1406_v23 = vld [vmem:[%s1719_s6 + $0x1e4] ss:$16 sps:$4 sm:$0xff]   ;;  %v1408_v25 = vld [vmem:[%s1719_s6 + $0x1ec] ss:$16 sps:$4 sm:$0xff]   ;;  %v1410_v26 = vld [vmem:[%s1719_s6 + $0x1e0] ss:$16 sps:$4 sm:$0xff]  }
  0x5a   : > { %v1411_v27 = vld [vmem:[%s1719_s6 + $0x1e8] ss:$16 sps:$4 sm:$0xff]   ;;  %v1416_v28 = vld [vmem:[%s1719_s6 + $0x204] ss:$16 sps:$4 sm:$0xff]   ;;  %v1419_v29 = vld [vmem:[%s1719_s6 + $0x20c] ss:$16 sps:$4 sm:$0xff]  }
  0x5b   : > { %929 = vmatpush1.bf16.msra.mxu0 %v1350_v48  ;;  %1011 = vmatpush1.bf16.msra.mxu1 %v1351_v49  ;;  %v1414_v31 = vld [vmem:[%s1719_s6 + $0x200] ss:$16 sps:$4 sm:$0xff]   ;;  %v1417_v32 = vld [vmem:[%s1719_s6 + $0x208] ss:$16 sps:$4 sm:$0xff]   ;;  %v1422_v33 = vld [vmem:[%s1719_s6 + $0x224] ss:$16 sps:$4 sm:$0xff]  }
  0x5c   : > { %930 = vmatprep.subr.bf16.mxu0 %v1352_v50  ;;  %1012 = vmatprep.subr.bf16.mxu1 %v1354_v51  ;;  %v1425_v34 = vld [vmem:[%s1719_s6 + $0x22c] ss:$16 sps:$4 sm:$0xff]   ;;  %v1420_v35 = vld [vmem:[%s1719_s6 + $0x220] ss:$16 sps:$4 sm:$0xff]   ;;  %v1423_v22 = vld [vmem:[%s1719_s6 + $0x228] ss:$16 sps:$4 sm:$0xff]  }
  0x5d   : > { %v1428_v36 = vld [vmem:[%s1719_s6 + $0x244] ss:$16 sps:$4 sm:$0xff]   ;;  %v1431_v37 = vld [vmem:[%s1719_s6 + $0x24c] ss:$16 sps:$4 sm:$0xff]   ;;  %v1426_v38 = vld [vmem:[%s1719_s6 + $0x240] ss:$16 sps:$4 sm:$0xff]  }
  0x5e   : > { %v1429_v39 = vld [vmem:[%s1719_s6 + $0x248] ss:$16 sps:$4 sm:$0xff]   ;;  %v1434_v40 = vld [vmem:[%s1719_s6 + $0x264] ss:$16 sps:$4 sm:$0xff]   ;;  %v1437_v41 = vld [vmem:[%s1719_s6 + $0x26c] ss:$16 sps:$4 sm:$0xff]  }
  0x5f   : > { %931 = vmatpush1.bf16.msra.mxu0 %v1356_v52  ;;  %1013 = vmatpush1.bf16.msra.mxu1 %v1357_v53  ;;  %v450_v42 = vld [vmem:[%s1719_s6 + $0x2a0] sm:$0xff]  ;;  %v451_v43 = vld [vmem:[%s1719_s6 + $0x2a8] sm:$0xff]  ;;  %v1474_v44 = vmov 65535   ;;  %s1837_s9 = smov (!%p358_p8, %s1173_s9), 7 }
  0x60   : > { %932 = vmatprep.subr.bf16.mxu0 %v1358_v54  ;;  %1014 = vmatprep.subr.bf16.mxu1 %v1360_v55  ;;  %v1432_v45 = vld [vmem:[%s1719_s6 + $0x260] ss:$16 sps:$4 sm:$0xff]   ;;  %v1435_v46 = vld [vmem:[%s1719_s6 + $0x268] ss:$16 sps:$4 sm:$0xff]   ;;  %v1440_v47 = vld [vmem:[%s1719_s6 + $0x284] ss:$16 sps:$4 sm:$0xff]   ;;  %v1263_v49 = vcombine.high %v450_v42, %v450_v42  ;;  %v1265_v50 = vcombine.high %v451_v43, %v451_v43  ;;  %v1262_v54 = vcombine.low %v450_v42, %v450_v42 }
  0x61   : > { %v1443_v48 = vld [vmem:[%s1719_s6 + $0x28c] ss:$16 sps:$4 sm:$0xff]   ;;  %v1438_v52 = vld [vmem:[%s1719_s6 + $0x280] ss:$16 sps:$4 sm:$0xff]   ;;  %v1441_v53 = vld [vmem:[%s1719_s6 + $0x288] ss:$16 sps:$4 sm:$0xff]   ;;  %v1264_v55 = vcombine.low %v451_v43, %v451_v43 }
  0x62   : > { %s1174_s10 = sshll.u32 %s1837_s9, 2 }
  0x63   : > { %933 = vmatpush1.bf16.msra.mxu0 %v1362_v56  ;;  %1015 = vmatpush1.bf16.msra.mxu1 %v1363_v57  ;;  %s361_s14 = scalar_lea.vmem %s1832_s3, %s1174_s10 }
  0x64   : > { %934 = vmatprep.subr.bf16.mxu0 %v1364_v58  ;;  %1016 = vmatprep.subr.bf16.mxu1 %v1366_v59 }
  0x67   : > { %935 = vmatpush1.bf16.msra.mxu0 %v1368_v60  ;;  %1017 = vmatpush1.bf16.msra.mxu1 %v1369_v61  ;;  %v1448_v60 = vld [vmem:[%s1830_s1 + $0x8] ss:$0 sps:$4 sm:$0xff]  }
  0x68   : > { %936 = vmatprep.subr.bf16.mxu0 %v1370_v62  ;;  %1018 = vmatprep.subr.bf16.mxu1 %v1372_v63 }
  0x6b   : > { %937 = vmatpush1.bf16.msra.mxu0 %v1374_v0  ;;  %1019 = vmatpush1.bf16.msra.mxu1 %v1375_v1 }
  0x6c   : > { %938 = vmatprep.subr.bf16.mxu0 %v1376_v2  ;;  %1020 = vmatprep.subr.bf16.mxu1 %v1378_v3 }
  0x6f   : > { %939 = vmatpush1.bf16.msra.mxu0 %v1380_v4  ;;  %1021 = vmatpush1.bf16.msra.mxu1 %v1381_v5 }
  0x70   : > { %940 = vmatprep.subr.bf16.mxu0 %v1382_v6  ;;  %1022 = vmatprep.subr.bf16.mxu1 %v1384_v7 }
  0x73   : > { %941 = vmatpush1.bf16.msra.mxu0 %v1386_v8  ;;  %1023 = vmatpush1.bf16.msra.mxu1 %v1387_v9 }
  0x74   : > { %942 = vmatprep.subr.bf16.mxu0 %v1388_v10  ;;  %1024 = vmatprep.subr.bf16.mxu1 %v1390_v11 }
  0x77   : > { %943 = vmatpush1.bf16.msra.mxu0 %v1392_v12  ;;  %1025 = vmatpush1.bf16.msra.mxu1 %v1393_v13 }
  0x78   : > { %944 = vmatprep.subr.bf16.mxu0 %v1394_v14  ;;  %1026 = vmatprep.subr.bf16.mxu1 %v1396_v15 }
  0x7b   : > { %945 = vmatpush1.bf16.msra.mxu0 %v1398_v16  ;;  %1027 = vmatpush1.bf16.msra.mxu1 %v1399_v17 }
  0x7c   : > { %946 = vmatprep.subr.bf16.mxu0 %v1400_v18  ;;  %1028 = vmatprep.subr.bf16.mxu1 %v1402_v19 }
  0x7f   : > { %947 = vmatpush1.bf16.msra.mxu0 %v1404_v20  ;;  %1029 = vmatpush1.bf16.msra.mxu1 %v1405_v21 }
  0x80   : > { %948 = vmatprep.subr.bf16.mxu0 %v1406_v23  ;;  %1030 = vmatprep.subr.bf16.mxu1 %v1408_v25 }
  0x83   : > { %949 = vmatpush1.bf16.msra.mxu0 %v1410_v26  ;;  %1031 = vmatpush1.bf16.msra.mxu1 %v1411_v27 }
  0x84   : > { %959 = vmatprep.subr.bf16.mxu0 %v1416_v28  ;;  %1041 = vmatprep.subr.bf16.mxu1 %v1419_v29 }
  0x86   : > { %951 = vmatmul.mubr.bf16.vlgmr.msra.gmra.mrb[0].mxu0 %v1175_v30  ;;  %1033 = vmatmul.mubr.bf16.vlgmr.msra.gmra.mrb[0].mxu1 %v1175_v30 }
  0x87   : > { %960 = vmatpush1.bf16.msra.mxu0 %v1414_v31  ;;  %1042 = vmatpush1.bf16.msra.mxu1 %v1417_v32 }
  0x88   : > { %961 = vmatprep.subr.bf16.mxu0 %v1422_v33  ;;  %1043 = vmatprep.subr.bf16.mxu1 %v1425_v34 }
  0x89   : > { %991 = vmatprep.mubr.bf16.mxu0 %v1473_v24  ;;  %1073 = vmatprep.mubr.bf16.mxu1 %v1473_v24  ;;  %v904_v24 = vsel %vm902_vm0, 4294967295, %v1474_v44 }
  0x8a   : > { %v905_v51 = vsel %vm903_vm1, %v904_v24, 0 }
  0x8b   : > { %962 = vmatpush1.bf16.msra.mxu0 %v1420_v35  ;;  %1044 = vmatpush1.bf16.msra.mxu1 %v1423_v22  ;;  %v910_v56 = vand.u32 %v1263_v49, %v905_v51  ;;  %v916_v57 = vand.u32 %v1265_v50, %v905_v51  ;;  %v907_v58 = vand.u32 %v1262_v54, %v905_v51 }
  0x8c   : > { %963 = vmatprep.subr.bf16.mxu0 %v1428_v36  ;;  %1045 = vmatprep.subr.bf16.mxu1 %v1431_v37  ;;  %v913_v59 = vand.u32 %v1264_v55, %v905_v51 }
  0x8f   : > { %964 = vmatpush1.bf16.msra.mxu0 %v1426_v38  ;;  %1046 = vmatpush1.bf16.msra.mxu1 %v1429_v39 }
  0x90   : > { %965 = vmatprep.subr.bf16.mxu0 %v1434_v40  ;;  %1047 = vmatprep.subr.bf16.mxu1 %v1437_v41 }
  0x93   : > { %966 = vmatpush1.bf16.msra.mxu0 %v1432_v45  ;;  %1048 = vmatpush1.bf16.msra.mxu1 %v1435_v46 }
  0x94   : > { %967 = vmatprep.subr.bf16.mxu0 %v1440_v47  ;;  %1049 = vmatprep.subr.bf16.mxu1 %v1443_v48 }
  0x97   : > { %968 = vmatpush1.bf16.msra.mxu0 %v1438_v52  ;;  %1050 = vmatpush1.bf16.msra.mxu1 %v1441_v53 }
  0x98   : > { %969 = vmatprep.subr.bf16.mxu0 %v910_v56  ;;  %1051 = vmatprep.subr.bf16.mxu1 %v916_v57 }
  0x9b   : > { %970 = vmatpush1.bf16.msra.mxu0 %v907_v58  ;;  %1052 = vmatpush1.bf16.msra.mxu1 %v913_v59 }
  0x9e   : > { %1266 = vmatmul.mubr.msk.bf16.vlgmr.msra.gmra.mrb[0].mxu0 %vm898_vm2, %v1448_v60  ;;  %1267 = vmatmul.mubr.msk.bf16.vlgmr.msra.gmra.mrb[0].mxu1 %vm898_vm2, %v1448_v60 }
  0xc1   : > { %v456_v61 = vpop.permute.xlu0 %455 }
 0x171   : > { %v993_v62 = vpop.f32.mrb[0].mxu0  ;;  %v1075_v63 = vpop.f32.mrb[0].mxu1 }
 0x172   : > { %v1275_v0 = vadd.f32 %v993_v62, %v456_v61  ;;  %v1277_v1 = vadd.f32 %v1075_v63, %v456_v61  ;;  %v995_v2 = vpop.f32.mrb[1].mxu0  ;;  %v1077_v3 = vpop.f32.mrb[1].mxu1 }
 0x173   : > { %v1276_v4 = vadd.f32 %v995_v2, %v456_v61  ;;  %v1278_v5 = vadd.f32 %v1077_v3, %v456_v61  ;;  %v997_v6 = vpop.f32.mrb[2].mxu0  ;;  %v1079_v7 = vpop.f32.mrb[2].mxu1 }
 0x174   : > { %v1082_v8 = vmax.f32 %v1275_v0, 0.0  ;;  %v1084_v9 = vmax.f32 %v1277_v1, 0.0  ;;  %v998_v10 = vpop.f32.mrb[3].mxu0  ;;  %v1080_v11 = vpop.f32.mrb[3].mxu1 }
 0x175   : > { %v1083_v12 = vmax.f32 %v1276_v4, 0.0  ;;  %v1085_v13 = vmax.f32 %v1278_v5, 0.0 }
 0x177   : > { %v1273_v14 = vpack.c.bf16 %v1083_v12, %v1082_v8  ;;  %v1274_v15 = vpack.c.bf16 %v1085_v13, %v1084_v9 }
 0x179   : > { %1102 = vst [vmem:[%s361_s14] sm:$0xff] %v1273_v14  ;;  %1103 = vst [vmem:[%s361_s14 + $0x8] sm:$0xff] %v1274_v15 }
 0x17a PF: > { %p10_p9 = scmp.ge.s32.totalorder %s1512_s16, 4   ;;  %s1833_s12 = smov %s1467_s13 }
 0x17b   : > { %s1834_s13 = smov %s1521_s19  ;;  %s1835_s14 = smov %s1512_s16 }
 0x17c   :  { %12 = sbr.rel (!%p10_p9) target bundleno = 2 (0x2), region = 90 }

// kernel: resnet_forward.12
= control target key start
LH: loop header
LB: loop body
LE: loop exit
PB: predicated region body
PF: predicated region fallthrough
CT: control target
= control target key end

     0   :  { %s213_s0 = inlined_call_operand.vmem [shape: bf16[27,8,128], index: 0, kind: input, shape index: {}]   ;;  %s214_s1 = inlined_call_operand.vmem [shape: bf16[8,128], index: 1, kind: output, shape index: {}]  }
   0x1   :  { %v95_v0 = vld [vmem:[%s213_s0] sm:$0xff]   ;;  %v146_v1 = vld [vmem:[%s213_s0 + $0x8] sm:$0xff]   ;;  %v147_v2 = vld [vmem:[%s213_s0 + $0x10] sm:$0xff]  }
   0x2   :  { %v148_v3 = vld [vmem:[%s213_s0 + $0x18] sm:$0xff]   ;;  %v149_v4 = vld [vmem:[%s213_s0 + $0x20] sm:$0xff]   ;;  %v96_v5 = vunpack.c.l.bf16 %v95_v0  ;;  %v97_v6 = vunpack.c.h.bf16 %v95_v0  ;;  %v100_v7 = vunpack.c.l.bf16 %v146_v1  ;;  %v104_v8 = vunpack.c.l.bf16 %v147_v2  ;;  %v150_v9 = vld [vmem:[%s213_s0 + $0x28] sm:$0xff]  }
   0x3   :  { %v101_v10 = vunpack.c.h.bf16 %v146_v1  ;;  %v105_v11 = vunpack.c.h.bf16 %v147_v2  ;;  %v108_v12 = vunpack.c.l.bf16 %v148_v3  ;;  %v109_v13 = vunpack.c.h.bf16 %v148_v3  ;;  %v151_v14 = vld [vmem:[%s213_s0 + $0x30] sm:$0xff]   ;;  %v152_v15 = vld [vmem:[%s213_s0 + $0x38] sm:$0xff]   ;;  %v153_v20 = vld [vmem:[%s213_s0 + $0x40] sm:$0xff]  }
   0x4   :  { %v112_v16 = vunpack.c.l.bf16 %v149_v4  ;;  %v113_v17 = vunpack.c.h.bf16 %v149_v4  ;;  %v116_v18 = vunpack.c.l.bf16 %v150_v9  ;;  %v117_v19 = vunpack.c.h.bf16 %v150_v9  ;;  %v154_v21 = vld [vmem:[%s213_s0 + $0x48] sm:$0xff]   ;;  %v155_v27 = vld [vmem:[%s213_s0 + $0x50] sm:$0xff]   ;;  %v156_v28 = vld [vmem:[%s213_s0 + $0x58] sm:$0xff]  }
   0x5   :  { %v120_v22 = vunpack.c.l.bf16 %v151_v14  ;;  %v121_v23 = vunpack.c.h.bf16 %v151_v14  ;;  %v124_v24 = vunpack.c.l.bf16 %v152_v15  ;;  %v62_v25 = vmax.f32 %v96_v5, %v104_v8  ;;  %v157_v37 = vld [vmem:[%s213_s0 + $0x60] sm:$0xff]   ;;  %v34_v44 = vld [vmem:[%s213_s0 + $0x68] sm:$0xf] }
   0x6   :  { %v125_v26 = vunpack.c.h.bf16 %v152_v15  ;;  %v63_v29 = vmax.f32 %v97_v6, %v105_v11  ;;  %v64_v30 = vmax.f32 %v100_v7, %v108_v12  ;;  %v65_v31 = vmax.f32 %v101_v10, %v109_v13 }
   0x7   :  { %v128_v32 = vunpack.c.l.bf16 %v153_v20  ;;  %v129_v33 = vunpack.c.h.bf16 %v153_v20  ;;  %v132_v34 = vunpack.c.l.bf16 %v154_v21  ;;  %v66_v35 = vmax.f32 %v62_v25, %v112_v16 }
   0x8   :  { %v133_v36 = vunpack.c.h.bf16 %v154_v21  ;;  %v67_v38 = vmax.f32 %v63_v29, %v113_v17  ;;  %v68_v39 = vmax.f32 %v64_v30, %v116_v18  ;;  %v69_v40 = vmax.f32 %v65_v31, %v117_v19 }
   0x9   :  { %v136_v41 = vunpack.c.l.bf16 %v155_v27  ;;  %v137_v42 = vunpack.c.h.bf16 %v155_v27  ;;  %v140_v43 = vunpack.c.l.bf16 %v156_v28  ;;  %v70_v45 = vmax.f32 %v66_v35, %v120_v22 }
   0xa   :  { %v141_v46 = vunpack.c.h.bf16 %v156_v28  ;;  %v71_v47 = vmax.f32 %v67_v38, %v121_v23  ;;  %v72_v48 = vmax.f32 %v68_v39, %v124_v24  ;;  %v73_v49 = vmax.f32 %v69_v40, %v125_v26 }
   0xb   :  { %v144_v50 = vunpack.c.l.bf16 %v157_v37  ;;  %v145_v51 = vunpack.c.h.bf16 %v157_v37  ;;  %v74_v52 = vmax.f32 %v70_v45, %v128_v32  ;;  %v61_v53 = vunpack.c.l.bf16 %v34_v44 }
   0xc   :  { %v75_v54 = vmax.f32 %v71_v47, %v129_v33  ;;  %v76_v55 = vmax.f32 %v72_v48, %v132_v34  ;;  %v77_v56 = vmax.f32 %v73_v49, %v133_v36 }
   0xd   :  { %v78_v57 = vmax.f32 %v74_v52, %v136_v41 }
   0xe   :  { %v79_v58 = vmax.f32 %v75_v54, %v137_v42  ;;  %v80_v59 = vmax.f32 %v76_v55, %v140_v43  ;;  %v81_v60 = vmax.f32 %v77_v56, %v141_v46 }
   0xf   :  { %v82_v61 = vmax.f32 %v78_v57, %v144_v50 }
  0x10   :  { %v83_v62 = vmax.f32 %v79_v58, %v145_v51  ;;  %v84_v63 = vmax.f32 %v80_v59, %v61_v53 }
  0x12   :  { %v85_v0 = vmax.f32 %v82_v61, %v83_v62  ;;  %v86_v1 = vmax.f32 %v84_v63, %v81_v60 }
  0x14   :  { %v87_v2 = vmax.f32 %v85_v0, %v86_v1 }
  0x16   :  { %v88_v3 = vpack.c.bf16 %v87_v2, %v87_v2 }
  0x18   :  { %89 = vst [vmem:[%s214_s1] sm:$0xf] %v88_v3 }

// kernel: resnet_forward.14
= control target key start
LH: loop header
LB: loop body
LE: loop exit
PB: predicated region body
PF: predicated region fallthrough
CT: control target
= control target key end

     0   :  { %v232_v0 = vmov 0   ;;  %vm139_vm0 = vcmask 719872   ;;  %vm143_vm1 = vcmask 1043456   ;;  %s312_s0 = inlined_call_operand.vmem [shape: bf16[216,128], index: 0, kind: input, shape index: {}]   ;;  %s313_s1 = inlined_call_operand.vmem [shape: bf16[8,216], index: 1, kind: input, shape index: {}]   ;;  %s314_s2 = inlined_call_operand.vmem [shape: f32[8,1], index: 2, kind: input, shape index: {}]   ;;  %s315_s3 = inlined_call_operand.vmem [shape: bf16[8,128], index: 3, kind: input, shape index: {}]   ;;  %s316_s4 = inlined_call_operand.vmem [shape: bf16[8,128], index: 4, kind: output, shape index: {}]  }
   0x1   :  { %147 = vmatprep.subr.bf16.mxu0 %v232_v0  ;;  %v216_v1 = vld [vmem:[%s312_s0] sm:$0xff]   ;;  %215 = vset.pattern.permute.xlu0 %v232_v0  ;;  %v217_v2 = vld [vmem:[%s312_s0 + $0x8] sm:$0xff]   ;;  %v218_v3 = vld [vmem:[%s312_s0 + $0x10] sm:$0xff]  }
   0x2   :  { %148 = vmatpush1.bf16.msra.mxu0 %v216_v1  ;;  %v219_v4 = vld [vmem:[%s312_s0 + $0x18] sm:$0xff]   ;;  %v18_v5 = vld [vmem:[%s313_s1] sm:$0xff]  ;;  %v221_v9 = vld [vmem:[%s312_s0 + $0x28] sm:$0xff]  }
   0x3   :  { %149 = vmatprep.subr.bf16.mxu0 %v232_v0  ;;  %v220_v6 = vld [vmem:[%s312_s0 + $0x20] sm:$0xff]   ;;  %v198_v7 = vcombine.high %v18_v5, %v18_v5  ;;  %v222_v10 = vld [vmem:[%s312_s0 + $0x30] sm:$0xff]   ;;  %v223_v11 = vld [vmem:[%s312_s0 + $0x38] sm:$0xff]   ;;  %v197_v19 = vcombine.low %v18_v5, %v18_v5 }
   0x4   :  { %v46_v8 = vld [vmem:[%s314_s2] sm:$0xff]  ;;  %v225_v13 = vld [vmem:[%s312_s0 + $0x48] sm:$0xff]   ;;  %v226_v14 = vld [vmem:[%s312_s0 + $0x50] sm:$0xff]  }
   0x5   :  { %49 = vperm.xlu0 %215, %v46_v8   ;;  %213 = vmatprep.mubr.msk.bf16.mxu0 %vm139_vm0, %v198_v7  ;;  %v224_v12 = vld [vmem:[%s312_s0 + $0x40] sm:$0xff]   ;;  %v227_v15 = vld [vmem:[%s312_s0 + $0x58] sm:$0xff]   ;;  %v229_v17 = vld [vmem:[%s312_s0 + $0x68] ss:$0 sps:$4 sm:$0xff]  }
   0x6   :  { %150 = vmatpush1.bf16.msra.mxu0 %v217_v2  ;;  %v228_v16 = vld [vmem:[%s312_s0 + $0x60] sm:$0xff]   ;;  %v145_v18 = vsel %vm143_vm1, %v229_v17, 0 }
   0x7   :  { %151 = vmatprep.subr.bf16.mxu0 %v232_v0  ;;  %v187_v20 = vld [vmem:[%s315_s3] sm:$0xf] }
   0x8   :  { %v188_v22 = vunpack.c.l.bf16 %v187_v20 }
   0xa   :  { %152 = vmatpush1.bf16.msra.mxu0 %v218_v3 }
   0xb   :  { %153 = vmatprep.subr.bf16.mxu0 %v232_v0 }
   0xe   :  { %154 = vmatpush1.bf16.msra.mxu0 %v219_v4 }
   0xf   :  { %155 = vmatprep.subr.bf16.mxu0 %v232_v0 }
  0x12   :  { %156 = vmatpush1.bf16.msra.mxu0 %v220_v6 }
  0x13   :  { %157 = vmatprep.subr.bf16.mxu0 %v232_v0 }
  0x16   :  { %158 = vmatpush1.bf16.msra.mxu0 %v221_v9 }
  0x17   :  { %159 = vmatprep.subr.bf16.mxu0 %v232_v0 }
  0x1a   :  { %160 = vmatpush1.bf16.msra.mxu0 %v222_v10 }
  0x1b   :  { %161 = vmatprep.subr.bf16.mxu0 %v232_v0 }
  0x1e   :  { %162 = vmatpush1.bf16.msra.mxu0 %v223_v11 }
  0x1f   :  { %163 = vmatprep.subr.bf16.mxu0 %v232_v0 }
  0x22   :  { %164 = vmatpush1.bf16.msra.mxu0 %v224_v12 }
  0x23   :  { %165 = vmatprep.subr.bf16.mxu0 %v232_v0 }
  0x26   :  { %166 = vmatpush1.bf16.msra.mxu0 %v225_v13 }
  0x27   :  { %167 = vmatprep.subr.bf16.mxu0 %v232_v0 }
  0x2a   :  { %168 = vmatpush1.bf16.msra.mxu0 %v226_v14 }
  0x2b   :  { %169 = vmatprep.subr.bf16.mxu0 %v232_v0 }
  0x2e   :  { %170 = vmatpush1.bf16.msra.mxu0 %v227_v15 }
  0x2f   :  { %171 = vmatprep.subr.bf16.mxu0 %v232_v0 }
  0x32   :  { %172 = vmatpush1.bf16.msra.mxu0 %v228_v16 }
  0x33   :  { %173 = vmatprep.subr.bf16.mxu0 %v232_v0 }
  0x36   :  { %174 = vmatpush1.bf16.msra.mxu0 %v145_v18 }
  0x39   :  { %180 = vmatmul.mubr.bf16.vlgmr.msra.gmra.mrb[0].mxu0 %v197_v19 }
  0x84   :  { %v50_v21 = vpop.permute.xlu0 %49 }
 0x10c   :  { %v181_v23 = vpop.f32.mrb[0].mxu0 }
 0x10d   :  { %v182_v24 = vadd.f32 %v181_v23, %v50_v21  ;;  %v183_v25 = vpop.f32.mrb[1].mxu0 }
 0x10e   :  { %v184_v26 = vpop.f32.mrb[2].mxu0 }
 0x10f   :  { %v189_v27 = vadd.f32 %v188_v22, %v182_v24  ;;  %v185_v28 = vpop.f32.mrb[3].mxu0 }
 0x111   :  { %v190_v29 = vmax.f32 %v189_v27, 0.0 }
 0x113   :  { %v191_v30 = vpack.c.bf16 %v190_v29, %v190_v29 }
 0x115   :  { %192 = vst [vmem:[%s316_s4] sm:$0xf] %v191_v30 }

// kernel: resnet_forward.13
= control target key start
LH: loop header
LB: loop body
LE: loop exit
PB: predicated region body
PF: predicated region fallthrough
CT: control target
= control target key end

     0   :  { %v226_v0 = vmov 0   ;;  %vm136_vm0 = vcmask 719872   ;;  %vm140_vm1 = vcmask 1043456   ;;  %s298_s0 = inlined_call_operand.vmem [shape: bf16[216,128], index: 0, kind: input, shape index: {}]   ;;  %s299_s1 = inlined_call_operand.vmem [shape: bf16[8,216], index: 1, kind: input, shape index: {}]   ;;  %s300_s2 = inlined_call_operand.vmem [shape: f32[8,1], index: 2, kind: input, shape index: {}]   ;;  %s301_s3 = inlined_call_operand.vmem [shape: bf16[8,128], index: 3, kind: output, shape index: {}]  }
   0x1   :  { %144 = vmatprep.subr.bf16.mxu0 %v226_v0  ;;  %v210_v1 = vld [vmem:[%s298_s0] sm:$0xff]   ;;  %209 = vset.pattern.permute.xlu0 %v226_v0  ;;  %v211_v2 = vld [vmem:[%s298_s0 + $0x8] sm:$0xff]   ;;  %v212_v3 = vld [vmem:[%s298_s0 + $0x10] sm:$0xff]  }
   0x2   :  { %145 = vmatpush1.bf16.msra.mxu0 %v210_v1  ;;  %v213_v4 = vld [vmem:[%s298_s0 + $0x18] sm:$0xff]   ;;  %v15_v5 = vld [vmem:[%s299_s1] sm:$0xff]  ;;  %v215_v9 = vld [vmem:[%s298_s0 + $0x28] sm:$0xff]  }
   0x3   :  { %146 = vmatprep.subr.bf16.mxu0 %v226_v0  ;;  %v214_v6 = vld [vmem:[%s298_s0 + $0x20] sm:$0xff]   ;;  %v192_v7 = vcombine.high %v15_v5, %v15_v5  ;;  %v216_v10 = vld [vmem:[%s298_s0 + $0x30] sm:$0xff]   ;;  %v217_v11 = vld [vmem:[%s298_s0 + $0x38] sm:$0xff]   ;;  %v191_v19 = vcombine.low %v15_v5, %v15_v5 }
   0x4   :  { %v43_v8 = vld [vmem:[%s300_s2] sm:$0xff]  ;;  %v219_v13 = vld [vmem:[%s298_s0 + $0x48] sm:$0xff]   ;;  %v220_v14 = vld [vmem:[%s298_s0 + $0x50] sm:$0xff]  }
   0x5   :  { %46 = vperm.xlu0 %209, %v43_v8   ;;  %207 = vmatprep.mubr.msk.bf16.mxu0 %vm136_vm0, %v192_v7  ;;  %v218_v12 = vld [vmem:[%s298_s0 + $0x40] sm:$0xff]   ;;  %v221_v15 = vld [vmem:[%s298_s0 + $0x58] sm:$0xff]   ;;  %v223_v17 = vld [vmem:[%s298_s0 + $0x68] ss:$0 sps:$4 sm:$0xff]  }
   0x6   :  { %147 = vmatpush1.bf16.msra.mxu0 %v211_v2  ;;  %v222_v16 = vld [vmem:[%s298_s0 + $0x60] sm:$0xff]   ;;  %v142_v18 = vsel %vm140_vm1, %v223_v17, 0 }
   0x7   :  { %148 = vmatprep.subr.bf16.mxu0 %v226_v0 }
   0xa   :  { %149 = vmatpush1.bf16.msra.mxu0 %v212_v3 }
   0xb   :  { %150 = vmatprep.subr.bf16.mxu0 %v226_v0 }
   0xe   :  { %151 = vmatpush1.bf16.msra.mxu0 %v213_v4 }
   0xf   :  { %152 = vmatprep.subr.bf16.mxu0 %v226_v0 }
  0x12   :  { %153 = vmatpush1.bf16.msra.mxu0 %v214_v6 }
  0x13   :  { %154 = vmatprep.subr.bf16.mxu0 %v226_v0 }
  0x16   :  { %155 = vmatpush1.bf16.msra.mxu0 %v215_v9 }
  0x17   :  { %156 = vmatprep.subr.bf16.mxu0 %v226_v0 }
  0x1a   :  { %157 = vmatpush1.bf16.msra.mxu0 %v216_v10 }
  0x1b   :  { %158 = vmatprep.subr.bf16.mxu0 %v226_v0 }
  0x1e   :  { %159 = vmatpush1.bf16.msra.mxu0 %v217_v11 }
  0x1f   :  { %160 = vmatprep.subr.bf16.mxu0 %v226_v0 }
  0x22   :  { %161 = vmatpush1.bf16.msra.mxu0 %v218_v12 }
  0x23   :  { %162 = vmatprep.subr.bf16.mxu0 %v226_v0 }
  0x26   :  { %163 = vmatpush1.bf16.msra.mxu0 %v219_v13 }
  0x27   :  { %164 = vmatprep.subr.bf16.mxu0 %v226_v0 }
  0x2a   :  { %165 = vmatpush1.bf16.msra.mxu0 %v220_v14 }
  0x2b   :  { %166 = vmatprep.subr.bf16.mxu0 %v226_v0 }
  0x2e   :  { %167 = vmatpush1.bf16.msra.mxu0 %v221_v15 }
  0x2f   :  { %168 = vmatprep.subr.bf16.mxu0 %v226_v0 }
  0x32   :  { %169 = vmatpush1.bf16.msra.mxu0 %v222_v16 }
  0x33   :  { %170 = vmatprep.subr.bf16.mxu0 %v226_v0 }
  0x36   :  { %171 = vmatpush1.bf16.msra.mxu0 %v142_v18 }
  0x39   :  { %177 = vmatmul.mubr.bf16.vlgmr.msra.gmra.mrb[0].mxu0 %v191_v19 }
  0x84   :  { %v47_v20 = vpop.permute.xlu0 %46 }
 0x10c   :  { %v178_v21 = vpop.f32.mrb[0].mxu0 }
 0x10d   :  { %v179_v22 = vadd.f32 %v178_v21, %v47_v20  ;;  %v180_v23 = vpop.f32.mrb[1].mxu0 }
 0x10e   :  { %v181_v24 = vpop.f32.mrb[2].mxu0 }
 0x10f   :  { %v184_v25 = vmax.f32 %v179_v22, 0.0  ;;  %v182_v26 = vpop.f32.mrb[3].mxu0 }
 0x111   :  { %v185_v27 = vpack.c.bf16 %v184_v25, %v184_v25 }
 0x113   :  { %186 = vst [vmem:[%s301_s3] sm:$0xf] %v185_v27 }

// kernel: resnet_forward.15
= control target key start
LH: loop header
LB: loop body
LE: loop exit
PB: predicated region body
PF: predicated region fallthrough
CT: control target
= control target key end

     0   :  { %v256_v0 = vmov 0   ;;  %vm146_vm0 = vcmask 719872   ;;  %vm150_vm1 = vcmask 1043456   ;;  %s334_s0 = inlined_call_operand.vmem [shape: bf16[216,128], index: 0, kind: input, shape index: {}]   ;;  %s335_s1 = inlined_call_operand.vmem [shape: bf16[16,216], index: 1, kind: input, shape index: {}]   ;;  %s336_s2 = inlined_call_operand.vmem [shape: f32[16,1], index: 2, kind: input, shape index: {}]   ;;  %s337_s3 = inlined_call_operand.vmem [shape: bf16[16,128], index: 3, kind: output, shape index: {}]  }
   0x1   :  { %154 = vmatprep.subr.bf16.mxu0 %v256_v0  ;;  %v239_v1 = vld [vmem:[%s334_s0] sm:$0xff]   ;;  %238 = vset.pattern.permute.xlu0 %v256_v0  ;;  %v240_v2 = vld [vmem:[%s334_s0 + $0x8] sm:$0xff]   ;;  %v241_v3 = vld [vmem:[%s334_s0 + $0x10] sm:$0xff]  }
   0x2   :  { %155 = vmatpush1.bf16.msra.mxu0 %v239_v1  ;;  %v242_v4 = vld [vmem:[%s334_s0 + $0x18] sm:$0xff]   ;;  %v243_v5 = vld [vmem:[%s334_s0 + $0x20] sm:$0xff]   ;;  %v45_v8 = vld [vmem:[%s336_s2 + $0x8] sm:$0xff] }
   0x3   :  { %156 = vmatprep.subr.bf16.mxu0 %v256_v0  ;;  %v255_v6 = vld [vmem:[%s335_s1 + $0x4] ss:$8 sps:$4 sm:$0xff]   ;;  %v245_v10 = vld [vmem:[%s334_s0 + $0x30] sm:$0xff]   ;;  %v246_v11 = vld [vmem:[%s334_s0 + $0x38] sm:$0xff]  }
   0x4   :  { %v44_v7 = vld [vmem:[%s336_s2] sm:$0xff]  ;;  %227 = vmatprep.mubr.msk.bf16.mxu0 %vm146_vm0, %v255_v6  ;;  %v244_v9 = vld [vmem:[%s334_s0 + $0x28] sm:$0xff]   ;;  %v249_v14 = vld [vmem:[%s334_s0 + $0x50] sm:$0xff]  }
   0x5   :  { %48 = vperm.xlu0 %238, %v44_v7   ;;  %v247_v12 = vld [vmem:[%s334_s0 + $0x40] sm:$0xff]   ;;  %v248_v13 = vld [vmem:[%s334_s0 + $0x48] sm:$0xff]   ;;  %v250_v15 = vld [vmem:[%s334_s0 + $0x58] sm:$0xff]  }
   0x6   :  { %157 = vmatpush1.bf16.msra.mxu0 %v240_v2  ;;  %v251_v16 = vld [vmem:[%s334_s0 + $0x60] sm:$0xff]   ;;  %v252_v17 = vld [vmem:[%s334_s0 + $0x68] ss:$0 sps:$4 sm:$0xff]  }
   0x7   :  { %158 = vmatprep.subr.bf16.mxu0 %v256_v0  ;;  %v152_v18 = vsel %vm150_vm1, %v252_v17, 0  ;;  %v253_v19 = vld [vmem:[%s335_s1] ss:$8 sps:$4 sm:$0xff]  }
   0x9   :  { %53 = vperm.xlu0 %238, %v45_v8  }
   0xa   :  { %159 = vmatpush1.bf16.msra.mxu0 %v241_v3 }
   0xb   :  { %160 = vmatprep.subr.bf16.mxu0 %v256_v0 }
   0xe   :  { %161 = vmatpush1.bf16.msra.mxu0 %v242_v4 }
   0xf   :  { %162 = vmatprep.subr.bf16.mxu0 %v256_v0 }
  0x12   :  { %163 = vmatpush1.bf16.msra.mxu0 %v243_v5 }
  0x13   :  { %164 = vmatprep.subr.bf16.mxu0 %v256_v0 }
  0x16   :  { %165 = vmatpush1.bf16.msra.mxu0 %v244_v9 }
  0x17   :  { %166 = vmatprep.subr.bf16.mxu0 %v256_v0 }
  0x1a   :  { %167 = vmatpush1.bf16.msra.mxu0 %v245_v10 }
  0x1b   :  { %168 = vmatprep.subr.bf16.mxu0 %v256_v0 }
  0x1e   :  { %169 = vmatpush1.bf16.msra.mxu0 %v246_v11 }
  0x1f   :  { %170 = vmatprep.subr.bf16.mxu0 %v256_v0 }
  0x22   :  { %171 = vmatpush1.bf16.msra.mxu0 %v247_v12 }
  0x23   :  { %172 = vmatprep.subr.bf16.mxu0 %v256_v0 }
  0x26   :  { %173 = vmatpush1.bf16.msra.mxu0 %v248_v13 }
  0x27   :  { %174 = vmatprep.subr.bf16.mxu0 %v256_v0 }
  0x2a   :  { %175 = vmatpush1.bf16.msra.mxu0 %v249_v14 }
  0x2b   :  { %176 = vmatprep.subr.bf16.mxu0 %v256_v0 }
  0x2e   :  { %177 = vmatpush1.bf16.msra.mxu0 %v250_v15 }
  0x2f   :  { %178 = vmatprep.subr.bf16.mxu0 %v256_v0 }
  0x32   :  { %179 = vmatpush1.bf16.msra.mxu0 %v251_v16 }
  0x33   :  { %180 = vmatprep.subr.bf16.mxu0 %v256_v0 }
  0x36   :  { %181 = vmatpush1.bf16.msra.mxu0 %v152_v18 }
  0x39   :  { %187 = vmatmul.mubr.bf16.vlgmr.msra.gmra.mrb[0].mxu0 %v253_v19 }
  0x84   :  { %v49_v20 = vpop.permute.xlu0 %48 }
  0x88   :  { %v54_v24 = vpop.permute.xlu0 %53 }
 0x10c   :  { %v188_v21 = vpop.f32.mrb[0].mxu0 }
 0x10d   :  { %v189_v22 = vadd.f32 %v188_v21, %v49_v20  ;;  %v190_v23 = vpop.f32.mrb[1].mxu0 }
 0x10e   :  { %v191_v25 = vpop.f32.mrb[2].mxu0 }
 0x10f   :  { %v192_v26 = vadd.f32 %v191_v25, %v54_v24  ;;  %v193_v27 = vpop.f32.mrb[3].mxu0  ;;  %v195_v28 = vmax.f32 %v189_v22, 0.0 }
 0x111   :  { %v196_v29 = vmax.f32 %v192_v26, 0.0 }
 0x113   :  { %v235_v30 = vpack.c.bf16 %v196_v29, %v195_v28 }
 0x115   :  { %236 = vst [vmem:[%s337_s3] sm:$0xff] %v235_v30  }

// kernel: resnet_forward.16
= control target key start
LH: loop header
LB: loop body
LE: loop exit
PB: predicated region body
PF: predicated region fallthrough
CT: control target
= control target key end

     0   :  { %v566_v0 = vmov 0   ;;  %vm275_vm0 = vcmask 392192   ;;  %vm385_vm1 = vcmask 1043456   ;;  %v567_v32 = vmov 0.0   ;;  %s731_s0 = inlined_call_operand.vmem [shape: bf16[432,128], index: 0, kind: input, shape index: {}]   ;;  %s732_s1 = inlined_call_operand.vmem [shape: bf16[16,432], index: 1, kind: input, shape index: {}]   ;;  %s733_s3 = inlined_call_operand.vmem [shape: bf16[8,128], index: 3, kind: input, shape index: {}]   ;;  %s734_s2 = inlined_call_operand.vmem [shape: f32[16,1], index: 2, kind: input, shape index: {}, may-alias: {2,5}]   ;;  %s735_s5 = inlined_call_operand.vmem [shape: f32[16,1], index: 5, kind: input, shape index: {}, may-alias: {2,5}]   ;;  %s736_s4 = inlined_call_operand.vmem [shape: bf16[16,8], index: 4, kind: input, shape index: {}]   ;;  %s737_s6 = inlined_call_operand.vmem [shape: bf16[16,128], index: 6, kind: output, shape index: {}]  }
   0x1   :  { %320 = vmatprep.subr.bf16.mxu1 %v566_v0  ;;  %v532_v1 = vld [vmem:[%s731_s0 + $0x80] sm:$0xff]   ;;  %530 = vset.pattern.permute.xlu0 %v566_v0  ;;  %v535_v4 = vld [vmem:[%s731_s0 + $0x88] sm:$0xff]   ;;  %v538_v7 = vld [vmem:[%s731_s0 + $0x90] sm:$0xff]   ;;  %vm568_vm2 = vmmov 0   ;;  %vm381_vm3 = vcmask 64512  }
   0x2   :  { %v533_v2 = vld [vmem:[%s731_s0 + $0x40] sm:$0xff]   ;;  %531 = vset.pattern.permute.xlu1 %v566_v0  ;;  %321 = vmatpush1.bf16.msra.mxu1 %v532_v1  ;;  %v536_v5 = vld [vmem:[%s731_s0 + $0x48] sm:$0xff]   ;;  %v539_v8 = vld [vmem:[%s731_s0 + $0x50] sm:$0xff]  }
   0x3   :  { %v534_v3 = vld [vmem:[%s731_s0] sm:$0xff]   ;;  %491 = vmatprep.subr.bf16.mxu0 %v533_v2  ;;  %322 = vmatprep.subr.bf16.mxu1 %v566_v0  ;;  %v537_v6 = vld [vmem:[%s731_s0 + $0x8] sm:$0xff]   ;;  %v540_v9 = vld [vmem:[%s731_s0 + $0x10] sm:$0xff]  }
   0x4   :  { %492 = vmatpush3.bf16.msra.mxu0 %v534_v3  ;;  %v541_v10 = vld [vmem:[%s731_s0 + $0x98] sm:$0xff]   ;;  %v545_v13 = vld [vmem:[%s731_s0 + $0x60] sm:$0xff]   ;;  %v548_v16 = vld [vmem:[%s731_s0 + $0x68] sm:$0xff]  }
   0x5   :  { %493 = vmatprep.subr.bf16.mxu0 %v536_v5  ;;  %v542_v11 = vld [vmem:[%s731_s0 + $0x58] sm:$0xff]   ;;  %v544_v14 = vld [vmem:[%s731_s0 + $0xa0] sm:$0xff]   ;;  %v547_v17 = vld [vmem:[%s731_s0 + $0xa8] sm:$0xff]  }
   0x6   :  { %323 = vmatpush1.bf16.msra.mxu1 %v535_v4  ;;  %v543_v12 = vld [vmem:[%s731_s0 + $0x18] sm:$0xff]   ;;  %v546_v15 = vld [vmem:[%s731_s0 + $0x20] sm:$0xff]   ;;  %v549_v18 = vld [vmem:[%s731_s0 + $0x28] sm:$0xff]  }
   0x7   :  { %324 = vmatprep.subr.bf16.mxu1 %v566_v0  ;;  %v551_v19 = vld [vmem:[%s731_s0 + $0x70] sm:$0xff]   ;;  %v553_v22 = vld [vmem:[%s731_s0 + $0xb8] sm:$0xff]   ;;  %v556_v26 = vld [vmem:[%s731_s0 + $0xc0] sm:$0xff]  }
   0x8   :  { %494 = vmatpush3.bf16.msra.mxu0 %v537_v6  ;;  %v550_v20 = vld [vmem:[%s731_s0 + $0xb0] sm:$0xff]   ;;  %v554_v23 = vld [vmem:[%s731_s0 + $0x78] sm:$0xff]   ;;  %v363_v28 = vld [vmem:[%s733_s3] sm:$0xf] }
   0x9   :  { %495 = vmatprep.subr.bf16.mxu0 %v539_v8  ;;  %v552_v21 = vld [vmem:[%s731_s0 + $0x30] sm:$0xff]   ;;  %v555_v25 = vld [vmem:[%s731_s0 + $0x38] sm:$0xff]   ;;  %v82_v30 = vld [vmem:[%s734_s2] sm:$0xff]  ;;  %v387_v33 = vsel %vm385_vm1, %v363_v28, 0 }
   0xa   :  { %325 = vmatpush1.bf16.msra.mxu1 %v538_v7  ;;  %v559_v24 = vld [vmem:[%s732_s1 + $0x4] ss:$16 sps:$4 sm:$0xff]   ;;  %v564_v27 = vld [vmem:[%s732_s1 + $0xc] ss:$16 sps:$4 sm:$0xff]   ;;  %v557_v29 = vld [vmem:[%s732_s1] ss:$16 sps:$4 sm:$0xff]   ;;  %86 = vperm.xlu0 %530, %v82_v30  }
   0xb   :  { %326 = vmatprep.subr.bf16.mxu1 %v566_v0  ;;  %311 = vmatprep.mubr.bf16.mxu0 %v559_v24  ;;  %v364_v31 = vld [vmem:[%s735_s5] sm:$0xff]  ;;  %v560_v34 = vld [vmem:[%s731_s0 + $0xc8] sm:$0xff]   ;;  %v561_v37 = vld [vmem:[%s731_s0 + $0xd0] sm:$0xff]  }
   0xc   :  { %496 = vmatpush3.bf16.msra.mxu0 %v540_v9  ;;  %479 = vmatprep.mubr.msk.bf16.mxu1 %vm275_vm0, %v564_v27  ;;  %v83_v35 = vld [vmem:[%s734_s2 + $0x8] sm:$0xff]  ;;  %v565_v38 = vld [vmem:[%s736_s4] sm:$0xff]  }
   0xd   :  { %497 = vmatprep.subr.bf16.mxu0 %v542_v11  ;;  %368 = vperm.xlu1 %531, %v364_v31   ;;  %v365_v36 = vld [vmem:[%s735_s5 + $0x8] sm:$0xff] }
   0xe   :  { %327 = vmatpush1.bf16.msra.mxu1 %v541_v10  ;;  %91 = vperm.xlu0 %530, %v83_v35   ;;  %v562_v39 = vld [vmem:[%s732_s1 + $0x8] ss:$16 sps:$4 sm:$0xff]  }
   0xf   :  { %328 = vmatprep.subr.bf16.mxu1 %v566_v0 }
  0x10   :  { %498 = vmatpush3.bf16.msra.mxu0 %v543_v12 }
  0x11   :  { %499 = vmatprep.subr.bf16.mxu0 %v545_v13  ;;  %373 = vperm.xlu1 %531, %v365_v36  }
  0x12   :  { %329 = vmatpush1.bf16.msra.mxu1 %v544_v14 }
  0x13   :  { %330 = vmatprep.subr.bf16.mxu1 %v566_v0 }
  0x14   :  { %500 = vmatpush3.bf16.msra.mxu0 %v546_v15 }
  0x15   :  { %501 = vmatprep.subr.bf16.mxu0 %v548_v16 }
  0x16   :  { %331 = vmatpush1.bf16.msra.mxu1 %v547_v17 }
  0x17   :  { %332 = vmatprep.subr.bf16.mxu1 %v566_v0 }
  0x18   :  { %502 = vmatpush3.bf16.msra.mxu0 %v549_v18 }
  0x19   :  { %503 = vmatprep.subr.bf16.mxu0 %v551_v19 }
  0x1a   :  { %333 = vmatpush1.bf16.msra.mxu1 %v550_v20 }
  0x1b   :  { %334 = vmatprep.subr.bf16.mxu1 %v566_v0 }
  0x1c   :  { %504 = vmatpush3.bf16.msra.mxu0 %v552_v21 }
  0x1d   :  { %505 = vmatprep.subr.bf16.mxu0 %v554_v23 }
  0x1e   :  { %335 = vmatpush1.bf16.msra.mxu1 %v553_v22 }
  0x1f   :  { %336 = vmatprep.subr.bf16.mxu1 %v566_v0 }
  0x20   :  { %506 = vmatpush3.bf16.msra.mxu0 %v555_v25 }
  0x21   :  { %515 = vmatprep.subr.bf16.mxu0 %v567_v32 }
  0x22   :  { %337 = vmatpush1.bf16.msra.mxu1 %v556_v26 }
  0x23   :  { %312 = vmatmul.mubr.bf16.vlgmr.msra.gmra.mrb[0].mxu0 %v557_v29  ;;  %338 = vmatprep.subr.bf16.mxu1 %v566_v0 }
  0x24   :  { %516 = vmatpush3.bf16.msra.mxu0 %v387_v33  ;;  %517 = vmatprep.mubr.msk.bf16.mxu0 %vm568_vm2, %v567_v32 }
  0x26   :  { %339 = vmatpush1.bf16.msra.mxu1 %v560_v34 }
  0x27   :  { %340 = vmatprep.subr.bf16.mxu1 %v566_v0 }
  0x2a   :  { %341 = vmatpush1.bf16.msra.mxu1 %v561_v37 }
  0x2b   :  { %518 = vmatmul.mubr.msk.bf16.vlgmr.msra.gmra.mrb[4].mxu0 %vm381_vm3, %v565_v38 }
  0x2d   :  { %353 = vmatmul.mubr.bf16.vlgmr.msra.gmra.mrb[0].mxu1 %v562_v39 }
  0x89   :  { %v87_v42 = vpop.permute.xlu0 %86 }
  0x8c   :  { %v369_v47 = vpop.permute.xlu1 %368 }
  0x8d   :  { %v92_v48 = vpop.permute.xlu0 %91 }
  0x90   :  { %v374_v62 = vpop.permute.xlu1 %373 }
  0xf6   :  { %v507_v40 = vpop.f32.mrb[0].mxu0 }
  0xf7   :  { %v508_v41 = vpop.f32.mrb[1].mxu0 }
  0xf8   :  { %v509_v43 = vadd.f32 %v508_v41, %v507_v40  ;;  %v510_v44 = vpop.f32.mrb[2].mxu0 }
  0xf9   :  { %v511_v45 = vpop.f32.mrb[3].mxu0 }
  0xfa   :  { %v512_v46 = vadd.f32 %v511_v45, %v510_v44  ;;  %v314_v50 = vadd.f32 %v509_v43, %v87_v42 }
  0xfc   :  { %v317_v54 = vadd.f32 %v512_v46, %v92_v48 }
  0xfe   :  { %v423_v49 = vpop.f32.mrb[4].mxu0 }
  0xff   :  { %v519_v51 = vpop.f32.mrb[5].mxu0 }
 0x100   :  { %v354_v52 = vpop.f32.mrb[0].mxu1  ;;  %v426_v53 = vpop.f32.mrb[6].mxu0 }
 0x101   :  { %v355_v55 = vadd.f32 %v354_v52, %v314_v50  ;;  %v356_v56 = vpop.f32.mrb[1].mxu1  ;;  %v520_v57 = vpop.f32.mrb[7].mxu0 }
 0x102   :  { %v357_v58 = vpop.f32.mrb[2].mxu1 }
 0x103   :  { %v522_v59 = vadd.f32 %v369_v47, %v355_v55  ;;  %v358_v60 = vadd.f32 %v357_v58, %v317_v54  ;;  %v359_v61 = vpop.f32.mrb[3].mxu1 }
 0x105   :  { %v523_v63 = vadd.f32 %v522_v59, %v423_v49  ;;  %v525_v0 = vadd.f32 %v374_v62, %v358_v60 }
 0x107   :  { %v526_v1 = vadd.f32 %v525_v0, %v426_v53  ;;  %v432_v2 = vmax.f32 %v523_v63, 0.0 }
 0x109   :  { %v433_v3 = vmax.f32 %v526_v1, 0.0 }
 0x10b   :  { %v489_v4 = vpack.c.bf16 %v433_v3, %v432_v2 }
 0x10d   :  { %490 = vst [vmem:[%s737_s6] sm:$0xff] %v489_v4  }

// kernel: resnet_forward.17
= control target key start
LH: loop header
LB: loop body
LE: loop exit
PB: predicated region body
PF: predicated region fallthrough
CT: control target
= control target key end

     0   :  { %v560_v0 = vmov 0   ;;  %vm301_vm0 = vcmask 392192   ;;  %s719_s0 = inlined_call_operand.vmem [shape: bf16[432,128], index: 0, kind: input, shape index: {}]   ;;  %s720_s1 = inlined_call_operand.vmem [shape: bf16[32,432], index: 1, kind: input, shape index: {}]   ;;  %s721_s2 = inlined_call_operand.vmem [shape: f32[32,1], index: 2, kind: input, shape index: {}]   ;;  %s722_s3 = inlined_call_operand.vmem [shape: bf16[32,128], index: 3, kind: output, shape index: {}]  }
   0x1   :  { %357 = vmatprep.subr.bf16.mxu1 %v560_v0  ;;  %v521_v1 = vld [vmem:[%s719_s0 + $0x80] sm:$0xff]   ;;  %519 = vset.pattern.permute.xlu0 %v560_v0  ;;  %v524_v4 = vld [vmem:[%s719_s0 + $0x88] sm:$0xff]   ;;  %v527_v7 = vld [vmem:[%s719_s0 + $0x90] sm:$0xff]  }
   0x2   :  { %v522_v2 = vld [vmem:[%s719_s0 + $0x40] sm:$0xff]   ;;  %520 = vset.pattern.permute.xlu1 %v560_v0  ;;  %358 = vmatpush1.bf16.msra.mxu1 %v521_v1  ;;  %v525_v5 = vld [vmem:[%s719_s0 + $0x48] sm:$0xff]   ;;  %v528_v8 = vld [vmem:[%s719_s0 + $0x50] sm:$0xff]  }
   0x3   :  { %v523_v3 = vld [vmem:[%s719_s0] sm:$0xff]   ;;  %490 = vmatprep.subr.bf16.mxu0 %v522_v2  ;;  %359 = vmatprep.subr.bf16.mxu1 %v560_v0  ;;  %v526_v6 = vld [vmem:[%s719_s0 + $0x8] sm:$0xff]   ;;  %v529_v9 = vld [vmem:[%s719_s0 + $0x10] sm:$0xff]  }
   0x4   :  { %491 = vmatpush3.bf16.msra.mxu0 %v523_v3  ;;  %v530_v10 = vld [vmem:[%s719_s0 + $0x98] sm:$0xff]   ;;  %v534_v13 = vld [vmem:[%s719_s0 + $0x60] sm:$0xff]   ;;  %v537_v16 = vld [vmem:[%s719_s0 + $0x68] sm:$0xff]  }
   0x5   :  { %492 = vmatprep.subr.bf16.mxu0 %v525_v5  ;;  %v531_v11 = vld [vmem:[%s719_s0 + $0x58] sm:$0xff]   ;;  %v533_v14 = vld [vmem:[%s719_s0 + $0xa0] sm:$0xff]   ;;  %v536_v17 = vld [vmem:[%s719_s0 + $0xa8] sm:$0xff]  }
   0x6   :  { %360 = vmatpush1.bf16.msra.mxu1 %v524_v4  ;;  %v532_v12 = vld [vmem:[%s719_s0 + $0x18] sm:$0xff]   ;;  %v535_v15 = vld [vmem:[%s719_s0 + $0x20] sm:$0xff]   ;;  %v538_v18 = vld [vmem:[%s719_s0 + $0x28] sm:$0xff]  }
   0x7   :  { %361 = vmatprep.subr.bf16.mxu1 %v560_v0  ;;  %v540_v19 = vld [vmem:[%s719_s0 + $0x70] sm:$0xff]   ;;  %v542_v22 = vld [vmem:[%s719_s0 + $0xb8] sm:$0xff]   ;;  %v545_v26 = vld [vmem:[%s719_s0 + $0xc0] sm:$0xff]  }
   0x8   :  { %493 = vmatpush3.bf16.msra.mxu0 %v526_v6  ;;  %v539_v20 = vld [vmem:[%s719_s0 + $0xb0] sm:$0xff]   ;;  %v543_v23 = vld [vmem:[%s719_s0 + $0x78] sm:$0xff]   ;;  %v77_v30 = vld [vmem:[%s721_s2] sm:$0xff] }
   0x9   :  { %494 = vmatprep.subr.bf16.mxu0 %v528_v8  ;;  %v541_v21 = vld [vmem:[%s719_s0 + $0x30] sm:$0xff]   ;;  %v544_v25 = vld [vmem:[%s719_s0 + $0x38] sm:$0xff]   ;;  %83 = vperm.xlu0 %519, %v77_v30   ;;  %v549_v32 = vld [vmem:[%s719_s0 + $0xc8] sm:$0xff]  }
   0xa   :  { %362 = vmatpush1.bf16.msra.mxu1 %v527_v7  ;;  %v548_v24 = vld [vmem:[%s720_s1 + $0x4] ss:$16 sps:$4 sm:$0xff]   ;;  %v556_v27 = vld [vmem:[%s720_s1 + $0xc] ss:$16 sps:$4 sm:$0xff]   ;;  %v546_v28 = vld [vmem:[%s720_s1] ss:$16 sps:$4 sm:$0xff]  }
   0xb   :  { %363 = vmatprep.subr.bf16.mxu1 %v560_v0  ;;  %340 = vmatprep.mubr.bf16.mxu0 %v548_v24  ;;  %v551_v29 = vld [vmem:[%s720_s1 + $0x24] ss:$16 sps:$4 sm:$0xff]   ;;  %v78_v33 = vld [vmem:[%s721_s2 + $0x8] sm:$0xff]  ;;  %v80_v34 = vld [vmem:[%s721_s2 + $0x18] sm:$0xff] }
   0xc   :  { %495 = vmatpush3.bf16.msra.mxu0 %v529_v9  ;;  %469 = vmatprep.mubr.msk.bf16.mxu1 %vm301_vm0, %v556_v27  ;;  %v79_v31 = vld [vmem:[%s721_s2 + $0x10] sm:$0xff]  ;;  %v554_v37 = vld [vmem:[%s720_s1 + $0x8] ss:$16 sps:$4 sm:$0xff]   ;;  %v557_v38 = vld [vmem:[%s720_s1 + $0x2c] ss:$16 sps:$4 sm:$0xff]  }
   0xd   :  { %496 = vmatprep.subr.bf16.mxu0 %v531_v11  ;;  %93 = vperm.xlu1 %520, %v79_v31   ;;  %v550_v35 = vld [vmem:[%s719_s0 + $0xd0] sm:$0xff]   ;;  %v559_v39 = vld [vmem:[%s720_s1 + $0x28] ss:$16 sps:$4 sm:$0xff]  }
   0xe   :  { %364 = vmatpush1.bf16.msra.mxu1 %v530_v10  ;;  %88 = vperm.xlu0 %519, %v78_v33   ;;  %v553_v36 = vld [vmem:[%s720_s1 + $0x20] ss:$16 sps:$4 sm:$0xff]  }
   0xf   :  { %365 = vmatprep.subr.bf16.mxu1 %v560_v0 }
  0x10   :  { %497 = vmatpush3.bf16.msra.mxu0 %v532_v12 }
  0x11   :  { %498 = vmatprep.subr.bf16.mxu0 %v534_v13  ;;  %98 = vperm.xlu1 %520, %v80_v34  }
  0x12   :  { %366 = vmatpush1.bf16.msra.mxu1 %v533_v14 }
  0x13   :  { %367 = vmatprep.subr.bf16.mxu1 %v560_v0 }
  0x14   :  { %499 = vmatpush3.bf16.msra.mxu0 %v535_v15 }
  0x15   :  { %500 = vmatprep.subr.bf16.mxu0 %v537_v16 }
  0x16   :  { %368 = vmatpush1.bf16.msra.mxu1 %v536_v17 }
  0x17   :  { %369 = vmatprep.subr.bf16.mxu1 %v560_v0 }
  0x18   :  { %501 = vmatpush3.bf16.msra.mxu0 %v538_v18 }
  0x19   :  { %502 = vmatprep.subr.bf16.mxu0 %v540_v19 }
  0x1a   :  { %370 = vmatpush1.bf16.msra.mxu1 %v539_v20 }
  0x1b   :  { %371 = vmatprep.subr.bf16.mxu1 %v560_v0 }
  0x1c   :  { %503 = vmatpush3.bf16.msra.mxu0 %v541_v21 }
  0x1d   :  { %504 = vmatprep.subr.bf16.mxu0 %v543_v23 }
  0x1e   :  { %372 = vmatpush1.bf16.msra.mxu1 %v542_v22 }
  0x1f   :  { %373 = vmatprep.subr.bf16.mxu1 %v560_v0 }
  0x20   :  { %505 = vmatpush3.bf16.msra.mxu0 %v544_v25 }
  0x22   :  { %374 = vmatpush1.bf16.msra.mxu1 %v545_v26 }
  0x23   :  { %341 = vmatmul.mubr.bf16.vlgmr.msra.gmra.mrb[0].mxu0 %v546_v28  ;;  %375 = vmatprep.subr.bf16.mxu1 %v560_v0 }
  0x24   :  { %348 = vmatprep.mubr.bf16.mxu0 %v551_v29 }
  0x26   :  { %376 = vmatpush1.bf16.msra.mxu1 %v549_v32 }
  0x27   :  { %377 = vmatprep.subr.bf16.mxu1 %v560_v0 }
  0x2a   :  { %378 = vmatpush1.bf16.msra.mxu1 %v550_v35 }
  0x2b   :  { %349 = vmatmul.mubr.bf16.gmra.mrb[4].mxu0 %v553_v36 }
  0x2d   :  { %390 = vmatmul.mubr.bf16.vlgmr.msra.gmra.mrb[0].mxu1 %v554_v37 }
  0x2e   :  { %470 = vmatprep.mubr.msk.bf16.mxu1 %vm301_vm0, %v557_v38 }
  0x35   :  { %398 = vmatmul.mubr.bf16.gmra.mrb[4].mxu1 %v559_v39 }
  0x88   :  { %v84_v42 = vpop.permute.xlu0 %83 }
  0x8c   :  { %v94_v50 = vpop.permute.xlu1 %93 }
  0x8d   :  { %v89_v48 = vpop.permute.xlu0 %88 }
  0x90   :  { %v99_v1 = vpop.permute.xlu1 %98 }
  0xf6   :  { %v506_v40 = vpop.f32.mrb[0].mxu0 }
  0xf7   :  { %v507_v41 = vpop.f32.mrb[1].mxu0 }
  0xf8   :  { %v508_v43 = vadd.f32 %v507_v41, %v506_v40  ;;  %v509_v44 = vpop.f32.mrb[2].mxu0 }
  0xf9   :  { %v510_v45 = vpop.f32.mrb[3].mxu0 }
  0xfa   :  { %v511_v46 = vadd.f32 %v510_v45, %v509_v44  ;;  %v343_v47 = vadd.f32 %v508_v43, %v84_v42 }
  0xfc   :  { %v346_v55 = vadd.f32 %v511_v46, %v89_v48 }
  0xfe   :  { %v512_v49 = vpop.f32.mrb[4].mxu0 }
  0xff   :  { %v513_v51 = vpop.f32.mrb[5].mxu0 }
 0x100   :  { %v514_v52 = vadd.f32 %v513_v51, %v512_v49  ;;  %v391_v53 = vpop.f32.mrb[0].mxu1  ;;  %v515_v54 = vpop.f32.mrb[6].mxu0 }
 0x101   :  { %v392_v56 = vadd.f32 %v391_v53, %v343_v47  ;;  %v393_v57 = vpop.f32.mrb[1].mxu1  ;;  %v516_v58 = vpop.f32.mrb[7].mxu0 }
 0x102   :  { %v517_v59 = vadd.f32 %v516_v58, %v515_v54  ;;  %v394_v60 = vpop.f32.mrb[2].mxu1  ;;  %v351_v3 = vadd.f32 %v514_v52, %v94_v50 }
 0x103   :  { %v395_v61 = vadd.f32 %v394_v60, %v346_v55  ;;  %v396_v62 = vpop.f32.mrb[3].mxu1  ;;  %v406_v63 = vmax.f32 %v392_v56, 0.0 }
 0x104   :  { %v354_v5 = vadd.f32 %v517_v59, %v99_v1 }
 0x105   :  { %v407_v0 = vmax.f32 %v395_v61, 0.0 }
 0x107   :  { %v482_v2 = vpack.c.bf16 %v407_v0, %v406_v63 }
 0x108   :  { %v399_v4 = vpop.f32.mrb[4].mxu1 }
 0x109   :  { %483 = vst [vmem:[%s722_s3] sm:$0xff] %v482_v2   ;;  %v400_v6 = vadd.f32 %v399_v4, %v351_v3  ;;  %v401_v7 = vpop.f32.mrb[5].mxu1 }
 0x10a   :  { %v402_v8 = vpop.f32.mrb[6].mxu1 }
 0x10b   :  { %v403_v9 = vadd.f32 %v402_v8, %v354_v5  ;;  %v404_v10 = vpop.f32.mrb[7].mxu1  ;;  %v408_v11 = vmax.f32 %v400_v6, 0.0 }
 0x10d   :  { %v409_v12 = vmax.f32 %v403_v9, 0.0 }
 0x10f   :  { %v487_v13 = vpack.c.bf16 %v409_v12, %v408_v11 }
 0x111   :  { %489 = vst [vmem:[%s722_s3 + $0x8] sm:$0xff] %v487_v13  }

// kernel: resnet_forward.18
= control target key start
LH: loop header
LB: loop body
LE: loop exit
PB: predicated region body
PF: predicated region fallthrough
CT: control target
= control target key end

     0   :  { %v1206_v1 = vmov 0   ;;  %vm566_vm0 = vcmask 785408   ;;  %vm815_vm1 = vcmask 130048   ;;  %s1487_s0 = inlined_call_operand.vmem [shape: bf16[864,128], index: 0, kind: input, shape index: {}]   ;;  %s1488_s1 = inlined_call_operand.vmem [shape: bf16[32,864], index: 1, kind: input, shape index: {}]   ;;  %s1489_s3 = inlined_call_operand.vmem [shape: bf16[16,128], index: 3, kind: input, shape index: {}]   ;;  %s1490_s4 = inlined_call_operand.vmem [shape: bf16[32,16], index: 4, kind: input, shape index: {}]   ;;  %s1491_s2 = inlined_call_operand.vmem [shape: f32[32,1], index: 2, kind: input, shape index: {}, may-alias: {2,5}]   ;;  %s1492_s5 = inlined_call_operand.vmem [shape: f32[32,1], index: 5, kind: input, shape index: {}, may-alias: {2,5}]   ;;  %s1493_s6 = inlined_call_operand.vmem [shape: bf16[32,128], index: 6, kind: output, shape index: {}]  }
   0x1   :  { %v1129_v0 = vld [vmem:[%s1487_s0 + $0x40] sm:$0xff]   ;;  %1127 = vset.pattern.permute.xlu0 %v1206_v1  ;;  %1128 = vset.pattern.permute.xlu1 %v1206_v1  ;;  %v1133_v5 = vld [vmem:[%s1487_s0 + $0x48] sm:$0xff]   ;;  %v1137_v9 = vld [vmem:[%s1487_s0 + $0x50] sm:$0xff]  }
   0x2   :  { %v1130_v2 = vld [vmem:[%s1487_s0 + $0xc0] sm:$0xff]   ;;  %997 = vmatprep.subr.bf16.mxu0 %v1129_v0  ;;  %v1134_v6 = vld [vmem:[%s1487_s0 + $0xc8] sm:$0xff]   ;;  %v1138_v10 = vld [vmem:[%s1487_s0 + $0xd0] sm:$0xff]  }
   0x3   :  { %v1131_v3 = vld [vmem:[%s1487_s0] sm:$0xff]   ;;  %1025 = vmatprep.subr.bf16.mxu1 %v1130_v2  ;;  %v1135_v7 = vld [vmem:[%s1487_s0 + $0x8] sm:$0xff]   ;;  %v1139_v11 = vld [vmem:[%s1487_s0 + $0x10] sm:$0xff]  }
   0x4   :  { %v1132_v4 = vld [vmem:[%s1487_s0 + $0x80] sm:$0xff]   ;;  %998 = vmatpush3.bf16.msra.mxu0 %v1131_v3  ;;  %v1136_v8 = vld [vmem:[%s1487_s0 + $0x88] sm:$0xff]   ;;  %v1140_v12 = vld [vmem:[%s1487_s0 + $0x90] sm:$0xff]  }
   0x5   :  { %1026 = vmatpush3.bf16.msra.mxu1 %v1132_v4  ;;  %999 = vmatprep.subr.bf16.mxu0 %v1133_v5  ;;  %v1141_v13 = vld [vmem:[%s1487_s0 + $0x58] sm:$0xff]   ;;  %v1145_v17 = vld [vmem:[%s1487_s0 + $0x60] sm:$0xff]   ;;  %v1149_v21 = vld [vmem:[%s1487_s0 + $0x68] sm:$0xff]  }
   0x6   :  { %1027 = vmatprep.subr.bf16.mxu1 %v1134_v6  ;;  %v1142_v14 = vld [vmem:[%s1487_s0 + $0xd8] sm:$0xff]   ;;  %v1146_v18 = vld [vmem:[%s1487_s0 + $0xe0] sm:$0xff]   ;;  %v1150_v22 = vld [vmem:[%s1487_s0 + $0xe8] sm:$0xff]  }
   0x7   :  { %v1143_v15 = vld [vmem:[%s1487_s0 + $0x18] sm:$0xff]   ;;  %v1147_v19 = vld [vmem:[%s1487_s0 + $0x20] sm:$0xff]   ;;  %v1151_v23 = vld [vmem:[%s1487_s0 + $0x28] sm:$0xff]  }
   0x8   :  { %1000 = vmatpush3.bf16.msra.mxu0 %v1135_v7  ;;  %v1144_v16 = vld [vmem:[%s1487_s0 + $0x98] sm:$0xff]   ;;  %v1148_v20 = vld [vmem:[%s1487_s0 + $0xa0] sm:$0xff]   ;;  %v1152_v24 = vld [vmem:[%s1487_s0 + $0xa8] sm:$0xff]  }
   0x9   :  { %1028 = vmatpush3.bf16.msra.mxu1 %v1136_v8  ;;  %1001 = vmatprep.subr.bf16.mxu0 %v1137_v9  ;;  %v1153_v25 = vld [vmem:[%s1487_s0 + $0x70] sm:$0xff]   ;;  %v1157_v29 = vld [vmem:[%s1487_s0 + $0x78] sm:$0xff]   ;;  %v1163_v34 = vld [vmem:[%s1488_s1 + $0x4] ss:$28 sps:$4 sm:$0xff]  }
   0xa   :  { %1029 = vmatprep.subr.bf16.mxu1 %v1138_v10  ;;  %v1154_v26 = vld [vmem:[%s1487_s0 + $0xf0] sm:$0xff]   ;;  %v1158_v30 = vld [vmem:[%s1487_s0 + $0xf8] sm:$0xff]   ;;  %v1164_v35 = vld [vmem:[%s1488_s1 + $0x8] ss:$28 sps:$4 sm:$0xff]   ;;  %605 = vmatprep.mubr.bf16.mxu0 %v1163_v34 }
   0xb   :  { %v1155_v27 = vld [vmem:[%s1487_s0 + $0x30] sm:$0xff]   ;;  %v1159_v31 = vld [vmem:[%s1487_s0 + $0x38] sm:$0xff]   ;;  %v1166_v36 = vld [vmem:[%s1488_s1 + $0xc] ss:$28 sps:$4 sm:$0xff]  }
   0xc   :  { %1002 = vmatpush3.bf16.msra.mxu0 %v1139_v11  ;;  %v1156_v28 = vld [vmem:[%s1487_s0 + $0xb0] sm:$0xff]   ;;  %v1160_v32 = vld [vmem:[%s1487_s0 + $0xb8] sm:$0xff]   ;;  %v1167_v37 = vld [vmem:[%s1487_s0 + $0x140] sm:$0xff]   ;;  %654 = vmatprep.mubr.bf16.mxu1 %v1166_v36 }
   0xd   :  { %1030 = vmatpush3.bf16.msra.mxu1 %v1140_v12  ;;  %1003 = vmatprep.subr.bf16.mxu0 %v1141_v13  ;;  %v1161_v33 = vld [vmem:[%s1488_s1] ss:$28 sps:$4 sm:$0xff]   ;;  %v1170_v40 = vld [vmem:[%s1487_s0 + $0x148] sm:$0xff]   ;;  %v1173_v43 = vld [vmem:[%s1487_s0 + $0x150] sm:$0xff]  }
   0xe   :  { %1031 = vmatprep.subr.bf16.mxu1 %v1142_v14  ;;  %v1168_v38 = vld [vmem:[%s1487_s0 + $0x180] sm:$0xff]   ;;  %v1171_v41 = vld [vmem:[%s1487_s0 + $0x188] sm:$0xff]   ;;  %v1174_v44 = vld [vmem:[%s1487_s0 + $0x190] sm:$0xff]  }
   0xf   :  { %v1169_v39 = vld [vmem:[%s1487_s0 + $0x100] sm:$0xff]   ;;  %v1172_v42 = vld [vmem:[%s1487_s0 + $0x108] sm:$0xff]   ;;  %v1175_v45 = vld [vmem:[%s1487_s0 + $0x110] sm:$0xff]  }
  0x10   :  { %1004 = vmatpush3.bf16.msra.mxu0 %v1143_v15  ;;  %v1176_v46 = vld [vmem:[%s1487_s0 + $0x158] sm:$0xff]   ;;  %v1179_v49 = vld [vmem:[%s1488_s1 + $0x44] ss:$28 sps:$4 sm:$0xff]   ;;  %v1187_v55 = vld [vmem:[%s1487_s0 + $0x168] sm:$0xff]  }
  0x11   :  { %1032 = vmatpush3.bf16.msra.mxu1 %v1144_v16  ;;  %1005 = vmatprep.subr.bf16.mxu0 %v1145_v17  ;;  %v1177_v47 = vld [vmem:[%s1487_s0 + $0x198] sm:$0xff]   ;;  %v1182_v51 = vld [vmem:[%s1487_s0 + $0x160] sm:$0xff]   ;;  %v1188_v56 = vld [vmem:[%s1487_s0 + $0x1a8] sm:$0xff]  }
  0x12   :  { %1033 = vmatprep.subr.bf16.mxu1 %v1146_v18  ;;  %v1178_v48 = vld [vmem:[%s1487_s0 + $0x118] sm:$0xff]   ;;  %v1183_v52 = vld [vmem:[%s1487_s0 + $0x1a0] sm:$0xff]   ;;  %v1190_v58 = vld [vmem:[%s1487_s0 + $0x128] sm:$0xff]  }
  0x13   :  { %v1181_v50 = vld [vmem:[%s1488_s1 + $0x40] ss:$28 sps:$4 sm:$0xff]   ;;  %v1189_v57 = vld [vmem:[%s1488_s1 + $0x38] ss:$28 sps:$4 sm:$0xff]   ;;  %v1193_v61 = vld [vmem:[%s1488_s1 + $0x50] ss:$28 sps:$4 sm:$0xff]  }
  0x14   :  { %1006 = vmatpush3.bf16.msra.mxu0 %v1147_v19  ;;  %v1184_v53 = vld [vmem:[%s1487_s0 + $0x120] sm:$0xff]   ;;  %v1185_v54 = vld [vmem:[%s1488_s1 + $0x3c] ss:$28 sps:$4 sm:$0xff]   ;;  %v1192_v60 = vld [vmem:[%s1487_s0 + $0x170] sm:$0xff]  }
  0x15   :  { %1034 = vmatpush3.bf16.msra.mxu1 %v1148_v20  ;;  %1007 = vmatprep.subr.bf16.mxu0 %v1149_v21  ;;  %v1191_v59 = vld [vmem:[%s1488_s1 + $0x18] ss:$28 sps:$4 sm:$0xff]   ;;  %v1200_v2 = vld [vmem:[%s1489_s3] sm:$0xff]   ;;  %v1197_v4 = vld [vmem:[%s1488_s1 + $0x10] ss:$28 sps:$4 sm:$0xff]  }
  0x16   :  { %1035 = vmatprep.subr.bf16.mxu1 %v1150_v22  ;;  %v1194_v62 = vld [vmem:[%s1487_s0 + $0x130] sm:$0xff]   ;;  %v1195_v63 = vld [vmem:[%s1487_s0 + $0x178] sm:$0xff]   ;;  %v1201_v3 = vld [vmem:[%s1490_s4] sm:$0xff]  }
  0x17   :  { %v1196_v0 = vld [vmem:[%s1487_s0 + $0x138] sm:$0xff]   ;;  %v1199_v1 = vld [vmem:[%s1488_s1 + $0x14] ss:$28 sps:$4 sm:$0xff]   ;;  %v1203_v5 = vld [vmem:[%s1488_s1 + $0x4c] ss:$28 sps:$4 sm:$0xff]  }
  0x18   :  { %1008 = vmatpush3.bf16.msra.mxu0 %v1151_v23  ;;  %v148_v6 = vld [vmem:[%s1491_s2] sm:$0xff]  ;;  %v150_v7 = vld [vmem:[%s1491_s2 + $0x10] sm:$0xff]  ;;  %v149_v8 = vld [vmem:[%s1491_s2 + $0x8] sm:$0xff] }
  0x19   :  { %1036 = vmatpush3.bf16.msra.mxu1 %v1152_v24  ;;  %1009 = vmatprep.subr.bf16.mxu0 %v1153_v25  ;;  %v151_v9 = vld [vmem:[%s1491_s2 + $0x18] sm:$0xff]  ;;  %v1202_v10 = vld [vmem:[%s1490_s4 + $0x8] sm:$0xff]   ;;  %v775_v12 = vld [vmem:[%s1492_s5] sm:$0xff] }
  0x1a   :  { %1037 = vmatprep.subr.bf16.mxu1 %v1154_v26  ;;  %154 = vperm.xlu0 %1127, %v148_v6   ;;  %v776_v11 = vld [vmem:[%s1492_s5 + $0x8] sm:$0xff]  ;;  %v778_v14 = vld [vmem:[%s1492_s5 + $0x18] sm:$0xff]  ;;  %v777_v15 = vld [vmem:[%s1492_s5 + $0x10] sm:$0xff] }
  0x1b   :  { %164 = vperm.xlu1 %1128, %v150_v7   ;;  %v1205_v13 = vld [vmem:[%s1488_s1 + $0x48] ss:$28 sps:$4 sm:$0xff]  }
  0x1c   :  { %1010 = vmatpush3.bf16.msra.mxu0 %v1155_v27 }
  0x1d   :  { %1038 = vmatpush3.bf16.msra.mxu1 %v1156_v28  ;;  %1011 = vmatprep.subr.bf16.mxu0 %v1157_v29 }
  0x1e   :  { %1039 = vmatprep.subr.bf16.mxu1 %v1158_v30  ;;  %159 = vperm.xlu0 %1127, %v149_v8  }
  0x1f   :  { %169 = vperm.xlu1 %1128, %v151_v9  }
  0x20   :  { %1012 = vmatpush3.bf16.msra.mxu0 %v1159_v31 }
  0x21   :  { %1040 = vmatpush3.bf16.msra.mxu1 %v1160_v32  ;;  %1053 = vmatprep.subr.bf16.mxu0 %v1167_v37 }
  0x22   :  { %1092 = vmatprep.subr.bf16.mxu1 %v1168_v38  ;;  %781 = vperm.xlu0 %1127, %v775_v12  }
  0x23   :  { %606 = vmatmul.mubr.bf16.vlgmr.msra.gmra.mrb[0].mxu0 %v1161_v33  ;;  %786 = vperm.xlu1 %1128, %v776_v11  }
  0x24   :  { %655 = vmatmul.mubr.bf16.vlgmr.msra.gmra.mrb[0].mxu1 %v1164_v35  ;;  %1054 = vmatpush3.bf16.msra.mxu0 %v1169_v39 }
  0x25   :  { %1093 = vmatpush3.bf16.msra.mxu1 %v1168_v38  ;;  %1055 = vmatprep.subr.bf16.mxu0 %v1170_v40 }
  0x26   :  { %1094 = vmatprep.subr.bf16.mxu1 %v1171_v41  ;;  %662 = vmatprep.mubr.bf16.mxu1 %v1179_v49 }
  0x27   :  { %613 = vmatprep.mubr.bf16.mxu0 %v1185_v54  ;;  %796 = vperm.xlu1 %1128, %v778_v14  }
  0x28   :  { %1056 = vmatpush3.bf16.msra.mxu0 %v1172_v42  ;;  %791 = vperm.xlu0 %1127, %v777_v15  }
  0x29   :  { %1095 = vmatpush3.bf16.msra.mxu1 %v1171_v41  ;;  %1057 = vmatprep.subr.bf16.mxu0 %v1173_v43 }
  0x2a   :  { %1096 = vmatprep.subr.bf16.mxu1 %v1174_v44 }
  0x2b   :  { %614 = vmatmul.mubr.bf16.gmra.mrb[4].mxu0 %v1189_v57 }
  0x2c   :  { %1058 = vmatpush3.bf16.msra.mxu0 %v1175_v45  ;;  %663 = vmatmul.mubr.bf16.gmra.mrb[4].mxu1 %v1181_v50 }
  0x2d   :  { %1097 = vmatpush3.bf16.msra.mxu1 %v1174_v44  ;;  %1059 = vmatprep.subr.bf16.mxu0 %v1176_v46 }
  0x2e   :  { %1098 = vmatprep.subr.bf16.mxu1 %v1177_v47  ;;  %1104 = vmatprep.mubr.msk.bf16.mxu1 %vm566_vm0, %v1191_v59 }
  0x2f   :  { %703 = vmatprep.mubr.bf16.mxu0 %v1199_v1 }
  0x30   :  { %1060 = vmatpush3.bf16.msra.mxu0 %v1178_v48 }
  0x31   :  { %1099 = vmatpush3.bf16.msra.mxu1 %v1177_v47  ;;  %1061 = vmatprep.subr.bf16.mxu0 %v1182_v51 }
  0x32   :  { %1100 = vmatprep.subr.bf16.mxu1 %v1183_v52 }
  0x34   :  { %1062 = vmatpush3.bf16.msra.mxu0 %v1184_v53 }
  0x35   :  { %1101 = vmatpush3.bf16.msra.mxu1 %v1183_v52  ;;  %1063 = vmatprep.subr.bf16.mxu0 %v1187_v55 }
  0x36   :  { %1102 = vmatprep.subr.bf16.mxu1 %v1188_v56 }
  0x38   :  { %1064 = vmatpush3.bf16.msra.mxu0 %v1190_v58 }
  0x39   :  { %1103 = vmatpush3.bf16.msra.mxu1 %v1188_v56  ;;  %1065 = vmatprep.subr.bf16.mxu0 %v1192_v60 }
  0x3a   :  { %1108 = vmatprep.subr.bf16.mxu1 %v1200_v2 }
  0x3c   :  { %1105 = vmatmul.mubr.msk.bf16.vlgmr.msra.gmra.mrb[8].mxu1 %vm566_vm0, %v1193_v61  ;;  %1066 = vmatpush3.bf16.msra.mxu0 %v1194_v62 }
  0x3d   :  { %1067 = vmatprep.subr.bf16.mxu0 %v1195_v63  ;;  %1109 = vmatpush3.bf16.msra.mxu1 %v1200_v2 }
  0x3e   :  { %1110 = vmatprep.mubr.msk.bf16.mxu1 %vm815_vm1, %v1201_v3 }
  0x40   :  { %1068 = vmatpush3.bf16.msra.mxu0 %v1196_v0 }
  0x43   :  { %704 = vmatmul.mubr.bf16.vlgmr.msra.gmra.mrb[8].mxu0 %v1197_v4 }
  0x44   :  { %711 = vmatprep.mubr.bf16.mxu0 %v1203_v5 }
  0x48   :  { %1111 = vmatmul.mubr.msk.bf16.vlgmr.msra.gmra.mrb[8].mxu1 %vm815_vm1, %v1202_v10 }
  0x4b   :  { %712 = vmatmul.mubr.bf16.gmra.mrb[12].mxu0 %v1205_v13 }
  0x99   :  { %v155_v16 = vpop.permute.xlu0 %154 }
  0x9a   :  { %v165_v39 = vpop.permute.xlu1 %164 }
  0x9d   :  { %v160_v18 = vpop.permute.xlu0 %159 }
  0x9e   :  { %v170_v46 = vpop.permute.xlu1 %169 }
  0xa1   :  { %v782_v60 = vpop.permute.xlu0 %781 }
  0xa2   :  { %v787_v1 = vpop.permute.xlu1 %786 }
  0xa7   :  { %v792_v15 = vpop.permute.xlu0 %791 }
  0xf6   :  { %v1013_v17 = vpop.f32.mrb[0].mxu0 }
  0xf7   :  { %v1014_v19 = vpop.f32.mrb[1].mxu0  ;;  %v1041_v20 = vpop.f32.mrb[0].mxu1 }
  0xf8   :  { %v1015_v21 = vadd.f32 %v1014_v19, %v1013_v17  ;;  %v1016_v22 = vpop.f32.mrb[2].mxu0  ;;  %v1042_v23 = vpop.f32.mrb[1].mxu1 }
  0xf9   :  { %v1017_v24 = vpop.f32.mrb[3].mxu0  ;;  %v1043_v25 = vadd.f32 %v1042_v23, %v1041_v20  ;;  %v1044_v26 = vpop.f32.mrb[2].mxu1 }
  0xfa   :  { %v608_v27 = vadd.f32 %v1015_v21, %v155_v16  ;;  %v1018_v28 = vadd.f32 %v1017_v24, %v1016_v22  ;;  %v1045_v29 = vpop.f32.mrb[3].mxu1  ;;  %v797_v19 = vpop.permute.xlu1 %796 }
  0xfb   :  { %v1046_v30 = vadd.f32 %v1045_v29, %v1044_v26 }
  0xfc   :  { %v657_v31 = vadd.f32 %v1043_v25, %v608_v27  ;;  %v611_v32 = vadd.f32 %v1018_v28, %v160_v18 }
  0xfe   :  { %v660_v33 = vadd.f32 %v1046_v30, %v611_v32  ;;  %v1019_v41 = vpop.f32.mrb[4].mxu0 }
  0xff   :  { %v1047_v34 = vpop.f32.mrb[4].mxu1  ;;  %v1020_v42 = vpop.f32.mrb[5].mxu0 }
 0x100   :  { %v1048_v35 = vpop.f32.mrb[5].mxu1  ;;  %v1021_v43 = vadd.f32 %v1020_v42, %v1019_v41  ;;  %v1022_v44 = vpop.f32.mrb[6].mxu0 }
 0x101   :  { %v1049_v36 = vadd.f32 %v1048_v35, %v1047_v34  ;;  %v1050_v37 = vpop.f32.mrb[6].mxu1  ;;  %v1023_v45 = vpop.f32.mrb[7].mxu0 }
 0x102   :  { %v1051_v38 = vpop.f32.mrb[7].mxu1  ;;  %v616_v47 = vadd.f32 %v1021_v43, %v165_v39  ;;  %v1024_v48 = vadd.f32 %v1023_v45, %v1022_v44 }
 0x103   :  { %v1052_v40 = vadd.f32 %v1051_v38, %v1050_v37 }
 0x104   :  { %v665_v49 = vadd.f32 %v1049_v36, %v616_v47  ;;  %v619_v50 = vadd.f32 %v1024_v48, %v170_v46 }
 0x106   :  { %v668_v51 = vadd.f32 %v1052_v40, %v619_v50 }
 0x116   :  { %v1069_v52 = vpop.f32.mrb[8].mxu0 }
 0x117   :  { %v1070_v53 = vpop.f32.mrb[9].mxu0 }
 0x118   :  { %v1071_v54 = vadd.f32 %v1070_v53, %v1069_v52  ;;  %v1072_v55 = vpop.f32.mrb[10].mxu0 }
 0x119   :  { %v1073_v56 = vpop.f32.mrb[11].mxu0 }
 0x11a   :  { %v706_v57 = vadd.f32 %v1071_v54, %v657_v31  ;;  %v1074_v58 = vadd.f32 %v1073_v56, %v1072_v55 }
 0x11b   :  { %v1112_v59 = vpop.f32.mrb[8].mxu1 }
 0x11c   :  { %v856_v61 = vpop.f32.mrb[9].mxu1  ;;  %v709_v62 = vadd.f32 %v1074_v58, %v660_v33  ;;  %v1116_v63 = vadd.f32 %v782_v60, %v706_v57 }
 0x11d   :  { %v1113_v0 = vpop.f32.mrb[10].mxu1 }
 0x11e   :  { %v859_v2 = vpop.f32.mrb[11].mxu1  ;;  %v1117_v3 = vadd.f32 %v1116_v63, %v856_v61  ;;  %v1120_v4 = vadd.f32 %v787_v1, %v709_v62  ;;  %v1075_v5 = vpop.f32.mrb[12].mxu0 }
 0x11f   :  { %v1076_v6 = vpop.f32.mrb[13].mxu0 }
 0x120   :  { %v1121_v7 = vadd.f32 %v1120_v4, %v859_v2  ;;  %v1077_v8 = vadd.f32 %v1076_v6, %v1075_v5  ;;  %v1078_v9 = vpop.f32.mrb[14].mxu0  ;;  %v875_v11 = vmax.f32 %v1117_v3, 0.0 }
 0x121   :  { %v1079_v10 = vpop.f32.mrb[15].mxu0 }
 0x122   :  { %v876_v12 = vmax.f32 %v1121_v7, 0.0  ;;  %v714_v13 = vadd.f32 %v1077_v8, %v665_v49  ;;  %v1080_v14 = vadd.f32 %v1079_v10, %v1078_v9 }
 0x124   :  { %v989_v16 = vpack.c.bf16 %v876_v12, %v875_v11  ;;  %v1114_v17 = vadd.f32 %v792_v15, %v714_v13  ;;  %v717_v18 = vadd.f32 %v1080_v14, %v668_v51 }
 0x126   :  { %990 = vst [vmem:[%s1493_s6] sm:$0xff] %v989_v16   ;;  %v1115_v20 = vadd.f32 %v1114_v17, %v1112_v59  ;;  %v1118_v21 = vadd.f32 %v797_v19, %v717_v18 }
 0x128   :  { %v1119_v22 = vadd.f32 %v1118_v21, %v1113_v0  ;;  %v877_v23 = vmax.f32 %v1115_v20, 0.0 }
 0x12a   :  { %v878_v24 = vmax.f32 %v1119_v22, 0.0 }
 0x12c   :  { %v994_v25 = vpack.c.bf16 %v878_v24, %v877_v23 }
 0x12e   :  { %996 = vst [vmem:[%s1493_s6 + $0x8] sm:$0xff] %v994_v25  }

// kernel: resnet_forward.19
= control target key start
LH: loop header
LB: loop body
LE: loop exit
PB: predicated region body
PF: predicated region fallthrough
CT: control target
= control target key end

     0   :  { %v1364_v1 = vmov 0   ;;  %vm667_vm0 = vcmask 785408   ;;  %s1689_s0 = inlined_call_operand.vmem [shape: bf16[864,128], index: 0, kind: input, shape index: {}]   ;;  %s1690_s1 = inlined_call_operand.vmem [shape: bf16[64,864], index: 1, kind: input, shape index: {}]   ;;  %s1691_s2 = inlined_call_operand.vmem [shape: f32[64,1], index: 2, kind: input, shape index: {}]   ;;  %s1692_s3 = inlined_call_operand.vmem [shape: bf16[64,128], index: 3, kind: output, shape index: {}]  }
   0x1   :  { %v1270_v0 = vld [vmem:[%s1689_s0 + $0x40] sm:$0xff]   ;;  %1268 = vset.pattern.permute.xlu0 %v1364_v1  ;;  %1269 = vset.pattern.permute.xlu1 %v1364_v1  ;;  %v1274_v5 = vld [vmem:[%s1689_s0 + $0x48] sm:$0xff]   ;;  %v1278_v9 = vld [vmem:[%s1689_s0 + $0x50] sm:$0xff]  }
   0x2   :  { %v1271_v2 = vld [vmem:[%s1689_s0] sm:$0xff]   ;;  %1117 = vmatprep.subr.bf16.mxu0 %v1270_v0  ;;  %v1275_v6 = vld [vmem:[%s1689_s0 + $0x8] sm:$0xff]   ;;  %v1279_v10 = vld [vmem:[%s1689_s0 + $0x10] sm:$0xff]  }
   0x3   :  { %v1272_v3 = vld [vmem:[%s1689_s0 + $0xc0] sm:$0xff]   ;;  %1118 = vmatpush3.bf16.msra.mxu0 %v1271_v2  ;;  %v1276_v7 = vld [vmem:[%s1689_s0 + $0xc8] sm:$0xff]   ;;  %v1280_v11 = vld [vmem:[%s1689_s0 + $0xd0] sm:$0xff]  }
   0x4   :  { %v1273_v4 = vld [vmem:[%s1689_s0 + $0x80] sm:$0xff]   ;;  %1157 = vmatprep.subr.bf16.mxu1 %v1272_v3  ;;  %1119 = vmatprep.subr.bf16.mxu0 %v1274_v5  ;;  %v1277_v8 = vld [vmem:[%s1689_s0 + $0x88] sm:$0xff]   ;;  %v1281_v12 = vld [vmem:[%s1689_s0 + $0x90] sm:$0xff]  }
   0x5   :  { %1158 = vmatpush3.bf16.msra.mxu1 %v1273_v4  ;;  %v1282_v13 = vld [vmem:[%s1689_s0 + $0x58] sm:$0xff]   ;;  %v1286_v17 = vld [vmem:[%s1689_s0 + $0x60] sm:$0xff]   ;;  %v1290_v21 = vld [vmem:[%s1689_s0 + $0x68] sm:$0xff]  }
   0x6   :  { %1159 = vmatprep.subr.bf16.mxu1 %v1276_v7  ;;  %v1283_v14 = vld [vmem:[%s1689_s0 + $0x18] sm:$0xff]   ;;  %v1287_v18 = vld [vmem:[%s1689_s0 + $0x20] sm:$0xff]   ;;  %v1291_v22 = vld [vmem:[%s1689_s0 + $0x28] sm:$0xff]  }
   0x7   :  { %1120 = vmatpush3.bf16.msra.mxu0 %v1275_v6  ;;  %v1284_v15 = vld [vmem:[%s1689_s0 + $0xd8] sm:$0xff]   ;;  %v1288_v19 = vld [vmem:[%s1689_s0 + $0xe0] sm:$0xff]   ;;  %v1292_v23 = vld [vmem:[%s1689_s0 + $0xe8] sm:$0xff]  }
   0x8   :  { %1121 = vmatprep.subr.bf16.mxu0 %v1278_v9  ;;  %v1285_v16 = vld [vmem:[%s1689_s0 + $0x98] sm:$0xff]   ;;  %v1289_v20 = vld [vmem:[%s1689_s0 + $0xa0] sm:$0xff]   ;;  %v1293_v24 = vld [vmem:[%s1689_s0 + $0xa8] sm:$0xff]  }
   0x9   :  { %1160 = vmatpush3.bf16.msra.mxu1 %v1277_v8  ;;  %v1294_v25 = vld [vmem:[%s1689_s0 + $0x70] sm:$0xff]   ;;  %v1298_v29 = vld [vmem:[%s1689_s0 + $0x78] sm:$0xff]   ;;  %v1303_v33 = vld [vmem:[%s1690_s1 + $0x4] ss:$28 sps:$4 sm:$0xff]  }
   0xa   :  { %1161 = vmatprep.subr.bf16.mxu1 %v1280_v11  ;;  %v1295_v26 = vld [vmem:[%s1689_s0 + $0x30] sm:$0xff]   ;;  %v1299_v30 = vld [vmem:[%s1689_s0 + $0x38] sm:$0xff]   ;;  %712 = vmatprep.mubr.bf16.mxu0 %v1303_v33  ;;  %v1305_v35 = vld [vmem:[%s1689_s0 + $0x140] sm:$0xff]  }
   0xb   :  { %1122 = vmatpush3.bf16.msra.mxu0 %v1279_v10  ;;  %v1296_v27 = vld [vmem:[%s1689_s0 + $0xf0] sm:$0xff]   ;;  %v1300_v31 = vld [vmem:[%s1689_s0 + $0xf8] sm:$0xff]   ;;  %v1306_v36 = vld [vmem:[%s1690_s1 + $0x8] ss:$28 sps:$4 sm:$0xff]  }
   0xc   :  { %1123 = vmatprep.subr.bf16.mxu0 %v1282_v13  ;;  %v1297_v28 = vld [vmem:[%s1689_s0 + $0xb0] sm:$0xff]   ;;  %v1301_v32 = vld [vmem:[%s1690_s1] ss:$28 sps:$4 sm:$0xff]   ;;  %v1308_v37 = vld [vmem:[%s1690_s1 + $0xc] ss:$28 sps:$4 sm:$0xff]  }
   0xd   :  { %1162 = vmatpush3.bf16.msra.mxu1 %v1281_v12  ;;  %v1304_v34 = vld [vmem:[%s1689_s0 + $0xb8] sm:$0xff]   ;;  %v1309_v38 = vld [vmem:[%s1689_s0 + $0x100] sm:$0xff]   ;;  %777 = vmatprep.mubr.bf16.mxu1 %v1308_v37  ;;  %v1310_v39 = vld [vmem:[%s1689_s0 + $0x148] sm:$0xff]  }
   0xe   :  { %1163 = vmatprep.subr.bf16.mxu1 %v1284_v15  ;;  %v1311_v40 = vld [vmem:[%s1689_s0 + $0x108] sm:$0xff]   ;;  %v1312_v41 = vld [vmem:[%s1690_s1 + $0x3c] ss:$28 sps:$4 sm:$0xff]   ;;  %v1315_v43 = vld [vmem:[%s1689_s0 + $0x150] sm:$0xff]  }
   0xf   :  { %1124 = vmatpush3.bf16.msra.mxu0 %v1283_v14  ;;  %v1314_v42 = vld [vmem:[%s1690_s1 + $0x38] ss:$28 sps:$4 sm:$0xff]   ;;  %v1316_v44 = vld [vmem:[%s1690_s1 + $0x44] ss:$28 sps:$4 sm:$0xff]   ;;  %v1325_v51 = vld [vmem:[%s1690_s1 + $0x70] ss:$28 sps:$4 sm:$0xff]  }
  0x10   :  { %1125 = vmatprep.subr.bf16.mxu0 %v1286_v17  ;;  %v1318_v45 = vld [vmem:[%s1689_s0 + $0x110] sm:$0xff]   ;;  %v1319_v46 = vld [vmem:[%s1690_s1 + $0x40] ss:$28 sps:$4 sm:$0xff]   ;;  %v1327_v53 = vld [vmem:[%s1689_s0 + $0x188] sm:$0xff]  }
  0x11   :  { %1164 = vmatpush3.bf16.msra.mxu1 %v1285_v16  ;;  %v1320_v47 = vld [vmem:[%s1689_s0 + $0x158] sm:$0xff]   ;;  %v1321_v48 = vld [vmem:[%s1689_s0 + $0x180] sm:$0xff]   ;;  %v1323_v50 = vld [vmem:[%s1690_s1 + $0x74] ss:$28 sps:$4 sm:$0xff]  }
  0x12   :  { %1165 = vmatprep.subr.bf16.mxu1 %v1288_v19  ;;  %v1322_v49 = vld [vmem:[%s1689_s0 + $0x118] sm:$0xff]   ;;  %v1326_v52 = vld [vmem:[%s1689_s0 + $0x160] sm:$0xff]   ;;  %v1332_v57 = vld [vmem:[%s1689_s0 + $0x168] sm:$0xff]  }
  0x13   :  { %1126 = vmatpush3.bf16.msra.mxu0 %v1287_v18  ;;  %v1328_v54 = vld [vmem:[%s1690_s1 + $0x7c] ss:$28 sps:$4 sm:$0xff]   ;;  %v1330_v55 = vld [vmem:[%s1689_s0 + $0x120] sm:$0xff]   ;;  %v1333_v58 = vld [vmem:[%s1689_s0 + $0x190] sm:$0xff]  }
  0x14   :  { %1127 = vmatprep.subr.bf16.mxu0 %v1290_v21  ;;  %v1331_v56 = vld [vmem:[%s1690_s1 + $0x78] ss:$28 sps:$4 sm:$0xff]   ;;  %v1334_v59 = vld [vmem:[%s1689_s0 + $0x128] sm:$0xff]   ;;  %v1345_v4 = vld [vmem:[%s1689_s0 + $0x1a0] sm:$0xff]  }
  0x15   :  { %1166 = vmatpush3.bf16.msra.mxu1 %v1289_v20  ;;  %v1335_v60 = vld [vmem:[%s1690_s1 + $0xac] ss:$28 sps:$4 sm:$0xff]   ;;  %v1338_v62 = vld [vmem:[%s1689_s0 + $0x170] sm:$0xff]   ;;  %v1339_v63 = vld [vmem:[%s1689_s0 + $0x198] sm:$0xff]  }
  0x16   :  { %1167 = vmatprep.subr.bf16.mxu1 %v1292_v23  ;;  %v1337_v61 = vld [vmem:[%s1690_s1 + $0xa8] ss:$28 sps:$4 sm:$0xff]   ;;  %v1340_v0 = vld [vmem:[%s1690_s1 + $0xb4] ss:$28 sps:$4 sm:$0xff]   ;;  %v1344_v3 = vld [vmem:[%s1689_s0 + $0x178] sm:$0xff]  }
  0x17   :  { %1128 = vmatpush3.bf16.msra.mxu0 %v1291_v22  ;;  %v1342_v1 = vld [vmem:[%s1689_s0 + $0x130] sm:$0xff]   ;;  %v1346_v5 = vld [vmem:[%s1689_s0 + $0x138] sm:$0xff]   ;;  %v1350_v8 = vld [vmem:[%s1689_s0 + $0x1a8] sm:$0xff]  }
  0x18   :  { %1129 = vmatprep.subr.bf16.mxu0 %v1294_v25  ;;  %v1343_v2 = vld [vmem:[%s1690_s1 + $0xb0] ss:$28 sps:$4 sm:$0xff]   ;;  %v1351_v9 = vld [vmem:[%s1690_s1 + $0x18] ss:$28 sps:$4 sm:$0xff]   ;;  %v1359_v12 = vld [vmem:[%s1690_s1 + $0x88] ss:$28 sps:$4 sm:$0xff]  }
  0x19   :  { %1168 = vmatpush3.bf16.msra.mxu1 %v1293_v24  ;;  %v1347_v6 = vld [vmem:[%s1690_s1 + $0x10] ss:$28 sps:$4 sm:$0xff]   ;;  %v1355_v13 = vld [vmem:[%s1690_s1 + $0x48] ss:$28 sps:$4 sm:$0xff]   ;;  %v1360_v17 = vld [vmem:[%s1690_s1 + $0xc0] ss:$28 sps:$4 sm:$0xff]  }
  0x1a   :  { %1169 = vmatprep.subr.bf16.mxu1 %v1296_v27  ;;  %v1349_v7 = vld [vmem:[%s1690_s1 + $0x14] ss:$28 sps:$4 sm:$0xff]   ;;  %v1353_v11 = vld [vmem:[%s1690_s1 + $0x4c] ss:$28 sps:$4 sm:$0xff]   ;;  %v1356_v14 = vld [vmem:[%s1690_s1 + $0x84] ss:$28 sps:$4 sm:$0xff]  }
  0x1b   :  { %1130 = vmatpush3.bf16.msra.mxu0 %v1295_v26  ;;  %v1352_v10 = vld [vmem:[%s1690_s1 + $0x50] ss:$28 sps:$4 sm:$0xff]   ;;  %v155_v15 = vld [vmem:[%s1691_s2] sm:$0xff]  ;;  %v158_v19 = vld [vmem:[%s1691_s2 + $0x18] sm:$0xff] }
  0x1c   :  { %1131 = vmatprep.subr.bf16.mxu0 %v1298_v29  ;;  %v157_v16 = vld [vmem:[%s1691_s2 + $0x10] sm:$0xff]  ;;  %165 = vperm.xlu0 %1268, %v155_v15   ;;  %v156_v18 = vld [vmem:[%s1691_s2 + $0x8] sm:$0xff]  ;;  %v159_v20 = vld [vmem:[%s1691_s2 + $0x20] sm:$0xff] }
  0x1d   :  { %1170 = vmatpush3.bf16.msra.mxu1 %v1297_v28  ;;  %175 = vperm.xlu1 %1269, %v157_v16   ;;  %v160_v21 = vld [vmem:[%s1691_s2 + $0x28] sm:$0xff]  ;;  %v1358_v22 = vld [vmem:[%s1690_s1 + $0x80] ss:$28 sps:$4 sm:$0xff]   ;;  %v161_v24 = vld [vmem:[%s1691_s2 + $0x30] sm:$0xff] }
  0x1e   :  { %1171 = vmatprep.subr.bf16.mxu1 %v1300_v31  ;;  %v1361_v23 = vld [vmem:[%s1690_s1 + $0xbc] ss:$28 sps:$4 sm:$0xff]  }
  0x1f   :  { %1132 = vmatpush3.bf16.msra.mxu0 %v1299_v30  ;;  %v162_v25 = vld [vmem:[%s1691_s2 + $0x38] sm:$0xff] }
  0x20   :  { %1197 = vmatprep.subr.bf16.mxu0 %v1305_v35  ;;  %170 = vperm.xlu0 %1268, %v156_v18   ;;  %v1363_v26 = vld [vmem:[%s1690_s1 + $0xb8] ss:$28 sps:$4 sm:$0xff]  }
  0x21   :  { %1172 = vmatpush3.bf16.msra.mxu1 %v1304_v34  ;;  %180 = vperm.xlu1 %1269, %v158_v19  }
  0x22   :  { %713 = vmatmul.mubr.bf16.vlgmr.msra.gmra.mrb[0].mxu0 %v1301_v32  ;;  %1247 = vmatprep.subr.bf16.mxu1 %v1321_v48 }
  0x23   :  { %1198 = vmatpush3.bf16.msra.mxu0 %v1309_v38  ;;  %720 = vmatprep.mubr.bf16.mxu0 %v1312_v41 }
  0x24   :  { %778 = vmatmul.mubr.bf16.vlgmr.msra.gmra.mrb[0].mxu1 %v1306_v36  ;;  %1199 = vmatprep.subr.bf16.mxu0 %v1310_v39 }
  0x25   :  { %785 = vmatprep.mubr.bf16.mxu1 %v1316_v44  ;;  %1248 = vmatpush3.bf16.msra.mxu1 %v1321_v48 }
  0x26   :  { %1249 = vmatprep.subr.bf16.mxu1 %v1327_v53  ;;  %185 = vperm.xlu0 %1268, %v159_v20  }
  0x27   :  { %1200 = vmatpush3.bf16.msra.mxu0 %v1311_v40  ;;  %190 = vperm.xlu1 %1269, %v160_v21  }
  0x28   :  { %1201 = vmatprep.subr.bf16.mxu0 %v1315_v43 }
  0x29   :  { %1250 = vmatpush3.bf16.msra.mxu1 %v1327_v53 }
  0x2a   :  { %721 = vmatmul.mubr.bf16.gmra.mrb[4].mxu0 %v1314_v42  ;;  %1251 = vmatprep.subr.bf16.mxu1 %v1333_v58 }
  0x2b   :  { %1202 = vmatpush3.bf16.msra.mxu0 %v1318_v45  ;;  %728 = vmatprep.mubr.bf16.mxu0 %v1323_v50 }
  0x2c   :  { %786 = vmatmul.mubr.bf16.gmra.mrb[4].mxu1 %v1319_v46  ;;  %1203 = vmatprep.subr.bf16.mxu0 %v1320_v47 }
  0x2d   :  { %793 = vmatprep.mubr.bf16.mxu1 %v1328_v54  ;;  %1252 = vmatpush3.bf16.msra.mxu1 %v1333_v58 }
  0x2e   :  { %1253 = vmatprep.subr.bf16.mxu1 %v1339_v63  ;;  %195 = vperm.xlu0 %1268, %v161_v24  }
  0x2f   :  { %1204 = vmatpush3.bf16.msra.mxu0 %v1322_v49  ;;  %200 = vperm.xlu1 %1269, %v162_v25  }
  0x30   :  { %1205 = vmatprep.subr.bf16.mxu0 %v1326_v52 }
  0x31   :  { %1254 = vmatpush3.bf16.msra.mxu1 %v1339_v63 }
  0x32   :  { %729 = vmatmul.mubr.bf16.gmra.mrb[8].mxu0 %v1325_v51  ;;  %1255 = vmatprep.subr.bf16.mxu1 %v1345_v4 }
  0x33   :  { %1206 = vmatpush3.bf16.msra.mxu0 %v1330_v55  ;;  %736 = vmatprep.mubr.bf16.mxu0 %v1335_v60 }
  0x34   :  { %794 = vmatmul.mubr.bf16.gmra.mrb[8].mxu1 %v1331_v56  ;;  %1207 = vmatprep.subr.bf16.mxu0 %v1332_v57 }
  0x35   :  { %801 = vmatprep.mubr.bf16.mxu1 %v1340_v0  ;;  %1256 = vmatpush3.bf16.msra.mxu1 %v1345_v4 }
  0x36   :  { %1257 = vmatprep.subr.bf16.mxu1 %v1350_v8 }
  0x37   :  { %1208 = vmatpush3.bf16.msra.mxu0 %v1334_v59 }
  0x38   :  { %1209 = vmatprep.subr.bf16.mxu0 %v1338_v62 }
  0x39   :  { %1258 = vmatpush3.bf16.msra.mxu1 %v1350_v8 }
  0x3a   :  { %737 = vmatmul.mubr.bf16.gmra.mrb[12].mxu0 %v1337_v61 }
  0x3b   :  { %1210 = vmatpush3.bf16.msra.mxu0 %v1342_v1  ;;  %842 = vmatprep.mubr.bf16.mxu0 %v1349_v7 }
  0x3c   :  { %802 = vmatmul.mubr.bf16.gmra.mrb[12].mxu1 %v1343_v2  ;;  %1211 = vmatprep.subr.bf16.mxu0 %v1344_v3 }
  0x3d   :  { %1259 = vmatprep.mubr.msk.bf16.mxu1 %vm667_vm0, %v1351_v9 }
  0x3f   :  { %1212 = vmatpush3.bf16.msra.mxu0 %v1346_v5 }
  0x42   :  { %843 = vmatmul.mubr.bf16.vlgmr.msra.gmra.mrb[16].mxu0 %v1347_v6 }
  0x43   :  { %850 = vmatprep.mubr.bf16.mxu0 %v1353_v11 }
  0x44   :  { %1260 = vmatmul.mubr.msk.bf16.vlgmr.msra.gmra.mrb[16].mxu1 %vm667_vm0, %v1352_v10 }
  0x45   :  { %1263 = vmatprep.mubr.msk.bf16.mxu1 %vm667_vm0, %v1359_v12 }
  0x4a   :  { %851 = vmatmul.mubr.bf16.gmra.mrb[20].mxu0 %v1355_v13 }
  0x4b   :  { %858 = vmatprep.mubr.bf16.mxu0 %v1356_v14 }
  0x4c   :  { %1264 = vmatmul.mubr.msk.bf16.gmra.mrb[20].mxu1 %vm667_vm0, %v1360_v17 }
  0x52   :  { %859 = vmatmul.mubr.bf16.gmra.mrb[24].mxu0 %v1358_v22 }
  0x53   :  { %866 = vmatprep.mubr.bf16.mxu0 %v1361_v23 }
  0x5a   :  { %867 = vmatmul.mubr.bf16.gmra.mrb[28].mxu0 %v1363_v26 }
  0x9b   :  { %v166_v27 = vpop.permute.xlu0 %165 }
  0x9c   :  { %v176_v38 = vpop.permute.xlu1 %175 }
  0x9f   :  { %v171_v32 = vpop.permute.xlu0 %170 }
  0xa0   :  { %v181_v50 = vpop.permute.xlu1 %180 }
  0xa5   :  { %v186_v1 = vpop.permute.xlu0 %185 }
  0xa6   :  { %v191_v4 = vpop.permute.xlu1 %190 }
  0xad   :  { %v196_v19 = vpop.permute.xlu0 %195 }
  0xae   :  { %v201_v22 = vpop.permute.xlu1 %200 }
  0xf5   :  { %v1133_v28 = vpop.f32.mrb[0].mxu0 }
  0xf6   :  { %v1134_v29 = vpop.f32.mrb[1].mxu0 }
  0xf7   :  { %v1135_v30 = vadd.f32 %v1134_v29, %v1133_v28  ;;  %v1136_v31 = vpop.f32.mrb[2].mxu0  ;;  %v1173_v33 = vpop.f32.mrb[0].mxu1 }
  0xf8   :  { %v1137_v34 = vpop.f32.mrb[3].mxu0  ;;  %v1174_v37 = vpop.f32.mrb[1].mxu1 }
  0xf9   :  { %v715_v35 = vadd.f32 %v1135_v30, %v166_v27  ;;  %v1138_v36 = vadd.f32 %v1137_v34, %v1136_v31  ;;  %v1175_v39 = vadd.f32 %v1174_v37, %v1173_v33  ;;  %v1176_v40 = vpop.f32.mrb[2].mxu1 }
  0xfa   :  { %v1177_v42 = vpop.f32.mrb[3].mxu1 }
  0xfb   :  { %v718_v41 = vadd.f32 %v1138_v36, %v171_v32  ;;  %v1659_v43 = vadd.f32 %v1175_v39, %v715_v35  ;;  %v1178_v44 = vadd.f32 %v1177_v42, %v1176_v40 }
  0xfd   :  { %v1139_v45 = vpop.f32.mrb[4].mxu0  ;;  %v1661_v46 = vadd.f32 %v1178_v44, %v718_v41 }
  0xfe   :  { %v1140_v47 = vpop.f32.mrb[5].mxu0 }
  0xff   :  { %v1141_v48 = vadd.f32 %v1140_v47, %v1139_v45  ;;  %v1142_v49 = vpop.f32.mrb[6].mxu0  ;;  %v1179_v51 = vpop.f32.mrb[4].mxu1 }
 0x100   :  { %v1143_v52 = vpop.f32.mrb[7].mxu0  ;;  %v1180_v55 = vpop.f32.mrb[5].mxu1 }
 0x101   :  { %v723_v53 = vadd.f32 %v1141_v48, %v176_v38  ;;  %v1144_v54 = vadd.f32 %v1143_v52, %v1142_v49  ;;  %v1181_v56 = vadd.f32 %v1180_v55, %v1179_v51  ;;  %v1182_v57 = vpop.f32.mrb[6].mxu1 }
 0x102   :  { %v1183_v59 = vpop.f32.mrb[7].mxu1 }
 0x103   :  { %v726_v58 = vadd.f32 %v1144_v54, %v181_v50  ;;  %v1663_v60 = vadd.f32 %v1181_v56, %v723_v53  ;;  %v1184_v61 = vadd.f32 %v1183_v59, %v1182_v57 }
 0x105   :  { %v1145_v62 = vpop.f32.mrb[8].mxu0  ;;  %v1665_v63 = vadd.f32 %v1184_v61, %v726_v58 }
 0x106   :  { %v1146_v0 = vpop.f32.mrb[9].mxu0 }
 0x107   :  { %v1147_v2 = vadd.f32 %v1146_v0, %v1145_v62  ;;  %v1148_v3 = vpop.f32.mrb[10].mxu0  ;;  %v1185_v5 = vpop.f32.mrb[8].mxu1 }
 0x108   :  { %v1149_v6 = vpop.f32.mrb[11].mxu0  ;;  %v1186_v9 = vpop.f32.mrb[9].mxu1 }
 0x109   :  { %v731_v7 = vadd.f32 %v1147_v2, %v186_v1  ;;  %v1150_v8 = vadd.f32 %v1149_v6, %v1148_v3  ;;  %v1187_v10 = vadd.f32 %v1186_v9, %v1185_v5  ;;  %v1188_v11 = vpop.f32.mrb[10].mxu1 }
 0x10a   :  { %v1189_v13 = vpop.f32.mrb[11].mxu1 }
 0x10b   :  { %v734_v12 = vadd.f32 %v1150_v8, %v191_v4  ;;  %v1667_v14 = vadd.f32 %v1187_v10, %v731_v7  ;;  %v1190_v15 = vadd.f32 %v1189_v13, %v1188_v11 }
 0x10d   :  { %v1151_v16 = vpop.f32.mrb[12].mxu0  ;;  %v1669_v17 = vadd.f32 %v1190_v15, %v734_v12 }
 0x10e   :  { %v1152_v18 = vpop.f32.mrb[13].mxu0 }
 0x10f   :  { %v1153_v20 = vadd.f32 %v1152_v18, %v1151_v16  ;;  %v1154_v21 = vpop.f32.mrb[14].mxu0  ;;  %v1191_v23 = vpop.f32.mrb[12].mxu1 }
 0x110   :  { %v1155_v24 = vpop.f32.mrb[15].mxu0  ;;  %v1192_v27 = vpop.f32.mrb[13].mxu1 }
 0x111   :  { %v739_v25 = vadd.f32 %v1153_v20, %v196_v19  ;;  %v1156_v26 = vadd.f32 %v1155_v24, %v1154_v21  ;;  %v1193_v28 = vadd.f32 %v1192_v27, %v1191_v23  ;;  %v1194_v29 = vpop.f32.mrb[14].mxu1 }
 0x112   :  { %v1195_v31 = vpop.f32.mrb[15].mxu1 }
 0x113   :  { %v742_v30 = vadd.f32 %v1156_v26, %v201_v22  ;;  %v804_v32 = vadd.f32 %v1193_v28, %v739_v25  ;;  %v1196_v33 = vadd.f32 %v1195_v31, %v1194_v29 }
 0x115   :  { %v807_v34 = vadd.f32 %v1196_v33, %v742_v30  ;;  %v1213_v35 = vpop.f32.mrb[16].mxu0 }
 0x116   :  { %v1214_v36 = vpop.f32.mrb[17].mxu0 }
 0x117   :  { %v1215_v37 = vadd.f32 %v1214_v36, %v1213_v35  ;;  %v1216_v38 = vpop.f32.mrb[18].mxu0  ;;  %v1261_v40 = vpop.f32.mrb[16].mxu1 }
 0x118   :  { %v1217_v39 = vpop.f32.mrb[19].mxu0  ;;  %v909_v44 = vpop.f32.mrb[17].mxu1 }
 0x119   :  { %v1218_v41 = vadd.f32 %v1217_v39, %v1216_v38  ;;  %v845_v42 = vadd.f32 %v1215_v37, %v1659_v43  ;;  %v1262_v45 = vpop.f32.mrb[18].mxu1 }
 0x11a   :  { %v912_v49 = vpop.f32.mrb[19].mxu1 }
 0x11b   :  { %v910_v47 = vadd.f32 %v909_v44, %v845_v42  ;;  %v848_v48 = vadd.f32 %v1218_v41, %v1661_v46 }
 0x11d   :  { %v913_v50 = vadd.f32 %v912_v49, %v848_v48  ;;  %v1219_v51 = vpop.f32.mrb[20].mxu0  ;;  %v940_v53 = vmax.f32 %v910_v47, 0.0 }
 0x11e   :  { %v1220_v52 = vpop.f32.mrb[21].mxu0 }
 0x11f   :  { %v941_v54 = vmax.f32 %v913_v50, 0.0  ;;  %v1221_v55 = vadd.f32 %v1220_v52, %v1219_v51  ;;  %v1222_v56 = vpop.f32.mrb[22].mxu0  ;;  %v1265_v58 = vpop.f32.mrb[20].mxu1 }
 0x120   :  { %v1223_v57 = vpop.f32.mrb[23].mxu0  ;;  %v925_v43 = vpop.f32.mrb[21].mxu1 }
 0x121   :  { %v1097_v59 = vpack.c.bf16 %v941_v54, %v940_v53  ;;  %v853_v61 = vadd.f32 %v1221_v55, %v1663_v60  ;;  %v1224_v62 = vadd.f32 %v1223_v57, %v1222_v56  ;;  %v1266_v0 = vpop.f32.mrb[22].mxu1 }
 0x122   :  { %v928_v2 = vpop.f32.mrb[23].mxu1 }
 0x123   :  { %1098 = vst [vmem:[%s1692_s3] sm:$0xff] %v1097_v59   ;;  %v918_v46 = vadd.f32 %v1261_v40, %v853_v61  ;;  %v856_v1 = vadd.f32 %v1224_v62, %v1665_v63 }
 0x125   :  { %v921_v3 = vadd.f32 %v1262_v45, %v856_v1  ;;  %v1225_v4 = vpop.f32.mrb[24].mxu0  ;;  %v942_v6 = vmax.f32 %v918_v46, 0.0 }
 0x126   :  { %v1226_v5 = vpop.f32.mrb[25].mxu0 }
 0x127   :  { %v943_v7 = vmax.f32 %v921_v3, 0.0  ;;  %v1227_v8 = vadd.f32 %v1226_v5, %v1225_v4  ;;  %v1228_v9 = vpop.f32.mrb[26].mxu0 }
 0x128   :  { %v1229_v10 = vpop.f32.mrb[27].mxu0 }
 0x129   :  { %v1102_v60 = vpack.c.bf16 %v943_v7, %v942_v6  ;;  %v1230_v11 = vadd.f32 %v1229_v10, %v1228_v9  ;;  %v861_v12 = vadd.f32 %v1227_v8, %v1667_v14 }
 0x12b   :  { %1114 = vst [vmem:[%s1692_s3 + $0x8] sm:$0xff] %v1102_v60   ;;  %v926_v13 = vadd.f32 %v925_v43, %v861_v12  ;;  %v864_v63 = vadd.f32 %v1230_v11, %v1669_v17 }
 0x12d   :  { %v929_v15 = vadd.f32 %v928_v2, %v864_v63  ;;  %v1231_v16 = vpop.f32.mrb[28].mxu0  ;;  %v944_v19 = vmax.f32 %v926_v13, 0.0 }
 0x12e   :  { %v1232_v18 = vpop.f32.mrb[29].mxu0 }
 0x12f   :  { %v945_v20 = vmax.f32 %v929_v15, 0.0  ;;  %v1233_v21 = vadd.f32 %v1232_v18, %v1231_v16  ;;  %v1234_v22 = vpop.f32.mrb[30].mxu0 }
 0x130   :  { %v1235_v23 = vpop.f32.mrb[31].mxu0 }
 0x131   :  { %v1107_v24 = vpack.c.bf16 %v945_v20, %v944_v19  ;;  %v869_v25 = vadd.f32 %v1233_v21, %v804_v32  ;;  %v1236_v26 = vadd.f32 %v1235_v23, %v1234_v22 }
 0x133   :  { %1115 = vst [vmem:[%s1692_s3 + $0x10] sm:$0xff] %v1107_v24   ;;  %v934_v14 = vadd.f32 %v1265_v58, %v869_v25  ;;  %v872_v27 = vadd.f32 %v1236_v26, %v807_v34 }
 0x135   :  { %v937_v28 = vadd.f32 %v1266_v0, %v872_v27  ;;  %v946_v29 = vmax.f32 %v934_v14, 0.0 }
 0x137   :  { %v947_v17 = vmax.f32 %v937_v28, 0.0 }
 0x139   :  { %v1112_v30 = vpack.c.bf16 %v947_v17, %v946_v29 }
 0x13b   :  { %1116 = vst [vmem:[%s1692_s3 + $0x18] sm:$0xff] %v1112_v30  }

// kernel: resnet_forward.21
= control target key start
LH: loop header
LB: loop body
LE: loop exit
PB: predicated region body
PF: predicated region fallthrough
CT: control target
= control target key end

     0   :  { %v287_v0 = vlaneseq  ;;  %v1588_v1 = vmov 0   ;;  %v1589_v4 = vmov 1983009808   ;;  %vm1253_vm0 = vcmask 523264   ;;  %s2022_s0 = inlined_call_operand.vmem [shape: bf16[64,2,1], index: 0, kind: input, shape index: {}]   ;;  %s2023_s2 = inlined_call_operand.vmem [shape: f32[10,1], index: 2, kind: input, shape index: {}]   ;;  %s2024_s1 = inlined_call_operand.vmem [shape: f32[10,64], index: 1, kind: input, shape index: {}]   ;;  %s2025_s3 = inlined_call_operand.vmem [shape: f32[10,2], index: 3, kind: output, shape index: {}]  }
   0x1   :  { %1431 = vset.pattern.permute.xlu1 %v1588_v1  ;;  %1420 = vset.pattern.permute.xlu0 %v1588_v1  ;;  %v16_v2 = vld [vmem:[%s2022_s0 + $0x2] sm:$0x1]  ;;  %v24_v3 = vld [vmem:[%s2022_s0 + $0xa] sm:$0x1]  ;;  %v285_v5 = vunpack.c.l.s4 %v1589_v4  ;;  %v14_v6 = vld [vmem:[%s2022_s0] sm:$0x1] }
   0x2   :  { %v80_v7 = vunpack.c.l.bf16 %v16_v2  ;;  %v1620_v8 = vshrl.u32 %v287_v0, 7  ;;  %v15_v9 = vld [vmem:[%s2022_s0 + $0x1] sm:$0x1]  ;;  %v17_v10 = vld [vmem:[%s2022_s0 + $0x3] sm:$0x1]  ;;  %v88_v11 = vunpack.c.l.bf16 %v24_v3  ;;  %v78_v13 = vunpack.c.l.bf16 %v14_v6 }
   0x3   :  { %v286_v12 = vunpack.c.0.s8 %v285_v5  ;;  %v79_v14 = vunpack.c.l.bf16 %v15_v9  ;;  %v25_v15 = vld [vmem:[%s2022_s0 + $0xb] sm:$0x1]  ;;  %v22_v16 = vld [vmem:[%s2022_s0 + $0x8] sm:$0x1]  ;;  %v23_v17 = vld [vmem:[%s2022_s0 + $0x9] sm:$0x1]  ;;  %v81_v18 = vunpack.c.l.bf16 %v17_v10 }
   0x4   :  { %v89_v19 = vunpack.c.l.bf16 %v25_v15  ;;  %v86_v20 = vunpack.c.l.bf16 %v22_v16  ;;  %v87_v21 = vunpack.c.l.bf16 %v23_v17  ;;  %v19_v22 = vld [vmem:[%s2022_s0 + $0x5] sm:$0x1]  ;;  %v27_v23 = vld [vmem:[%s2022_s0 + $0xd] sm:$0x1]  ;;  %v18_v24 = vld [vmem:[%s2022_s0 + $0x4] sm:$0x1] }
   0x5   :  { %v1647_v25 = vsub.s32 %v286_v12, %v1620_v8  ;;  %v26_v26 = vld [vmem:[%s2022_s0 + $0xc] sm:$0x1]  ;;  %v83_v27 = vunpack.c.l.bf16 %v19_v22  ;;  %v91_v28 = vunpack.c.l.bf16 %v27_v23  ;;  %v82_v29 = vunpack.c.l.bf16 %v18_v24  ;;  %v38_v31 = vld [vmem:[%s2022_s0 + $0x18] sm:$0x1]  ;;  %v39_v36 = vld [vmem:[%s2022_s0 + $0x19] sm:$0x1] }
   0x6   :  { %v90_v30 = vunpack.c.l.bf16 %v26_v26  ;;  %v30_v41 = vld [vmem:[%s2022_s0 + $0x10] sm:$0x1]  ;;  %v102_v44 = vunpack.c.l.bf16 %v38_v31  ;;  %v31_v45 = vld [vmem:[%s2022_s0 + $0x11] sm:$0x1]  ;;  %v32_v46 = vld [vmem:[%s2022_s0 + $0x12] sm:$0x1]  ;;  %v103_v50 = vunpack.c.l.bf16 %v39_v36 }
   0x7   :  { %v304_v32 = vrot.slane %v80_v7, %v1647_v25  ;;  %v360_v33 = vrot.slane %v88_v11, %v1647_v25  ;;  %v290_v34 = vrot.slane %v78_v13, %v1647_v25  ;;  %v297_v35 = vrot.slane %v79_v14, %v1647_v25  ;;  %v40_v51 = vld [vmem:[%s2022_s0 + $0x1a] sm:$0x1]  ;;  %v20_v52 = vld [vmem:[%s2022_s0 + $0x6] sm:$0x1]  ;;  %v28_v53 = vld [vmem:[%s2022_s0 + $0xe] sm:$0x1] }
   0x8   :  { %v311_v37 = vrot.slane %v81_v18, %v1647_v25  ;;  %v367_v38 = vrot.slane %v89_v19, %v1647_v25  ;;  %v346_v39 = vrot.slane %v86_v20, %v1647_v25  ;;  %v353_v40 = vrot.slane %v87_v21, %v1647_v25  ;;  %v33_v3 = vld [vmem:[%s2022_s0 + $0x13] sm:$0x1]  ;;  %v41_v9 = vld [vmem:[%s2022_s0 + $0x1b] sm:$0x1]  ;;  %v21_v10 = vld [vmem:[%s2022_s0 + $0x7] sm:$0x1] }
   0x9   :  { %v1432_v42 = vpack.i.bf16 %v360_v33, %v304_v32  ;;  %v1421_v43 = vpack.i.bf16 %v297_v35, %v290_v34  ;;  %v325_v48 = vrot.slane %v83_v27, %v1647_v25  ;;  %v381_v49 = vrot.slane %v91_v28, %v1647_v25  ;;  %v29_v11 = vld [vmem:[%s2022_s0 + $0xf] sm:$0x1]  ;;  %v35_v17 = vld [vmem:[%s2022_s0 + $0x15] sm:$0x1]  ;;  %v43_v22 = vld [vmem:[%s2022_s0 + $0x1d] sm:$0x1] }
   0xa   :  { %v1437_v47 = vpack.i.bf16 %v367_v38, %v311_v37  ;;  %v1426_v54 = vpack.i.bf16 %v353_v40, %v346_v39  ;;  %v318_v55 = vrot.slane %v82_v29, %v1647_v25  ;;  %v374_v56 = vrot.slane %v90_v30, %v1647_v25  ;;  %v34_v23 = vld [vmem:[%s2022_s0 + $0x14] sm:$0x1]  ;;  %v42_v24 = vld [vmem:[%s2022_s0 + $0x1c] sm:$0x1]  ;;  %v54_v33 = vld [vmem:[%s2022_s0 + $0x28] sm:$0x1] }
   0xb   :  { %1433 = vperm.xlu1 %1431, %v1432_v42   ;;  %1422 = vperm.xlu0 %1420, %v1421_v43   ;;  %v94_v57 = vunpack.c.l.bf16 %v30_v41  ;;  %v95_v58 = vunpack.c.l.bf16 %v31_v45  ;;  %v96_v59 = vunpack.c.l.bf16 %v32_v46  ;;  %v104_v60 = vunpack.c.l.bf16 %v40_v51  ;;  %v55_v34 = vld [vmem:[%s2022_s0 + $0x29] sm:$0x1]  ;;  %v46_v38 = vld [vmem:[%s2022_s0 + $0x20] sm:$0x1]  ;;  %v47_v39 = vld [vmem:[%s2022_s0 + $0x21] sm:$0x1] }
   0xc   :  { %v84_v61 = vunpack.c.l.bf16 %v20_v52  ;;  %v92_v62 = vunpack.c.l.bf16 %v28_v53  ;;  %v1447_v63 = vpack.i.bf16 %v381_v49, %v325_v48  ;;  %v458_v1 = vrot.slane %v102_v44, %v1647_v25  ;;  %v56_v51 = vld [vmem:[%s2022_s0 + $0x2a] sm:$0x1]  ;;  %v36_v52 = vld [vmem:[%s2022_s0 + $0x16] sm:$0x1]  ;;  %v44_v53 = vld [vmem:[%s2022_s0 + $0x1e] sm:$0x1] }
   0xd   :  { %v465_v2 = vrot.slane %v103_v50, %v1647_v25  ;;  %v1442_v4 = vpack.i.bf16 %v374_v56, %v318_v55  ;;  %v402_v5 = vrot.slane %v94_v57, %v1647_v25  ;;  %v409_v6 = vrot.slane %v95_v58, %v1647_v25  ;;  %v48_v50 = vld [vmem:[%s2022_s0 + $0x22] sm:$0x1] }
   0xe   :  { %v416_v7 = vrot.slane %v96_v59, %v1647_v25  ;;  %v472_v12 = vrot.slane %v104_v60, %v1647_v25  ;;  %v332_v13 = vrot.slane %v84_v61, %v1647_v25  ;;  %v388_v14 = vrot.slane %v92_v62, %v1647_v25  ;;  %v49_v60 = vld [vmem:[%s2022_s0 + $0x23] sm:$0x1]  ;;  %v57_v61 = vld [vmem:[%s2022_s0 + $0x2b] sm:$0x1] }
   0xf   :  { %1438 = vperm.xlu1 %1431, %v1437_v47   ;;  %1427 = vperm.xlu0 %1420, %v1426_v54   ;;  %v97_v15 = vunpack.c.l.bf16 %v33_v3  ;;  %v1457_v16 = vpack.i.bf16 %v465_v2, %v458_v1  ;;  %v1452_v18 = vpack.i.bf16 %v409_v6, %v402_v5  ;;  %v105_v19 = vunpack.c.l.bf16 %v41_v9  ;;  %v37_v3 = vld [vmem:[%s2022_s0 + $0x17] sm:$0x1] }
  0x10   :  { %v85_v20 = vunpack.c.l.bf16 %v21_v10  ;;  %v93_v21 = vunpack.c.l.bf16 %v29_v11  ;;  %v1467_v26 = vpack.i.bf16 %v472_v12, %v416_v7  ;;  %v1462_v27 = vpack.i.bf16 %v388_v14, %v332_v13  ;;  %v51_v12 = vld [vmem:[%s2022_s0 + $0x25] sm:$0x1] }
  0x11   :  { %v423_v28 = vrot.slane %v97_v15, %v1647_v25  ;;  %v99_v29 = vunpack.c.l.bf16 %v35_v17  ;;  %v107_v30 = vunpack.c.l.bf16 %v43_v22  ;;  %v98_v31 = vunpack.c.l.bf16 %v34_v23  ;;  %v59_v17 = vld [vmem:[%s2022_s0 + $0x2d] sm:$0x1] }
  0x12   :  { %v106_v32 = vunpack.c.l.bf16 %v42_v24  ;;  %v479_v35 = vrot.slane %v105_v19, %v1647_v25  ;;  %v339_v36 = vrot.slane %v85_v20, %v1647_v25  ;;  %v395_v37 = vrot.slane %v93_v21, %v1647_v25  ;;  %v58_v19 = vld [vmem:[%s2022_s0 + $0x2c] sm:$0x1] }
  0x13   :  { %1448 = vperm.xlu1 %1431, %v1447_v63   ;;  %1443 = vperm.xlu0 %1420, %v1442_v4   ;;  %v118_v40 = vunpack.c.l.bf16 %v54_v33  ;;  %v119_v41 = vunpack.c.l.bf16 %v55_v34  ;;  %v437_v42 = vrot.slane %v99_v29, %v1647_v25  ;;  %v493_v43 = vrot.slane %v107_v30, %v1647_v25  ;;  %v45_v4 = vld [vmem:[%s2022_s0 + $0x1f] sm:$0x1]  ;;  %v62_v33 = vld [vmem:[%s2022_s0 + $0x30] sm:$0x1]  ;;  %v63_v34 = vld [vmem:[%s2022_s0 + $0x31] sm:$0x1] }
  0x14   :  { %v430_v44 = vrot.slane %v98_v31, %v1647_v25  ;;  %v486_v45 = vrot.slane %v106_v32, %v1647_v25  ;;  %v1477_v46 = vpack.i.bf16 %v479_v35, %v423_v28  ;;  %v1472_v47 = vpack.i.bf16 %v395_v37, %v339_v36  ;;  %v71_v28 = vld [vmem:[%s2022_s0 + $0x39] sm:$0x1] }
  0x15   :  { %v110_v48 = vunpack.c.l.bf16 %v46_v38  ;;  %v111_v49 = vunpack.c.l.bf16 %v47_v39  ;;  %v570_v54 = vrot.slane %v118_v40, %v1647_v25  ;;  %v577_v55 = vrot.slane %v119_v41, %v1647_v25 }
  0x16   :  { %v1487_v56 = vpack.i.bf16 %v493_v43, %v437_v42  ;;  %v1482_v57 = vpack.i.bf16 %v486_v45, %v430_v44  ;;  %v112_v58 = vunpack.c.l.bf16 %v48_v50  ;;  %v120_v59 = vunpack.c.l.bf16 %v56_v51 }
  0x17   :  { %1458 = vperm.xlu1 %1431, %v1457_v16   ;;  %1453 = vperm.xlu0 %1420, %v1452_v18   ;;  %v514_v62 = vrot.slane %v110_v48, %v1647_v25  ;;  %v521_v63 = vrot.slane %v111_v49, %v1647_v25  ;;  %v100_v1 = vunpack.c.l.bf16 %v36_v52  ;;  %v108_v2 = vunpack.c.l.bf16 %v44_v53  ;;  %v50_v18 = vld [vmem:[%s2022_s0 + $0x24] sm:$0x1]  ;;  %v52_v48 = vld [vmem:[%s2022_s0 + $0x26] sm:$0x1] }
  0x18   :  { %v113_v5 = vunpack.c.l.bf16 %v49_v60  ;;  %v121_v6 = vunpack.c.l.bf16 %v57_v61  ;;  %v1497_v7 = vpack.i.bf16 %v577_v55, %v570_v54  ;;  %v528_v9 = vrot.slane %v112_v58, %v1647_v25  ;;  %v53_v61 = vld [vmem:[%s2022_s0 + $0x27] sm:$0x1] }
  0x19   :  { %v584_v10 = vrot.slane %v120_v59, %v1647_v25  ;;  %v101_v11 = vunpack.c.l.bf16 %v37_v3  ;;  %v1492_v13 = vpack.i.bf16 %v521_v63, %v514_v62  ;;  %v444_v14 = vrot.slane %v100_v1, %v1647_v25  ;;  %v61_v62 = vld [vmem:[%s2022_s0 + $0x2f] sm:$0x1] }
  0x1a   :  { %v500_v15 = vrot.slane %v108_v2, %v1647_v25  ;;  %v109_v16 = vunpack.c.l.bf16 %v45_v4  ;;  %v535_v20 = vrot.slane %v113_v5, %v1647_v25  ;;  %v591_v21 = vrot.slane %v121_v6, %v1647_v25  ;;  %v67_v6 = vld [vmem:[%s2022_s0 + $0x35] sm:$0x1] }
  0x1b   :  { %1468 = vperm.xlu1 %1431, %v1467_v26   ;;  %1463 = vperm.xlu0 %1420, %v1462_v27   ;;  %v115_v22 = vunpack.c.l.bf16 %v51_v12  ;;  %v1507_v23 = vpack.i.bf16 %v584_v10, %v528_v9  ;;  %v451_v24 = vrot.slane %v101_v11, %v1647_v25  ;;  %v123_v26 = vunpack.c.l.bf16 %v59_v17  ;;  %v70_v27 = vld [vmem:[%s2022_s0 + $0x38] sm:$0x1]  ;;  %v75_v12 = vld [vmem:[%s2022_s0 + $0x3d] sm:$0x1] }
  0x1c   :  { %v1502_v29 = vpack.i.bf16 %v500_v15, %v444_v14  ;;  %v507_v30 = vrot.slane %v109_v16, %v1647_v25  ;;  %v114_v31 = vunpack.c.l.bf16 %v50_v18  ;;  %v122_v32 = vunpack.c.l.bf16 %v58_v19  ;;  %v74_v14 = vld [vmem:[%s2022_s0 + $0x3c] sm:$0x1] }
  0x1d   :  { %v1517_v35 = vpack.i.bf16 %v591_v21, %v535_v20  ;;  %v549_v36 = vrot.slane %v115_v22, %v1647_v25  ;;  %v134_v37 = vunpack.c.l.bf16 %v70_v27  ;;  %v135_v38 = vunpack.c.l.bf16 %v71_v28  ;;  %v77_v27 = vld [vmem:[%s2022_s0 + $0x3f] sm:$0x1]  ;;  %v68_v28 = vld [vmem:[%s2022_s0 + $0x36] sm:$0x1] }
  0x1e   :  { %v605_v39 = vrot.slane %v123_v26, %v1647_v25  ;;  %v126_v40 = vunpack.c.l.bf16 %v62_v33  ;;  %v127_v41 = vunpack.c.l.bf16 %v63_v34  ;;  %v925_v42 = vand.u32 127, %v287_v0  ;;  %v60_v0 = vld [vmem:[%s2022_s0 + $0x2e] sm:$0x1]  ;;  %v69_v26 = vld [vmem:[%s2022_s0 + $0x37] sm:$0x1] }
  0x1f   :  { %1478 = vperm.xlu1 %1431, %v1477_v46   ;;  %1473 = vperm.xlu0 %1420, %v1472_v47   ;;  %v1512_v43 = vpack.i.bf16 %v507_v30, %v451_v24  ;;  %v542_v44 = vrot.slane %v114_v31, %v1647_v25  ;;  %v598_v45 = vrot.slane %v122_v32, %v1647_v25  ;;  %v64_v46 = vld [vmem:[%s2022_s0 + $0x32] sm:$0x1]  ;;  %v72_v47 = vld [vmem:[%s2022_s0 + $0x3a] sm:$0x1]  ;;  %v116_v59 = vunpack.c.l.bf16 %v52_v48  ;;  %v209_v48 = vld [vmem:[%s2023_s2 + $0x8] sm:$0x3] }
  0x20   :  { %v1818_v49 = vsub.s32 %v925_v42, %v1620_v8  ;;  %v682_v50 = vrot.slane %v134_v37, %v1647_v25  ;;  %v689_v51 = vrot.slane %v135_v38, %v1647_v25  ;;  %v626_v52 = vrot.slane %v126_v40, %v1647_v25 }
  0x21   :  { %v633_v53 = vrot.slane %v127_v41, %v1647_v25  ;;  %v128_v54 = vunpack.c.l.bf16 %v64_v46  ;;  %v136_v55 = vunpack.c.l.bf16 %v72_v47  ;;  %v1527_v8 = vpack.i.bf16 %v605_v39, %v549_v36 }
  0x22   :  { %v1522_v58 = vpack.i.bf16 %v598_v45, %v542_v44  ;;  %v124_v60 = vunpack.c.l.bf16 %v60_v0  ;;  %v1537_v2 = vpack.i.bf16 %v689_v51, %v682_v50  ;;  %v117_v10 = vunpack.c.l.bf16 %v53_v61  ;;  %v208_v0 = vld [vmem:[%s2023_s2] sm:$0xff] }
  0x23   :  { %1488 = vperm.xlu1 %1431, %v1487_v56   ;;  %1483 = vperm.xlu0 %1420, %v1482_v57   ;;  %v65_v56 = vld [vmem:[%s2022_s0 + $0x33] sm:$0x1]  ;;  %v73_v57 = vld [vmem:[%s2022_s0 + $0x3b] sm:$0x1]  ;;  %v1532_v3 = vpack.i.bf16 %v633_v53, %v626_v52  ;;  %v640_v4 = vrot.slane %v128_v54, %v1647_v25  ;;  %v696_v5 = vrot.slane %v136_v55, %v1647_v25  ;;  %v125_v11 = vunpack.c.l.bf16 %v61_v62 }
  0x24   :  { %v129_v63 = vunpack.c.l.bf16 %v65_v56  ;;  %v137_v1 = vunpack.c.l.bf16 %v73_v57  ;;  %v612_v9 = vrot.slane %v124_v60, %v1647_v25  ;;  %v131_v17 = vunpack.c.l.bf16 %v67_v6 }
  0x25   :  { %v1547_v18 = vpack.i.bf16 %v696_v5, %v640_v4  ;;  %v139_v19 = vunpack.c.l.bf16 %v75_v12  ;;  %v138_v21 = vunpack.c.l.bf16 %v74_v14  ;;  %v619_v24 = vrot.slane %v125_v11, %v1647_v25 }
  0x26   :  { %v647_v15 = vrot.slane %v129_v63, %v1647_v25  ;;  %v703_v16 = vrot.slane %v137_v1, %v1647_v25  ;;  %v661_v31 = vrot.slane %v131_v17, %v1647_v25  ;;  %v141_v37 = vunpack.c.l.bf16 %v77_v27 }
  0x27   :  { %1498 = vperm.xlu1 %1431, %v1497_v7   ;;  %1493 = vperm.xlu0 %1420, %v1492_v13   ;;  %v556_v7 = vrot.slane %v116_v59, %v1647_v25  ;;  %v66_v13 = vld [vmem:[%s2022_s0 + $0x34] sm:$0x1]  ;;  %v717_v32 = vrot.slane %v139_v19, %v1647_v25  ;;  %v710_v34 = vrot.slane %v138_v21, %v1647_v25  ;;  %v132_v38 = vunpack.c.l.bf16 %v68_v28 }
  0x28   :  { %v130_v20 = vunpack.c.l.bf16 %v66_v13  ;;  %v1557_v30 = vpack.i.bf16 %v703_v16, %v647_v15  ;;  %vm1182_vm1 = vcmask 1041409   ;;  %vm1184_vm2 = vcmask 1042434  }
  0x29   :  { %v1542_v22 = vpack.i.bf16 %v612_v9, %v556_v7  ;;  %v1567_v40 = vpack.i.bf16 %v717_v32, %v661_v31  ;;  %v668_v44 = vrot.slane %v132_v38, %v1647_v25  ;;  %vm1186_vm3 = vcmask 1043459  }
  0x2a   :  { %v654_v33 = vrot.slane %v130_v20, %v1647_v25  ;;  %vm1188_vm4 = vcmask 1044484   ;;  %vm1190_vm5 = vcmask 1045509   ;;  %vm1192_vm6 = vcmask 1046534  }
  0x2b   :  { %1508 = vperm.xlu1 %1431, %v1507_v23   ;;  %1503 = vperm.xlu0 %1420, %v1502_v29   ;;  %v563_v23 = vrot.slane %v117_v10, %v1647_v25  ;;  %v76_v29 = vld [vmem:[%s2022_s0 + $0x3e] sm:$0x1]  ;;  %vm1194_vm7 = vcmask 1047559   ;;  %vm1337_vm8 = vcmask 9216   ;;  %vm1335_vm9 = vcmask 15360  }
  0x2c   :  { %v140_v39 = vunpack.c.l.bf16 %v76_v29  ;;  %v1562_v41 = vpack.i.bf16 %v710_v34, %v654_v33 }
  0x2d   :  { %v1552_v36 = vpack.i.bf16 %v619_v24, %v563_v23 }
  0x2e   :  { %v724_v45 = vrot.slane %v140_v39, %v1647_v25 }
  0x2f   :  { %1518 = vperm.xlu1 %1431, %v1517_v35   ;;  %1513 = vperm.xlu0 %1420, %v1512_v43   ;;  %v133_v35 = vunpack.c.l.bf16 %v69_v26  ;;  %v731_v43 = vrot.slane %v141_v37, %v1647_v25 }
  0x30   :  { %v1572_v47 = vpack.i.bf16 %v724_v45, %v668_v44 }
  0x31   :  { %v675_v42 = vrot.slane %v133_v35, %v1647_v25  ;;  %v206_v25 = vld [vmem:[%s2024_s1] sm:$0xff] }
  0x32   :  { %1399 = vmatprep.mubr.msk.f32.mxu0 %vm1253_vm0, %v206_v25 }
  0x33   :  { %1528 = vperm.xlu1 %1431, %v1527_v8   ;;  %1523 = vperm.xlu0 %1420, %v1522_v58   ;;  %v1577_v46 = vpack.i.bf16 %v731_v43, %v675_v42 }
  0x37   :  { %1538 = vperm.xlu1 %1431, %v1537_v2   ;;  %1533 = vperm.xlu0 %1420, %v1532_v3  }
  0x3b   :  { %1548 = vperm.xlu1 %1431, %v1547_v18   ;;  %1543 = vperm.xlu0 %1420, %v1542_v22  }
  0x3f   :  { %1558 = vperm.xlu1 %1431, %v1557_v30   ;;  %1553 = vperm.xlu0 %1420, %v1552_v36  }
  0x43   :  { %1568 = vperm.xlu1 %1431, %v1567_v40   ;;  %1563 = vperm.xlu0 %1420, %v1562_v41  }
  0x47   :  { %1578 = vperm.xlu1 %1431, %v1577_v46   ;;  %1573 = vperm.xlu0 %1420, %v1572_v47  }
  0x4b   :  { %217 = vperm.xlu1 %1431, %v209_v48   ;;  %212 = vperm.xlu0 %1420, %v208_v0  }
  0x8a   :  { %v1434_v50 = vpop.permute.xlu1 %1433  ;;  %v1423_v51 = vpop.permute.xlu0 %1422 }
  0x8b   :  { %v1425_v55 = vunpack.i.h.bf16 %v1423_v51  ;;  %v1424_v56 = vunpack.i.l.bf16 %v1423_v51  ;;  %v1436_v58 = vunpack.i.h.bf16 %v1434_v50  ;;  %v1435_v62 = vunpack.i.l.bf16 %v1434_v50 }
  0x8d   :  { %v933_v63 = vrot.slane %v1425_v55, %v1818_v49  ;;  %v929_v1 = vrot.slane %v1424_v56, %v1818_v49  ;;  %v969_v5 = vrot.slane %v1436_v58, %v1818_v49  ;;  %v937_v11 = vrot.slane %v1435_v62, %v1818_v49 }
  0x8e   :  { %v1439_v52 = vpop.permute.xlu1 %1438  ;;  %v1428_v53 = vpop.permute.xlu0 %1427 }
  0x8f   :  { %v1430_v54 = vunpack.i.h.bf16 %v1428_v53  ;;  %v1429_v57 = vunpack.i.l.bf16 %v1428_v53  ;;  %v1441_v2 = vunpack.i.h.bf16 %v1439_v52  ;;  %v1440_v3 = vunpack.i.l.bf16 %v1439_v52 }
  0x90   :  { %v1183_v12 = vsel %vm1182_vm1, %v933_v63, %v929_v1 }
  0x91   :  { %v965_v8 = vrot.slane %v1430_v54, %v1818_v49  ;;  %v961_v59 = vrot.slane %v1429_v57, %v1818_v49  ;;  %v973_v14 = vrot.slane %v1441_v2, %v1818_v49  ;;  %v941_v15 = vrot.slane %v1440_v3, %v1818_v49 }
  0x92   :  { %v1449_v60 = vpop.permute.xlu1 %1448  ;;  %v1444_v61 = vpop.permute.xlu0 %1443  ;;  %v1185_v24 = vsel %vm1184_vm2, %v937_v11, %v1183_v12 }
  0x93   :  { %v1196_v4 = vsel %vm1182_vm1, %v965_v8, %v961_v59  ;;  %v1446_v6 = vunpack.i.h.bf16 %v1444_v61  ;;  %v1445_v7 = vunpack.i.l.bf16 %v1444_v61  ;;  %v1451_v16 = vunpack.i.h.bf16 %v1449_v60 }
  0x94   :  { %v1197_v13 = vsel %vm1184_vm2, %v969_v5, %v1196_v4  ;;  %v1450_v17 = vunpack.i.l.bf16 %v1449_v60  ;;  %v1187_v27 = vsel %vm1186_vm3, %v941_v15, %v1185_v24 }
  0x95   :  { %v977_v18 = vrot.slane %v1446_v6, %v1818_v49  ;;  %v945_v19 = vrot.slane %v1445_v7, %v1818_v49  ;;  %v1198_v22 = vsel %vm1186_vm3, %v973_v14, %v1197_v13  ;;  %v981_v28 = vrot.slane %v1451_v16, %v1818_v49 }
  0x96   :  { %v1459_v9 = vpop.permute.xlu1 %1458  ;;  %v1454_v10 = vpop.permute.xlu0 %1453  ;;  %v949_v29 = vrot.slane %v1450_v17, %v1818_v49 }
  0x97   :  { %v1189_v30 = vsel %vm1188_vm4, %v945_v19, %v1187_v27  ;;  %v1199_v31 = vsel %vm1188_vm4, %v977_v18, %v1198_v22  ;;  %v1461_v36 = vunpack.i.h.bf16 %v1459_v9  ;;  %v1460_v37 = vunpack.i.l.bf16 %v1459_v9 }
  0x98   :  { %v1456_v40 = vunpack.i.h.bf16 %v1454_v10  ;;  %v1455_v41 = vunpack.i.l.bf16 %v1454_v10  ;;  %v1191_v42 = vsel %vm1190_vm5, %v949_v29, %v1189_v30  ;;  %v1200_v43 = vsel %vm1190_vm5, %v981_v28, %v1199_v31 }
  0x99   :  { %v1029_v53 = vrot.slane %v1461_v36, %v1818_v49  ;;  %v1025_v56 = vrot.slane %v1460_v37, %v1818_v49 }
  0x9a   :  { %v1469_v20 = vpop.permute.xlu1 %1468  ;;  %v1464_v21 = vpop.permute.xlu0 %1463  ;;  %v997_v57 = vrot.slane %v1456_v40, %v1818_v49  ;;  %v993_v8 = vrot.slane %v1455_v41, %v1818_v49 }
  0x9b   :  { %v1466_v23 = vunpack.i.h.bf16 %v1464_v21  ;;  %v1465_v26 = vunpack.i.l.bf16 %v1464_v21  ;;  %v1471_v44 = vunpack.i.h.bf16 %v1469_v20  ;;  %v1470_v45 = vunpack.i.l.bf16 %v1469_v20 }
  0x9c   :  { %v1210_v4 = vsel %vm1182_vm1, %v1029_v53, %v1025_v56  ;;  %v1203_v5 = vsel %vm1182_vm1, %v997_v57, %v993_v8 }
  0x9d   :  { %v985_v34 = vrot.slane %v1466_v23, %v1818_v49  ;;  %v953_v35 = vrot.slane %v1465_v26, %v1818_v49  ;;  %v1033_v59 = vrot.slane %v1471_v44, %v1818_v49  ;;  %v1001_v60 = vrot.slane %v1470_v45, %v1818_v49 }
  0x9e   :  { %v1479_v32 = vpop.permute.xlu1 %1478  ;;  %v1474_v33 = vpop.permute.xlu0 %1473 }
  0x9f   :  { %v1476_v38 = vunpack.i.h.bf16 %v1474_v33  ;;  %v1475_v39 = vunpack.i.l.bf16 %v1474_v33  ;;  %v1481_v25 = vunpack.i.h.bf16 %v1479_v32  ;;  %v1480_v50 = vunpack.i.l.bf16 %v1479_v32 }
  0xa0   :  { %v1193_v51 = vsel %vm1192_vm6, %v953_v35, %v1191_v42  ;;  %v1201_v52 = vsel %vm1192_vm6, %v985_v34, %v1200_v43  ;;  %v1204_v9 = vsel %vm1184_vm2, %v1001_v60, %v1203_v5  ;;  %v1211_v10 = vsel %vm1184_vm2, %v1033_v59, %v1210_v4 }
  0xa1   :  { %v989_v46 = vrot.slane %v1476_v38, %v1818_v49  ;;  %v957_v47 = vrot.slane %v1475_v39, %v1818_v49  ;;  %v1037_v2 = vrot.slane %v1481_v25, %v1818_v49  ;;  %v1005_v3 = vrot.slane %v1480_v50, %v1818_v49 }
  0xa2   :  { %v1489_v48 = vpop.permute.xlu1 %1488  ;;  %v1484_v0 = vpop.permute.xlu0 %1483 }
  0xa3   :  { %v1195_v54 = vsel %vm1194_vm7, %v957_v47, %v1193_v51  ;;  %v1202_v55 = vsel %vm1194_vm7, %v989_v46, %v1201_v52  ;;  %v1486_v61 = vunpack.i.h.bf16 %v1484_v0  ;;  %v1485_v62 = vunpack.i.l.bf16 %v1484_v0 }
  0xa4   :  { %v1402_v58 = vpack.c.bf16 %v1202_v55, %v1195_v54  ;;  %v1491_v6 = vunpack.i.h.bf16 %v1489_v48  ;;  %v1490_v7 = vunpack.i.l.bf16 %v1489_v48  ;;  %v1205_v15 = vsel %vm1186_vm3, %v1005_v3, %v1204_v9 }
  0xa5   :  { %v1041_v11 = vrot.slane %v1486_v61, %v1818_v49  ;;  %v1009_v12 = vrot.slane %v1485_v62, %v1818_v49  ;;  %v1212_v16 = vsel %vm1186_vm3, %v1037_v2, %v1211_v10 }
  0xa6   :  { %v1499_v63 = vpop.permute.xlu1 %1498  ;;  %v1494_v1 = vpop.permute.xlu0 %1493  ;;  %1403 = vmatprep.subr.bf16.mxu0 %v1402_v58  ;;  %v1045_v21 = vrot.slane %v1491_v6, %v1818_v49  ;;  %v1013_v22 = vrot.slane %v1490_v7, %v1818_v49 }
  0xa7   :  { %1405 = vmatpush3.bf16.msra.mxu0 %v1402_v58  ;;  %v1501_v17 = vunpack.i.h.bf16 %v1499_v63  ;;  %v1500_v18 = vunpack.i.l.bf16 %v1499_v63  ;;  %v1496_v23 = vunpack.i.h.bf16 %v1494_v1  ;;  %v1495_v24 = vunpack.i.l.bf16 %v1494_v1 }
  0xa8   :  { %v1213_v26 = vsel %vm1188_vm4, %v1041_v11, %v1212_v16  ;;  %v1206_v27 = vsel %vm1188_vm4, %v1009_v12, %v1205_v15 }
  0xa9   :  { %v1093_v34 = vrot.slane %v1501_v17, %v1818_v49  ;;  %v1089_v35 = vrot.slane %v1500_v18, %v1818_v49  ;;  %v1061_v38 = vrot.slane %v1496_v23, %v1818_v49  ;;  %v1057_v39 = vrot.slane %v1495_v24, %v1818_v49 }
  0xaa   :  { %v1509_v13 = vpop.permute.xlu1 %1508  ;;  %v1504_v14 = vpop.permute.xlu0 %1503  ;;  %v1207_v40 = vsel %vm1190_vm5, %v1013_v22, %v1206_v27  ;;  %v1214_v41 = vsel %vm1190_vm5, %v1045_v21, %v1213_v26 }
  0xab   :  { %v1506_v19 = vunpack.i.h.bf16 %v1504_v14  ;;  %v1505_v20 = vunpack.i.l.bf16 %v1504_v14  ;;  %v1511_v30 = vunpack.i.h.bf16 %v1509_v13  ;;  %v1510_v31 = vunpack.i.l.bf16 %v1509_v13 }
  0xac   :  { %v1224_v59 = vsel %vm1182_vm1, %v1093_v34, %v1089_v35  ;;  %v1217_v60 = vsel %vm1182_vm1, %v1061_v38, %v1057_v39 }
  0xad   :  { %v1049_v32 = vrot.slane %v1506_v19, %v1818_v49  ;;  %v1017_v33 = vrot.slane %v1505_v20, %v1818_v49  ;;  %v1097_v48 = vrot.slane %v1511_v30, %v1818_v49  ;;  %v1065_v0 = vrot.slane %v1510_v31, %v1818_v49 }
  0xae   :  { %v1519_v28 = vpop.permute.xlu1 %1518  ;;  %v1514_v29 = vpop.permute.xlu0 %1513 }
  0xaf   :  { %v1516_v36 = vunpack.i.h.bf16 %v1514_v29  ;;  %v1515_v37 = vunpack.i.l.bf16 %v1514_v29  ;;  %v1521_v42 = vunpack.i.h.bf16 %v1519_v28  ;;  %v1520_v43 = vunpack.i.l.bf16 %v1519_v28 }
  0xb0   :  { %v1208_v25 = vsel %vm1192_vm6, %v1017_v33, %v1207_v40  ;;  %v1215_v50 = vsel %vm1192_vm6, %v1049_v32, %v1214_v41  ;;  %v1218_v63 = vsel %vm1184_vm2, %v1065_v0, %v1217_v60  ;;  %v1225_v1 = vsel %vm1184_vm2, %v1097_v48, %v1224_v59 }
  0xb1   :  { %v1053_v44 = vrot.slane %v1516_v36, %v1818_v49  ;;  %v1021_v45 = vrot.slane %v1515_v37, %v1818_v49  ;;  %v1101_v56 = vrot.slane %v1521_v42, %v1818_v49  ;;  %v1069_v57 = vrot.slane %v1520_v43, %v1818_v49 }
  0xb2   :  { %v1529_v46 = vpop.permute.xlu1 %1528  ;;  %v1524_v47 = vpop.permute.xlu0 %1523 }
  0xb3   :  { %v1526_v51 = vunpack.i.h.bf16 %v1524_v47  ;;  %v1525_v52 = vunpack.i.l.bf16 %v1524_v47  ;;  %v1209_v53 = vsel %vm1194_vm7, %v1021_v45, %v1208_v25  ;;  %v1216_v54 = vsel %vm1194_vm7, %v1053_v44, %v1215_v50 }
  0xb4   :  { %v1406_v55 = vpack.c.bf16 %v1216_v54, %v1209_v53  ;;  %v1531_v61 = vunpack.i.h.bf16 %v1529_v46  ;;  %v1530_v62 = vunpack.i.l.bf16 %v1529_v46  ;;  %v1219_v9 = vsel %vm1186_vm3, %v1069_v57, %v1218_v63 }
  0xb5   :  { %v1105_v2 = vrot.slane %v1526_v51, %v1818_v49  ;;  %v1073_v3 = vrot.slane %v1525_v52, %v1818_v49  ;;  %v1226_v10 = vsel %vm1186_vm3, %v1101_v56, %v1225_v1 }
  0xb6   :  { %v1539_v8 = vpop.permute.xlu1 %1538  ;;  %v1534_v58 = vpop.permute.xlu0 %1533  ;;  %1407 = vmatprep.subr.bf16.mxu0 %v1406_v55  ;;  %v1109_v13 = vrot.slane %v1531_v61, %v1818_v49  ;;  %v1077_v14 = vrot.slane %v1530_v62, %v1818_v49 }
  0xb7   :  { %1409 = vmatpush3.bf16.msra.mxu0 %v1406_v55  ;;  %v1541_v4 = vunpack.i.h.bf16 %v1539_v8  ;;  %v1540_v5 = vunpack.i.l.bf16 %v1539_v8  ;;  %v1536_v6 = vunpack.i.h.bf16 %v1534_v58  ;;  %v1535_v7 = vunpack.i.l.bf16 %v1534_v58 }
  0xb8   :  { %v1227_v17 = vsel %vm1188_vm4, %v1105_v2, %v1226_v10  ;;  %v1220_v18 = vsel %vm1188_vm4, %v1073_v3, %v1219_v9 }
  0xb9   :  { %v1157_v21 = vrot.slane %v1541_v4, %v1818_v49  ;;  %v1153_v22 = vrot.slane %v1540_v5, %v1818_v49  ;;  %v1125_v23 = vrot.slane %v1536_v6, %v1818_v49  ;;  %v1121_v24 = vrot.slane %v1535_v7, %v1818_v49 }
  0xba   :  { %v1549_v11 = vpop.permute.xlu1 %1548  ;;  %v1544_v12 = vpop.permute.xlu0 %1543  ;;  %v1221_v36 = vsel %vm1190_vm5, %v1077_v14, %v1220_v18  ;;  %v1228_v37 = vsel %vm1190_vm5, %v1109_v13, %v1227_v17  ;;  %v207_v18 = vld [vmem:[%s2024_s1 + $0x8] sm:$0x3] }
  0xbb   :  { %v1551_v15 = vunpack.i.h.bf16 %v1549_v11  ;;  %v1550_v16 = vunpack.i.l.bf16 %v1549_v11  ;;  %v1546_v19 = vunpack.i.h.bf16 %v1544_v12  ;;  %v1545_v20 = vunpack.i.l.bf16 %v1544_v12 }
  0xbc   :  { %v1238_v38 = vsel %vm1182_vm1, %v1157_v21, %v1153_v22  ;;  %v1231_v39 = vsel %vm1182_vm1, %v1125_v23, %v1121_v24 }
  0xbd   :  { %v1161_v26 = vrot.slane %v1551_v15, %v1818_v49  ;;  %v1129_v27 = vrot.slane %v1550_v16, %v1818_v49  ;;  %v1113_v30 = vrot.slane %v1546_v19, %v1818_v49  ;;  %v1081_v31 = vrot.slane %v1545_v20, %v1818_v49 }
  0xbe   :  { %v1559_v28 = vpop.permute.xlu1 %1558  ;;  %v1554_v29 = vpop.permute.xlu0 %1553 }
  0xbf   :  { %v1561_v32 = vunpack.i.h.bf16 %v1559_v28  ;;  %v1560_v33 = vunpack.i.l.bf16 %v1559_v28  ;;  %v1556_v34 = vunpack.i.h.bf16 %v1554_v29  ;;  %v1555_v35 = vunpack.i.l.bf16 %v1554_v29 }
  0xc0   :  { %v1232_v42 = vsel %vm1184_vm2, %v1129_v27, %v1231_v39  ;;  %v1239_v43 = vsel %vm1184_vm2, %v1161_v26, %v1238_v38  ;;  %v1222_v25 = vsel %vm1192_vm6, %v1081_v31, %v1221_v36  ;;  %v1229_v50 = vsel %vm1192_vm6, %v1113_v30, %v1228_v37 }
  0xc1   :  { %v1165_v40 = vrot.slane %v1561_v32, %v1818_v49  ;;  %v1133_v41 = vrot.slane %v1560_v33, %v1818_v49  ;;  %v1117_v44 = vrot.slane %v1556_v34, %v1818_v49  ;;  %v1085_v45 = vrot.slane %v1555_v35, %v1818_v49 }
  0xc2   :  { %v1569_v46 = vpop.permute.xlu1 %1568  ;;  %v1564_v47 = vpop.permute.xlu0 %1563 }
  0xc3   :  { %v1571_v48 = vunpack.i.h.bf16 %v1569_v46  ;;  %v1570_v0 = vunpack.i.l.bf16 %v1569_v46  ;;  %v1566_v51 = vunpack.i.h.bf16 %v1564_v47  ;;  %v1565_v52 = vunpack.i.l.bf16 %v1564_v47 }
  0xc4   :  { %v1223_v53 = vsel %vm1194_vm7, %v1085_v45, %v1222_v25  ;;  %v1230_v54 = vsel %vm1194_vm7, %v1117_v44, %v1229_v50  ;;  %v1233_v55 = vsel %vm1186_vm3, %v1133_v41, %v1232_v42  ;;  %v1240_v56 = vsel %vm1186_vm3, %v1165_v40, %v1239_v43 }
  0xc5   :  { %v1410_v57 = vpack.c.bf16 %v1230_v54, %v1223_v53  ;;  %v1173_v8 = vrot.slane %v1571_v48, %v1818_v49  ;;  %v1141_v58 = vrot.slane %v1570_v0, %v1818_v49  ;;  %v1169_v59 = vrot.slane %v1566_v51, %v1818_v49 }
  0xc6   :  { %v1137_v60 = vrot.slane %v1565_v52, %v1818_v49  ;;  %v1579_v61 = vpop.permute.xlu1 %1578  ;;  %v1574_v62 = vpop.permute.xlu0 %1573 }
  0xc7   :  { %v1581_v63 = vunpack.i.h.bf16 %v1579_v61  ;;  %v1580_v1 = vunpack.i.l.bf16 %v1579_v61  ;;  %v1576_v2 = vunpack.i.h.bf16 %v1574_v62  ;;  %v1575_v3 = vunpack.i.l.bf16 %v1574_v62  ;;  %1411 = vmatprep.subr.bf16.mxu0 %v1410_v57 }
  0xc8   :  { %v1241_v4 = vsel %vm1188_vm4, %v1169_v59, %v1240_v56  ;;  %v1234_v5 = vsel %vm1188_vm4, %v1137_v60, %v1233_v55  ;;  %1413 = vmatpush3.bf16.msra.mxu0 %v1410_v57 }
  0xc9   :  { %v1181_v6 = vrot.slane %v1581_v63, %v1818_v49  ;;  %v1149_v7 = vrot.slane %v1580_v1, %v1818_v49  ;;  %v1177_v9 = vrot.slane %v1576_v2, %v1818_v49  ;;  %v1145_v10 = vrot.slane %v1575_v3, %v1818_v49 }
  0xca   :  { %v1235_v11 = vsel %vm1190_vm5, %v1141_v58, %v1234_v5  ;;  %v1242_v12 = vsel %vm1190_vm5, %v1173_v8, %v1241_v4  ;;  %v218_v49 = vpop.permute.xlu1 %217  ;;  %v213_v20 = vpop.permute.xlu0 %212 }
  0xcb   :  { %v1236_v13 = vsel %vm1192_vm6, %v1145_v10, %v1235_v11  ;;  %v1243_v14 = vsel %vm1192_vm6, %v1177_v9, %v1242_v12 }
  0xcc   :  { %v1237_v15 = vsel %vm1194_vm7, %v1149_v7, %v1236_v13  ;;  %v1244_v16 = vsel %vm1194_vm7, %v1181_v6, %v1243_v14 }
  0xcd   :  { %v1414_v17 = vpack.c.bf16 %v1244_v16, %v1237_v15 }
  0xcf   :  { %1415 = vmatprep.subr.bf16.mxu0 %v1414_v17 }
  0xd0   :  { %1417 = vmatpush3.bf16.msra.mxu0 %v1414_v17 }
  0xd3   :  { %1400 = vmatmul.mubr.msk.f32.vlgmr.msra.gmra.mrb[0].mxu0 %vm1253_vm0, %v207_v18 }
 0x1a6   :  { %v1401_v19 = vpop.f32.mrb[0].mxu0 }
 0x1a7   :  { %v1332_v21 = vadd.f32 %v1401_v19, %v218_v49  ;;  %v1326_v22 = vpop.f32.mrb[1].mxu0 }
 0x1a8   :  { %v1327_v23 = vadd.f32 %v1326_v22, %v213_v20 }
 0x1a9   :  { %v1338_v24 = vsel %vm1337_vm8, %v1332_v21, -inf }
 0x1aa   :  { %v1336_v26 = vsel %vm1335_vm9, %v1327_v23, -inf }
 0x1ab   :  { %v1339_v27 = vmax.f32 %v1336_v26, %v1338_v24 }
 0x1ad   :  { %v1340_v28 = vrot.slane %v1339_v27, 4 }
 0x1af   :  { %v1341_v29 = vmax.f32 %v1339_v27, %v1340_v28 }
 0x1b1   :  { %v1342_v30 = vrot.slane %v1341_v29, 2 }
 0x1b3   :  { %v1343_v31 = vmax.f32 %v1341_v29, %v1342_v30 }
 0x1b5   :  { %v1344_v32 = vrot.slane %v1343_v31, 1 }
 0x1b7   :  { %v1345_v33 = vmax.f32 %v1343_v31, %v1344_v32 }
 0x1b9   :  { %v1346_v34 = vsub.f32 %v1327_v23, %v1345_v33  ;;  %v1347_v35 = vsub.f32 %v1332_v21, %v1345_v33 }
 0x1bb   :  { %v1348_v36 = vmul.f32 1.442695, %v1346_v34  ;;  %v1350_v37 = vmul.f32 1.442695, %v1347_v35 }
 0x1bd   :  { %1582 = vpow2.f32 %v1348_v36 }
 0x1be   :  { %1584 = vpow2.f32 %v1350_v37 }
 0x1c7   :  { %v1583_v38 = vpop.eup %1582 }
 0x1c8   :  { %v1585_v39 = vpop.eup %1584  ;;  %v1352_v40 = vsel %vm1335_vm9, %v1583_v38, 0.0 }
 0x1c9   :  { %v1353_v41 = vsel %vm1337_vm8, %v1585_v39, 0.0 }
 0x1ca   :  { %v1354_v42 = vadd.f32 %v1353_v41, %v1352_v40 }
 0x1cc   :  { %v1355_v43 = vrot.slane %v1354_v42, 4 }
 0x1ce   :  { %v1356_v44 = vadd.f32 %v1355_v43, %v1354_v42 }
 0x1d0   :  { %v1357_v45 = vrot.slane %v1356_v44, 2 }
 0x1d2   :  { %v1358_v46 = vadd.f32 %v1357_v45, %v1356_v44 }
 0x1d4   :  { %v1359_v47 = vrot.slane %v1358_v46, 1 }
 0x1d6   :  { %v1360_v48 = vadd.f32 %v1359_v47, %v1358_v46 }
 0x1d8   :  { %1586 = vlog2.f32 %v1360_v48 }
 0x1e2   :  { %v1587_v0 = vpop.eup %1586 }
 0x1e3   :  { %v1362_v25 = vmul.f32 0.6931472, %v1587_v0 }
 0x1e5   :  { %v1363_v50 = vsub.f32 %v1346_v34, %v1362_v25  ;;  %v1364_v51 = vsub.f32 %v1347_v35, %v1362_v25 }
 0x1e7   :  { %1365 = vst.msk [vmem:[%s2025_s3] sm:$0xff] %vm1335_vm9, %v1363_v50 }
 0x1e8   :  { %1366 = vst.msk [vmem:[%s2025_s3 + $0x8] sm:$0x3] %vm1337_vm8, %v1364_v51 }

// kernel: resnet_forward.20
= control target key start
LH: loop header
LB: loop body
LE: loop exit
PB: predicated region body
PF: predicated region fallthrough
CT: control target
= control target key end

     0   :  { %v2666_v1 = vmov 0   ;;  %vm1268_vm0 = vcmask 523264   ;;  %vm1828_vm1 = vcmask 261120   ;;  %s3321_s0 = inlined_call_operand.vmem [shape: bf16[1728,128], index: 0, kind: input, shape index: {}]   ;;  %s3322_s1 = inlined_call_operand.vmem [shape: bf16[64,1728], index: 1, kind: input, shape index: {}]   ;;  %s3323_s2 = inlined_call_operand.vmem [shape: f32[64,1], index: 2, kind: input, shape index: {}, may-alias: {2,5}]   ;;  %s3324_s3 = inlined_call_operand.vmem [shape: bf16[32,128], index: 3, kind: input, shape index: {}]   ;;  %s3325_s4 = inlined_call_operand.vmem [shape: bf16[64,32], index: 4, kind: input, shape index: {}]   ;;  %s3326_s5 = inlined_call_operand.vmem [shape: f32[64,1], index: 5, kind: input, shape index: {}, may-alias: {2,5}]   ;;  %s3327_s6 = inlined_call_operand.vmem [shape: bf16[64,128], index: 6, kind: output, shape index: {}]  }
   0x1   :  { %v2468_v0 = vld [vmem:[%s3321_s0 + $0x40] sm:$0xff]   ;;  %2466 = vset.pattern.permute.xlu0 %v2666_v1  ;;  %2467 = vset.pattern.permute.xlu1 %v2666_v1  ;;  %v2472_v5 = vld [vmem:[%s3321_s0 + $0x48] sm:$0xff]   ;;  %v2476_v9 = vld [vmem:[%s3321_s0 + $0x50] sm:$0xff]  }
   0x2   :  { %v2469_v2 = vld [vmem:[%s3321_s0 + $0xc0] sm:$0xff]   ;;  %2183 = vmatprep.subr.bf16.mxu0 %v2468_v0  ;;  %v2473_v6 = vld [vmem:[%s3321_s0 + $0xc8] sm:$0xff]   ;;  %v2477_v10 = vld [vmem:[%s3321_s0 + $0xd0] sm:$0xff]  }
   0x3   :  { %v2470_v3 = vld [vmem:[%s3321_s0] sm:$0xff]   ;;  %2223 = vmatprep.subr.bf16.mxu1 %v2469_v2  ;;  %v2474_v7 = vld [vmem:[%s3321_s0 + $0x8] sm:$0xff]   ;;  %v2478_v11 = vld [vmem:[%s3321_s0 + $0x10] sm:$0xff]  }
   0x4   :  { %v2471_v4 = vld [vmem:[%s3321_s0 + $0x80] sm:$0xff]   ;;  %2184 = vmatpush3.bf16.msra.mxu0 %v2470_v3  ;;  %v2475_v8 = vld [vmem:[%s3321_s0 + $0x88] sm:$0xff]   ;;  %v2479_v12 = vld [vmem:[%s3321_s0 + $0x90] sm:$0xff]  }
   0x5   :  { %2224 = vmatpush3.bf16.msra.mxu1 %v2471_v4  ;;  %2185 = vmatprep.subr.bf16.mxu0 %v2472_v5  ;;  %v2480_v13 = vld [vmem:[%s3321_s0 + $0x58] sm:$0xff]   ;;  %v2484_v17 = vld [vmem:[%s3321_s0 + $0x60] sm:$0xff]   ;;  %v2488_v21 = vld [vmem:[%s3321_s0 + $0x68] sm:$0xff]  }
   0x6   :  { %2225 = vmatprep.subr.bf16.mxu1 %v2473_v6  ;;  %v2481_v14 = vld [vmem:[%s3321_s0 + $0xd8] sm:$0xff]   ;;  %v2485_v18 = vld [vmem:[%s3321_s0 + $0xe0] sm:$0xff]   ;;  %v2489_v22 = vld [vmem:[%s3321_s0 + $0xe8] sm:$0xff]  }
   0x7   :  { %v2482_v15 = vld [vmem:[%s3321_s0 + $0x18] sm:$0xff]   ;;  %v2486_v19 = vld [vmem:[%s3321_s0 + $0x20] sm:$0xff]   ;;  %v2490_v23 = vld [vmem:[%s3321_s0 + $0x28] sm:$0xff]  }
   0x8   :  { %2186 = vmatpush3.bf16.msra.mxu0 %v2474_v7  ;;  %v2483_v16 = vld [vmem:[%s3321_s0 + $0x98] sm:$0xff]   ;;  %v2487_v20 = vld [vmem:[%s3321_s0 + $0xa0] sm:$0xff]   ;;  %v2491_v24 = vld [vmem:[%s3321_s0 + $0xa8] sm:$0xff]  }
   0x9   :  { %2226 = vmatpush3.bf16.msra.mxu1 %v2475_v8  ;;  %2187 = vmatprep.subr.bf16.mxu0 %v2476_v9  ;;  %v2492_v25 = vld [vmem:[%s3321_s0 + $0x70] sm:$0xff]   ;;  %v2496_v29 = vld [vmem:[%s3321_s0 + $0x78] sm:$0xff]   ;;  %v2503_v35 = vld [vmem:[%s3322_s1 + $0x8] ss:$56 sps:$4 sm:$0xff]  }
   0xa   :  { %2227 = vmatprep.subr.bf16.mxu1 %v2477_v10  ;;  %v2493_v26 = vld [vmem:[%s3321_s0 + $0xf0] sm:$0xff]   ;;  %v2497_v30 = vld [vmem:[%s3321_s0 + $0xf8] sm:$0xff]   ;;  %v2505_v36 = vld [vmem:[%s3322_s1 + $0xc] ss:$56 sps:$4 sm:$0xff]  }
   0xb   :  { %v2494_v27 = vld [vmem:[%s3321_s0 + $0x30] sm:$0xff]   ;;  %v2498_v31 = vld [vmem:[%s3321_s0 + $0x38] sm:$0xff]   ;;  %v2506_v37 = vld [vmem:[%s3321_s0 + $0x140] sm:$0xff]   ;;  %1378 = vmatprep.mubr.bf16.mxu1 %v2505_v36 }
   0xc   :  { %2188 = vmatpush3.bf16.msra.mxu0 %v2478_v11  ;;  %v2495_v28 = vld [vmem:[%s3321_s0 + $0xb0] sm:$0xff]   ;;  %v2499_v32 = vld [vmem:[%s3321_s0 + $0xb8] sm:$0xff]   ;;  %v2507_v38 = vld [vmem:[%s3321_s0 + $0x1c0] sm:$0xff]  }
   0xd   :  { %2228 = vmatpush3.bf16.msra.mxu1 %v2479_v12  ;;  %2189 = vmatprep.subr.bf16.mxu0 %v2480_v13  ;;  %v2500_v33 = vld [vmem:[%s3322_s1] ss:$56 sps:$4 sm:$0xff]   ;;  %v2502_v34 = vld [vmem:[%s3322_s1 + $0x4] ss:$56 sps:$4 sm:$0xff]   ;;  %v2510_v41 = vld [vmem:[%s3321_s0 + $0x148] sm:$0xff]  }
   0xe   :  { %2229 = vmatprep.subr.bf16.mxu1 %v2481_v14  ;;  %1313 = vmatprep.mubr.bf16.mxu0 %v2502_v34  ;;  %v2508_v39 = vld [vmem:[%s3321_s0 + $0x100] sm:$0xff]   ;;  %v2511_v42 = vld [vmem:[%s3321_s0 + $0x1c8] sm:$0xff]   ;;  %v2516_v46 = vld [vmem:[%s3322_s1 + $0x7c] ss:$56 sps:$4 sm:$0xff]  }
   0xf   :  { %v2509_v40 = vld [vmem:[%s3321_s0 + $0x180] sm:$0xff]   ;;  %v2512_v43 = vld [vmem:[%s3321_s0 + $0x108] sm:$0xff]   ;;  %v2519_v48 = vld [vmem:[%s3322_s1 + $0x78] ss:$56 sps:$4 sm:$0xff]  }
  0x10   :  { %2190 = vmatpush3.bf16.msra.mxu0 %v2482_v15  ;;  %v2513_v44 = vld [vmem:[%s3321_s0 + $0x188] sm:$0xff]   ;;  %v2520_v49 = vld [vmem:[%s3321_s0 + $0x150] sm:$0xff]   ;;  %v2524_v53 = vld [vmem:[%s3321_s0 + $0x158] sm:$0xff]  }
  0x11   :  { %2230 = vmatpush3.bf16.msra.mxu1 %v2483_v16  ;;  %2191 = vmatprep.subr.bf16.mxu0 %v2484_v17  ;;  %v2514_v45 = vld [vmem:[%s3322_s1 + $0x74] ss:$56 sps:$4 sm:$0xff]   ;;  %v2518_v47 = vld [vmem:[%s3322_s1 + $0x70] ss:$56 sps:$4 sm:$0xff]   ;;  %v2525_v54 = vld [vmem:[%s3321_s0 + $0x1d8] sm:$0xff]  }
  0x12   :  { %2231 = vmatprep.subr.bf16.mxu1 %v2485_v18  ;;  %v2521_v50 = vld [vmem:[%s3321_s0 + $0x1d0] sm:$0xff]   ;;  %v2526_v55 = vld [vmem:[%s3321_s0 + $0x118] sm:$0xff]   ;;  %v2530_v58 = vld [vmem:[%s3322_s1 + $0xec] ss:$56 sps:$4 sm:$0xff]  }
  0x13   :  { %v2522_v51 = vld [vmem:[%s3321_s0 + $0x110] sm:$0xff]   ;;  %v2527_v56 = vld [vmem:[%s3321_s0 + $0x198] sm:$0xff]   ;;  %v2533_v60 = vld [vmem:[%s3322_s1 + $0xe8] ss:$56 sps:$4 sm:$0xff]  }
  0x14   :  { %2192 = vmatpush3.bf16.msra.mxu0 %v2486_v19  ;;  %v2523_v52 = vld [vmem:[%s3321_s0 + $0x190] sm:$0xff]   ;;  %v2528_v57 = vld [vmem:[%s3322_s1 + $0xe4] ss:$56 sps:$4 sm:$0xff]   ;;  %v2532_v59 = vld [vmem:[%s3322_s1 + $0xe0] ss:$56 sps:$4 sm:$0xff]  }
  0x15   :  { %2232 = vmatpush3.bf16.msra.mxu1 %v2487_v20  ;;  %2193 = vmatprep.subr.bf16.mxu0 %v2488_v21  ;;  %v2534_v61 = vld [vmem:[%s3321_s0 + $0x160] sm:$0xff]   ;;  %v2538_v2 = vld [vmem:[%s3321_s0 + $0x168] sm:$0xff]   ;;  %v2544_v7 = vld [vmem:[%s3322_s1 + $0x15c] ss:$56 sps:$4 sm:$0xff]  }
  0x16   :  { %2233 = vmatprep.subr.bf16.mxu1 %v2489_v22  ;;  %v2535_v62 = vld [vmem:[%s3321_s0 + $0x1e0] sm:$0xff]   ;;  %v2539_v3 = vld [vmem:[%s3321_s0 + $0x1e8] sm:$0xff]   ;;  %v2547_v9 = vld [vmem:[%s3322_s1 + $0x158] ss:$56 sps:$4 sm:$0xff]  }
  0x17   :  { %v2536_v63 = vld [vmem:[%s3321_s0 + $0x120] sm:$0xff]   ;;  %v2540_v4 = vld [vmem:[%s3321_s0 + $0x128] sm:$0xff]   ;;  %v2548_v10 = vld [vmem:[%s3321_s0 + $0x170] sm:$0xff]  }
  0x18   :  { %2194 = vmatpush3.bf16.msra.mxu0 %v2490_v23  ;;  %v2537_v0 = vld [vmem:[%s3321_s0 + $0x1a0] sm:$0xff]   ;;  %v2541_v5 = vld [vmem:[%s3321_s0 + $0x1a8] sm:$0xff]   ;;  %v2549_v11 = vld [vmem:[%s3321_s0 + $0x1f0] sm:$0xff]  }
  0x19   :  { %2234 = vmatpush3.bf16.msra.mxu1 %v2491_v24  ;;  %2195 = vmatprep.subr.bf16.mxu0 %v2492_v25  ;;  %v2542_v6 = vld [vmem:[%s3322_s1 + $0x154] ss:$56 sps:$4 sm:$0xff]   ;;  %v2546_v8 = vld [vmem:[%s3322_s1 + $0x150] ss:$56 sps:$4 sm:$0xff]   ;;  %v2552_v14 = vld [vmem:[%s3321_s0 + $0x178] sm:$0xff]  }
  0x1a   :  { %2235 = vmatprep.subr.bf16.mxu1 %v2493_v26  ;;  %v2550_v12 = vld [vmem:[%s3321_s0 + $0x130] sm:$0xff]   ;;  %v2553_v15 = vld [vmem:[%s3321_s0 + $0x1f8] sm:$0xff]   ;;  %v2562_v22 = vld [vmem:[%s3321_s0 + $0x240] sm:$0xff]  }
  0x1b   :  { %v2551_v13 = vld [vmem:[%s3321_s0 + $0x1b0] sm:$0xff]   ;;  %v2554_v16 = vld [vmem:[%s3321_s0 + $0x138] sm:$0xff]   ;;  %v2563_v23 = vld [vmem:[%s3321_s0 + $0x2c0] sm:$0xff]  }
  0x1c   :  { %2196 = vmatpush3.bf16.msra.mxu0 %v2494_v27  ;;  %v2555_v17 = vld [vmem:[%s3321_s0 + $0x1b8] sm:$0xff]   ;;  %v2556_v18 = vld [vmem:[%s3322_s1 + $0x10] ss:$56 sps:$4 sm:$0xff]   ;;  %v2558_v19 = vld [vmem:[%s3322_s1 + $0x14] ss:$56 sps:$4 sm:$0xff]  }
  0x1d   :  { %2236 = vmatpush3.bf16.msra.mxu1 %v2495_v28  ;;  %2197 = vmatprep.subr.bf16.mxu0 %v2496_v29  ;;  %v2559_v20 = vld [vmem:[%s3322_s1 + $0x18] ss:$56 sps:$4 sm:$0xff]   ;;  %v2561_v21 = vld [vmem:[%s3322_s1 + $0x1c] ss:$56 sps:$4 sm:$0xff]   ;;  %v2564_v24 = vld [vmem:[%s3321_s0 + $0x200] sm:$0xff]  }
  0x1e   :  { %2237 = vmatprep.subr.bf16.mxu1 %v2497_v30  ;;  %v2565_v25 = vld [vmem:[%s3321_s0 + $0x280] sm:$0xff]   ;;  %v2566_v26 = vld [vmem:[%s3321_s0 + $0x248] sm:$0xff]   ;;  %v2576_v34 = vld [vmem:[%s3321_s0 + $0x250] sm:$0xff]  }
  0x1f   :  { %v2567_v27 = vld [vmem:[%s3321_s0 + $0x2c8] sm:$0xff]   ;;  %v2570_v30 = vld [vmem:[%s3322_s1 + $0x84] ss:$56 sps:$4 sm:$0xff]   ;;  %v2578_v36 = vld [vmem:[%s3321_s0 + $0x210] sm:$0xff]  }
  0x20   :  { %2198 = vmatpush3.bf16.msra.mxu0 %v2498_v31  ;;  %v2568_v28 = vld [vmem:[%s3321_s0 + $0x208] sm:$0xff]  }
  0x21   :  { %2238 = vmatpush3.bf16.msra.mxu1 %v2499_v32  ;;  %2263 = vmatprep.subr.bf16.mxu0 %v2506_v37  ;;  %v2569_v29 = vld [vmem:[%s3321_s0 + $0x288] sm:$0xff]   ;;  %v2574_v32 = vld [vmem:[%s3322_s1 + $0x80] ss:$56 sps:$4 sm:$0xff]   ;;  %v2579_v37 = vld [vmem:[%s3321_s0 + $0x290] sm:$0xff]  }
  0x22   :  { %2303 = vmatprep.subr.bf16.mxu1 %v2507_v38  ;;  %v2572_v31 = vld [vmem:[%s3322_s1 + $0x8c] ss:$56 sps:$4 sm:$0xff]   ;;  %v2580_v38 = vld [vmem:[%s3321_s0 + $0x258] sm:$0xff]  }
  0x23   :  { %1314 = vmatmul.mubr.bf16.vlgmr.msra.gmra.mrb[0].mxu0 %v2500_v33  ;;  %v2575_v33 = vld [vmem:[%s3322_s1 + $0x88] ss:$56 sps:$4 sm:$0xff]  }
  0x24   :  { %1379 = vmatmul.mubr.bf16.vlgmr.msra.gmra.mrb[0].mxu1 %v2503_v35  ;;  %2264 = vmatpush3.bf16.msra.mxu0 %v2508_v39  ;;  %v2577_v35 = vld [vmem:[%s3321_s0 + $0x2d0] sm:$0xff]   ;;  %v2581_v39 = vld [vmem:[%s3321_s0 + $0x2d8] sm:$0xff]  }
  0x25   :  { %2304 = vmatpush3.bf16.msra.mxu1 %v2509_v40  ;;  %2265 = vmatprep.subr.bf16.mxu0 %v2510_v41  ;;  %v2582_v40 = vld [vmem:[%s3321_s0 + $0x218] sm:$0xff]  }
  0x26   :  { %2305 = vmatprep.subr.bf16.mxu1 %v2511_v42  ;;  %1321 = vmatprep.mubr.bf16.mxu0 %v2514_v45  ;;  %v2583_v41 = vld [vmem:[%s3321_s0 + $0x298] sm:$0xff]   ;;  %v2584_v42 = vld [vmem:[%s3322_s1 + $0xf4] ss:$56 sps:$4 sm:$0xff]  }
  0x27   :  { %1386 = vmatprep.mubr.bf16.mxu1 %v2516_v46  ;;  %v2589_v45 = vld [vmem:[%s3322_s1 + $0xf8] ss:$56 sps:$4 sm:$0xff]   ;;  %v2590_v46 = vld [vmem:[%s3321_s0 + $0x260] sm:$0xff]  }
  0x28   :  { %2266 = vmatpush3.bf16.msra.mxu0 %v2512_v43  ;;  %v2586_v43 = vld [vmem:[%s3322_s1 + $0xfc] ss:$56 sps:$4 sm:$0xff]  }
  0x29   :  { %2306 = vmatpush3.bf16.msra.mxu1 %v2513_v44  ;;  %2267 = vmatprep.subr.bf16.mxu0 %v2520_v49  ;;  %v2588_v44 = vld [vmem:[%s3322_s1 + $0xf0] ss:$56 sps:$4 sm:$0xff]   ;;  %v2593_v49 = vld [vmem:[%s3321_s0 + $0x2a0] sm:$0xff]  }
  0x2a   :  { %2307 = vmatprep.subr.bf16.mxu1 %v2521_v50  ;;  %v2594_v50 = vld [vmem:[%s3321_s0 + $0x268] sm:$0xff]  }
  0x2b   :  { %1322 = vmatmul.mubr.bf16.gmra.mrb[4].mxu0 %v2518_v47  ;;  %v2591_v47 = vld [vmem:[%s3321_s0 + $0x2e0] sm:$0xff]  }
  0x2c   :  { %1387 = vmatmul.mubr.bf16.gmra.mrb[4].mxu1 %v2519_v48  ;;  %2268 = vmatpush3.bf16.msra.mxu0 %v2522_v51  ;;  %v2592_v48 = vld [vmem:[%s3321_s0 + $0x220] sm:$0xff]   ;;  %v2595_v51 = vld [vmem:[%s3321_s0 + $0x2e8] sm:$0xff]  }
  0x2d   :  { %2308 = vmatpush3.bf16.msra.mxu1 %v2523_v52  ;;  %2269 = vmatprep.subr.bf16.mxu0 %v2524_v53  ;;  %v2596_v52 = vld [vmem:[%s3321_s0 + $0x228] sm:$0xff]  }
  0x2e   :  { %2309 = vmatprep.subr.bf16.mxu1 %v2525_v54  ;;  %1329 = vmatprep.mubr.bf16.mxu0 %v2528_v57  ;;  %v2597_v53 = vld [vmem:[%s3321_s0 + $0x2a8] sm:$0xff]   ;;  %v2598_v54 = vld [vmem:[%s3322_s1 + $0x164] ss:$56 sps:$4 sm:$0xff]  }
  0x2f   :  { %1394 = vmatprep.mubr.bf16.mxu1 %v2530_v58  ;;  %v2603_v57 = vld [vmem:[%s3322_s1 + $0x168] ss:$56 sps:$4 sm:$0xff]   ;;  %v2604_v58 = vld [vmem:[%s3321_s0 + $0x270] sm:$0xff]  }
  0x30   :  { %2270 = vmatpush3.bf16.msra.mxu0 %v2526_v55  ;;  %v2600_v55 = vld [vmem:[%s3322_s1 + $0x16c] ss:$56 sps:$4 sm:$0xff]  }
  0x31   :  { %2310 = vmatpush3.bf16.msra.mxu1 %v2527_v56  ;;  %2271 = vmatprep.subr.bf16.mxu0 %v2534_v61  ;;  %v2602_v56 = vld [vmem:[%s3322_s1 + $0x160] ss:$56 sps:$4 sm:$0xff]   ;;  %v2607_v61 = vld [vmem:[%s3321_s0 + $0x2b0] sm:$0xff]  }
  0x32   :  { %2311 = vmatprep.subr.bf16.mxu1 %v2535_v62  ;;  %v2608_v62 = vld [vmem:[%s3321_s0 + $0x278] sm:$0xff]  }
  0x33   :  { %1330 = vmatmul.mubr.bf16.gmra.mrb[8].mxu0 %v2532_v59  ;;  %v2605_v59 = vld [vmem:[%s3321_s0 + $0x2f0] sm:$0xff]  }
  0x34   :  { %1395 = vmatmul.mubr.bf16.gmra.mrb[8].mxu1 %v2533_v60  ;;  %2272 = vmatpush3.bf16.msra.mxu0 %v2536_v63  ;;  %v2606_v60 = vld [vmem:[%s3321_s0 + $0x230] sm:$0xff]   ;;  %v2609_v63 = vld [vmem:[%s3321_s0 + $0x2f8] sm:$0xff]  }
  0x35   :  { %2312 = vmatpush3.bf16.msra.mxu1 %v2537_v0  ;;  %2273 = vmatprep.subr.bf16.mxu0 %v2538_v2  ;;  %v2610_v0 = vld [vmem:[%s3321_s0 + $0x238] sm:$0xff]  }
  0x36   :  { %2313 = vmatprep.subr.bf16.mxu1 %v2539_v3  ;;  %1337 = vmatprep.mubr.bf16.mxu0 %v2542_v6  ;;  %v2611_v2 = vld [vmem:[%s3321_s0 + $0x2b8] sm:$0xff]   ;;  %v2617_v6 = vld [vmem:[%s3322_s1 + $0x2c] ss:$56 sps:$4 sm:$0xff]  }
  0x37   :  { %1402 = vmatprep.mubr.bf16.mxu1 %v2544_v7  ;;  %v2612_v3 = vld [vmem:[%s3322_s1 + $0x20] ss:$56 sps:$4 sm:$0xff]  }
  0x38   :  { %2274 = vmatpush3.bf16.msra.mxu0 %v2540_v4  ;;  %v2614_v4 = vld [vmem:[%s3322_s1 + $0x24] ss:$56 sps:$4 sm:$0xff]  }
  0x39   :  { %2314 = vmatpush3.bf16.msra.mxu1 %v2541_v5  ;;  %2275 = vmatprep.subr.bf16.mxu0 %v2548_v10  ;;  %v2615_v5 = vld [vmem:[%s3322_s1 + $0x28] ss:$56 sps:$4 sm:$0xff]   ;;  %v2623_v10 = vld [vmem:[%s3322_s1 + $0x9c] ss:$56 sps:$4 sm:$0xff]  }
  0x3a   :  { %2315 = vmatprep.subr.bf16.mxu1 %v2549_v11  ;;  %v2618_v7 = vld [vmem:[%s3321_s0 + $0x300] sm:$0xff]   ;;  %v2622_v11 = vld [vmem:[%s3322_s1 + $0x90] ss:$56 sps:$4 sm:$0xff]  }
  0x3b   :  { %1338 = vmatmul.mubr.bf16.gmra.mrb[12].mxu0 %v2546_v8  ;;  %v2619_v8 = vld [vmem:[%s3321_s0 + $0x308] sm:$0xff]  }
  0x3c   :  { %1403 = vmatmul.mubr.bf16.gmra.mrb[12].mxu1 %v2547_v9  ;;  %2276 = vmatpush3.bf16.msra.mxu0 %v2550_v12  ;;  %v2620_v9 = vld [vmem:[%s3322_s1 + $0x94] ss:$56 sps:$4 sm:$0xff]  }
  0x3d   :  { %2316 = vmatpush3.bf16.msra.mxu1 %v2551_v13  ;;  %2277 = vmatprep.subr.bf16.mxu0 %v2552_v14  ;;  %v2625_v12 = vld [vmem:[%s3321_s0 + $0x310] sm:$0xff]   ;;  %v2628_v14 = vld [vmem:[%s3322_s1 + $0x104] ss:$56 sps:$4 sm:$0xff]  }
  0x3e   :  { %2317 = vmatprep.subr.bf16.mxu1 %v2553_v15  ;;  %1443 = vmatprep.mubr.bf16.mxu0 %v2558_v19  ;;  %v2626_v13 = vld [vmem:[%s3322_s1 + $0x98] ss:$56 sps:$4 sm:$0xff]   ;;  %v2631_v15 = vld [vmem:[%s3322_s1 + $0x10c] ss:$56 sps:$4 sm:$0xff]  }
  0x3f   :  { %1508 = vmatprep.mubr.bf16.mxu1 %v2561_v21  ;;  %v2633_v19 = vld [vmem:[%s3321_s0 + $0x320] sm:$0xff]   ;;  %v297_v21 = vld [vmem:[%s3323_s2 + $0x8] sm:$0xff] }
  0x40   :  { %2278 = vmatpush3.bf16.msra.mxu0 %v2554_v16  ;;  %v2627_v16 = vld [vmem:[%s3321_s0 + $0x318] sm:$0xff]  }
  0x41   :  { %2318 = vmatpush3.bf16.msra.mxu1 %v2555_v17  ;;  %2343 = vmatprep.subr.bf16.mxu0 %v2562_v22  ;;  %v296_v17 = vld [vmem:[%s3323_s2] sm:$0xff]  ;;  %v298_v22 = vld [vmem:[%s3323_s2 + $0x10] sm:$0xff] }
  0x42   :  { %2383 = vmatprep.subr.bf16.mxu1 %v2563_v23  ;;  %306 = vperm.xlu0 %2466, %v296_v17   ;;  %v2635_v23 = vld [vmem:[%s3321_s0 + $0x328] sm:$0xff]  }
  0x43   :  { %1444 = vmatmul.mubr.bf16.vlgmr.msra.gmra.mrb[16].mxu0 %v2556_v18  ;;  %v2630_v18 = vld [vmem:[%s3322_s1 + $0x100] ss:$56 sps:$4 sm:$0xff]   ;;  %316 = vperm.xlu1 %2467, %v298_v22  }
  0x44   :  { %1509 = vmatmul.mubr.bf16.vlgmr.msra.gmra.mrb[16].mxu1 %v2559_v20  ;;  %2344 = vmatpush3.bf16.msra.mxu0 %v2564_v24  ;;  %v2634_v20 = vld [vmem:[%s3322_s1 + $0x108] ss:$56 sps:$4 sm:$0xff]   ;;  %v2636_v24 = vld [vmem:[%s3322_s1 + $0x174] ss:$56 sps:$4 sm:$0xff]  }
  0x45   :  { %2384 = vmatpush3.bf16.msra.mxu1 %v2565_v25  ;;  %2345 = vmatprep.subr.bf16.mxu0 %v2566_v26  ;;  %v2639_v25 = vld [vmem:[%s3322_s1 + $0x17c] ss:$56 sps:$4 sm:$0xff]  }
  0x46   :  { %2385 = vmatprep.subr.bf16.mxu1 %v2567_v27  ;;  %1451 = vmatprep.mubr.bf16.mxu0 %v2570_v30  ;;  %v299_v26 = vld [vmem:[%s3323_s2 + $0x18] sm:$0xff]  ;;  %v2638_v27 = vld [vmem:[%s3322_s1 + $0x170] ss:$56 sps:$4 sm:$0xff]  }
  0x47   :  { %1516 = vmatprep.mubr.bf16.mxu1 %v2572_v31  ;;  %311 = vperm.xlu0 %2466, %v297_v21   ;;  %v2642_v30 = vld [vmem:[%s3322_s1 + $0x178] ss:$56 sps:$4 sm:$0xff]   ;;  %v301_v31 = vld [vmem:[%s3323_s2 + $0x28] sm:$0xff] }
  0x48   :  { %2346 = vmatpush3.bf16.msra.mxu0 %v2568_v28  ;;  %v300_v28 = vld [vmem:[%s3323_s2 + $0x20] sm:$0xff]  ;;  %321 = vperm.xlu1 %2467, %v299_v26  }
  0x49   :  { %2386 = vmatpush3.bf16.msra.mxu1 %v2569_v29  ;;  %2347 = vmatprep.subr.bf16.mxu0 %v2576_v34  ;;  %v2641_v29 = vld [vmem:[%s3321_s0 + $0x330] sm:$0xff]   ;;  %v2653_v34 = vld [vmem:[%s3322_s1 + $0x184] ss:$56 sps:$4 sm:$0xff]  }
  0x4a   :  { %2387 = vmatprep.subr.bf16.mxu1 %v2577_v35  ;;  %v2643_v35 = vld [vmem:[%s3321_s0 + $0x338] sm:$0xff]  }
  0x4b   :  { %1452 = vmatmul.mubr.bf16.gmra.mrb[20].mxu0 %v2574_v32  ;;  %326 = vperm.xlu0 %2466, %v300_v28   ;;  %v302_v32 = vld [vmem:[%s3323_s2 + $0x30] sm:$0xff] }
  0x4c   :  { %1517 = vmatmul.mubr.bf16.gmra.mrb[20].mxu1 %v2575_v33  ;;  %2348 = vmatpush3.bf16.msra.mxu0 %v2578_v36  ;;  %v2650_v33 = vld [vmem:[%s3322_s1 + $0x34] ss:$56 sps:$4 sm:$0xff]   ;;  %v303_v36 = vld [vmem:[%s3323_s2 + $0x38] sm:$0xff] }
  0x4d   :  { %2388 = vmatpush3.bf16.msra.mxu1 %v2579_v37  ;;  %2349 = vmatprep.subr.bf16.mxu0 %v2580_v38  ;;  %v2644_v37 = vld [vmem:[%s3321_s0 + $0x340] sm:$0xff]   ;;  %v2645_v38 = vld [vmem:[%s3321_s0 + $0x348] sm:$0xff]  }
  0x4e   :  { %2389 = vmatprep.subr.bf16.mxu1 %v2581_v39  ;;  %1459 = vmatprep.mubr.bf16.mxu0 %v2584_v42  ;;  %v1749_v39 = vld [vmem:[%s3326_s5 + $0x8] sm:$0xff]  ;;  %v2646_v42 = vld [vmem:[%s3321_s0 + $0x350] sm:$0xff]  }
  0x4f   :  { %1524 = vmatprep.mubr.bf16.mxu1 %v2586_v43  ;;  %331 = vperm.xlu1 %2467, %v301_v31   ;;  %v1750_v43 = vld [vmem:[%s3326_s5 + $0x10] sm:$0xff] }
  0x50   :  { %2350 = vmatpush3.bf16.msra.mxu0 %v2582_v40  ;;  %336 = vperm.xlu0 %2466, %v302_v32   ;;  %v1748_v40 = vld [vmem:[%s3326_s5] sm:$0xff] }
  0x51   :  { %2390 = vmatpush3.bf16.msra.mxu1 %v2583_v41  ;;  %2351 = vmatprep.subr.bf16.mxu0 %v2590_v46  ;;  %v1751_v41 = vld [vmem:[%s3326_s5 + $0x18] sm:$0xff]  ;;  %v1752_v46 = vld [vmem:[%s3326_s5 + $0x20] sm:$0xff] }
  0x52   :  { %2391 = vmatprep.subr.bf16.mxu1 %v2591_v47  ;;  %v2654_v47 = vld [vmem:[%s3324_s3] sm:$0xff]  }
  0x53   :  { %1460 = vmatmul.mubr.bf16.gmra.mrb[24].mxu0 %v2588_v44  ;;  %341 = vperm.xlu1 %2467, %v303_v36   ;;  %v1753_v44 = vld [vmem:[%s3326_s5 + $0x28] sm:$0xff] }
  0x54   :  { %1525 = vmatmul.mubr.bf16.gmra.mrb[24].mxu1 %v2589_v45  ;;  %2352 = vmatpush3.bf16.msra.mxu0 %v2592_v48  ;;  %v2647_v45 = vld [vmem:[%s3321_s0 + $0x358] sm:$0xff]   ;;  %v2648_v48 = vld [vmem:[%s3322_s1 + $0x30] ss:$56 sps:$4 sm:$0xff]  }
  0x55   :  { %2392 = vmatpush3.bf16.msra.mxu1 %v2593_v49  ;;  %2353 = vmatprep.subr.bf16.mxu0 %v2594_v50  ;;  %v1755_v49 = vld [vmem:[%s3326_s5 + $0x38] sm:$0xff] }
  0x56   :  { %2393 = vmatprep.subr.bf16.mxu1 %v2595_v51  ;;  %1467 = vmatprep.mubr.bf16.mxu0 %v2598_v54  ;;  %v2651_v50 = vld [vmem:[%s3322_s1 + $0x180] ss:$56 sps:$4 sm:$0xff]   ;;  %v1754_v51 = vld [vmem:[%s3326_s5 + $0x30] sm:$0xff] }
  0x57   :  { %1532 = vmatprep.mubr.bf16.mxu1 %v2600_v55  ;;  %1763 = vperm.xlu1 %2467, %v1749_v39   ;;  %v2659_v54 = vld [vmem:[%s3322_s1 + $0xa0] ss:$56 sps:$4 sm:$0xff]   ;;  %v2660_v55 = vld [vmem:[%s3325_s4 + $0x8] sm:$0xff]  }
  0x58   :  { %2354 = vmatpush3.bf16.msra.mxu0 %v2596_v52  ;;  %1758 = vperm.xlu0 %2466, %v1748_v40   ;;  %v2658_v52 = vld [vmem:[%s3325_s4] sm:$0xff]  }
  0x59   :  { %2394 = vmatpush3.bf16.msra.mxu1 %v2597_v53  ;;  %2355 = vmatprep.subr.bf16.mxu0 %v2604_v58  ;;  %v2655_v53 = vld [vmem:[%s3324_s3 + $0x8] sm:$0xff]  }
  0x5a   :  { %2395 = vmatprep.subr.bf16.mxu1 %v2605_v59  ;;  %v2664_v58 = vld [vmem:[%s3322_s1 + $0x110] ss:$56 sps:$4 sm:$0xff]   ;;  %v2665_v59 = vld [vmem:[%s3325_s4 + $0x18] sm:$0xff]  }
  0x5b   :  { %1468 = vmatmul.mubr.bf16.gmra.mrb[28].mxu0 %v2602_v56  ;;  %1773 = vperm.xlu1 %2467, %v1751_v41   ;;  %v2661_v56 = vld [vmem:[%s3322_s1 + $0x114] ss:$56 sps:$4 sm:$0xff]  }
  0x5c   :  { %1533 = vmatmul.mubr.bf16.gmra.mrb[28].mxu1 %v2603_v57  ;;  %2356 = vmatpush3.bf16.msra.mxu0 %v2606_v60  ;;  %v2663_v57 = vld [vmem:[%s3325_s4 + $0x10] sm:$0xff]  }
  0x5d   :  { %2396 = vmatpush3.bf16.msra.mxu1 %v2607_v61  ;;  %2357 = vmatprep.subr.bf16.mxu0 %v2608_v62 }
  0x5e   :  { %2397 = vmatprep.subr.bf16.mxu1 %v2609_v63  ;;  %1573 = vmatprep.mubr.bf16.mxu0 %v2614_v4 }
  0x5f   :  { %1638 = vmatprep.mubr.bf16.mxu1 %v2617_v6  ;;  %1768 = vperm.xlu0 %2466, %v1750_v43  }
  0x60   :  { %2358 = vmatpush3.bf16.msra.mxu0 %v2610_v0  ;;  %1783 = vperm.xlu1 %2467, %v1753_v44  }
  0x61   :  { %2398 = vmatpush3.bf16.msra.mxu1 %v2611_v2  ;;  %1671 = vmatprep.subr.bf16.mxu0 %v2666_v1 }
  0x62   :  { %2441 = vmatprep.subr.bf16.mxu1 %v2666_v1 }
  0x63   :  { %1574 = vmatmul.mubr.bf16.vlgmr.msra.gmra.mrb[32].mxu0 %v2612_v3  ;;  %1778 = vperm.xlu0 %2466, %v1752_v46  }
  0x64   :  { %1639 = vmatmul.mubr.bf16.vlgmr.msra.gmra.mrb[32].mxu1 %v2615_v5  ;;  %1672 = vmatpush1.bf16.msra.mxu0 %v2618_v7 }
  0x65   :  { %2453 = vmatpush1.bf16.msra.mxu1 %v2618_v7  ;;  %1673 = vmatprep.subr.bf16.mxu0 %v2666_v1 }
  0x66   :  { %2442 = vmatprep.subr.bf16.mxu1 %v2666_v1  ;;  %1581 = vmatprep.mubr.bf16.mxu0 %v2620_v9 }
  0x67   :  { %1646 = vmatprep.mubr.bf16.mxu1 %v2623_v10  ;;  %1793 = vperm.xlu1 %2467, %v1755_v49  }
  0x68   :  { %1674 = vmatpush1.bf16.msra.mxu0 %v2619_v8  ;;  %1788 = vperm.xlu0 %2466, %v1754_v51  }
  0x69   :  { %2454 = vmatpush1.bf16.msra.mxu1 %v2619_v8  ;;  %1675 = vmatprep.subr.bf16.mxu0 %v2666_v1 }
  0x6a   :  { %2443 = vmatprep.subr.bf16.mxu1 %v2666_v1 }
  0x6b   :  { %1582 = vmatmul.mubr.bf16.gmra.mrb[36].mxu0 %v2622_v11 }
  0x6c   :  { %1676 = vmatpush1.bf16.msra.mxu0 %v2625_v12  ;;  %1647 = vmatmul.mubr.bf16.gmra.mrb[36].mxu1 %v2626_v13 }
  0x6d   :  { %2455 = vmatpush1.bf16.msra.mxu1 %v2625_v12  ;;  %1677 = vmatprep.subr.bf16.mxu0 %v2666_v1 }
  0x6e   :  { %2444 = vmatprep.subr.bf16.mxu1 %v2666_v1  ;;  %1589 = vmatprep.mubr.bf16.mxu0 %v2628_v14 }
  0x6f   :  { %1654 = vmatprep.mubr.bf16.mxu1 %v2631_v15 }
  0x70   :  { %1678 = vmatpush1.bf16.msra.mxu0 %v2627_v16 }
  0x71   :  { %2456 = vmatpush1.bf16.msra.mxu1 %v2627_v16  ;;  %1679 = vmatprep.subr.bf16.mxu0 %v2666_v1 }
  0x72   :  { %2445 = vmatprep.subr.bf16.mxu1 %v2666_v1 }
  0x73   :  { %1590 = vmatmul.mubr.bf16.gmra.mrb[40].mxu0 %v2630_v18 }
  0x74   :  { %1680 = vmatpush1.bf16.msra.mxu0 %v2633_v19  ;;  %1655 = vmatmul.mubr.bf16.gmra.mrb[40].mxu1 %v2634_v20 }
  0x75   :  { %2457 = vmatpush1.bf16.msra.mxu1 %v2633_v19  ;;  %1681 = vmatprep.subr.bf16.mxu0 %v2666_v1 }
  0x76   :  { %2446 = vmatprep.subr.bf16.mxu1 %v2666_v1  ;;  %1597 = vmatprep.mubr.bf16.mxu0 %v2636_v24 }
  0x77   :  { %1662 = vmatprep.mubr.bf16.mxu1 %v2639_v25 }
  0x78   :  { %1682 = vmatpush1.bf16.msra.mxu0 %v2635_v23 }
  0x79   :  { %2458 = vmatpush1.bf16.msra.mxu1 %v2635_v23  ;;  %1683 = vmatprep.subr.bf16.mxu0 %v2666_v1 }
  0x7a   :  { %2447 = vmatprep.subr.bf16.mxu1 %v2666_v1 }
  0x7b   :  { %1598 = vmatmul.mubr.bf16.gmra.mrb[44].mxu0 %v2638_v27 }
  0x7c   :  { %1684 = vmatpush1.bf16.msra.mxu0 %v2641_v29  ;;  %1663 = vmatmul.mubr.bf16.gmra.mrb[44].mxu1 %v2642_v30 }
  0x7d   :  { %2459 = vmatpush1.bf16.msra.mxu1 %v2641_v29  ;;  %1685 = vmatprep.subr.bf16.mxu0 %v2666_v1 }
  0x7e   :  { %2448 = vmatprep.subr.bf16.mxu1 %v2666_v1  ;;  %2130 = vmatprep.mubr.msk.bf16.mxu0 %vm1268_vm0, %v2650_v33 }
  0x7f   :  { %2133 = vmatprep.mubr.msk.bf16.mxu1 %vm1268_vm0, %v2653_v34 }
  0x80   :  { %1686 = vmatpush1.bf16.msra.mxu0 %v2643_v35 }
  0x81   :  { %2460 = vmatpush1.bf16.msra.mxu1 %v2643_v35  ;;  %1687 = vmatprep.subr.bf16.mxu0 %v2666_v1 }
  0x82   :  { %2449 = vmatprep.subr.bf16.mxu1 %v2666_v1 }
  0x84   :  { %1688 = vmatpush1.bf16.msra.mxu0 %v2644_v37 }
  0x85   :  { %2461 = vmatpush1.bf16.msra.mxu1 %v2644_v37  ;;  %1689 = vmatprep.subr.bf16.mxu0 %v2666_v1 }
  0x86   :  { %2450 = vmatprep.subr.bf16.mxu1 %v2666_v1 }
  0x88   :  { %1690 = vmatpush1.bf16.msra.mxu0 %v2645_v38 }
  0x89   :  { %2462 = vmatpush1.bf16.msra.mxu1 %v2645_v38  ;;  %1691 = vmatprep.subr.bf16.mxu0 %v2666_v1 }
  0x8a   :  { %2451 = vmatprep.subr.bf16.mxu1 %v2666_v1 }
  0x8c   :  { %1692 = vmatpush1.bf16.msra.mxu0 %v2646_v42 }
  0x8d   :  { %2463 = vmatpush1.bf16.msra.mxu1 %v2646_v42  ;;  %1693 = vmatprep.subr.bf16.mxu0 %v2666_v1 }
  0x8e   :  { %2452 = vmatprep.subr.bf16.mxu1 %v2666_v1  ;;  %v2656_v1 = vld [vmem:[%s3322_s1 + $0xa4] ss:$56 sps:$4 sm:$0xff]  }
  0x90   :  { %1694 = vmatpush1.bf16.msra.mxu0 %v2647_v45 }
  0x91   :  { %2464 = vmatpush1.bf16.msra.mxu1 %v2647_v45 }
  0x92   :  { %2429 = vmatprep.subr.bf16.mxu1 %v2654_v47 }
  0x93   :  { %1704 = vmatmul.mubr.bf16.vlgmr.msra.gmra.mrb[48].mxu0 %v2648_v48 }
  0x94   :  { %1728 = vmatmul.mubr.bf16.vlgmr.msra.gmra.mrb[48].mxu1 %v2651_v50  ;;  %2131 = vmatprep.mubr.msk.bf16.mxu0 %vm1268_vm0, %v2656_v1 }
  0x95   :  { %2430 = vmatpush3.bf16.msra.mxu1 %v2654_v47  ;;  %2433 = vmatprep.mubr.msk.bf16.mxu1 %vm1828_vm1, %v2658_v52 }
  0x96   :  { %2431 = vmatprep.subr.bf16.mxu1 %v2655_v53 }
  0x99   :  { %2432 = vmatpush3.bf16.msra.mxu1 %v2655_v53 }
  0x9b   :  { %1712 = vmatmul.mubr.bf16.gmra.mrb[52].mxu0 %v2659_v54 }
  0x9c   :  { %2434 = vmatmul.mubr.msk.bf16.vlgmr.msra.gmra.mrb[52].mxu1 %vm1828_vm1, %v2660_v55  ;;  %2132 = vmatprep.mubr.msk.bf16.mxu0 %vm1268_vm0, %v2661_v56 }
  0x9d   :  { %2437 = vmatprep.mubr.msk.bf16.mxu1 %vm1828_vm1, %v2663_v57 }
  0xa3   :  { %1720 = vmatmul.mubr.bf16.gmra.mrb[56].mxu0 %v2664_v58 }
  0xa4   :  { %2438 = vmatmul.mubr.msk.bf16.gmra.mrb[56].mxu1 %vm1828_vm1, %v2665_v59 }
  0xc1   :  { %v307_v15 = vpop.permute.xlu0 %306 }
  0xc2   :  { %v317_v24 = vpop.permute.xlu1 %316 }
  0xc6   :  { %v312_v25 = vpop.permute.xlu0 %311 }
  0xc7   :  { %v322_v30 = vpop.permute.xlu1 %321 }
  0xca   :  { %v327_v41 = vpop.permute.xlu0 %326 }
  0xce   :  { %v332_v47 = vpop.permute.xlu1 %331 }
  0xcf   :  { %v337_v1 = vpop.permute.xlu0 %336 }
  0xd2   :  { %v342_v51 = vpop.permute.xlu1 %341 }
  0xf6   :  { %v2199_v60 = vpop.f32.mrb[0].mxu0 }
  0xf7   :  { %v2239_v61 = vpop.f32.mrb[0].mxu1  ;;  %v2200_v62 = vpop.f32.mrb[1].mxu0 }
  0xf8   :  { %v2201_v63 = vadd.f32 %v2200_v62, %v2199_v60  ;;  %v2240_v0 = vpop.f32.mrb[1].mxu1  ;;  %v2202_v2 = vpop.f32.mrb[2].mxu0 }
  0xf9   :  { %v2241_v3 = vadd.f32 %v2240_v0, %v2239_v61  ;;  %v2242_v4 = vpop.f32.mrb[2].mxu1  ;;  %v2203_v5 = vpop.f32.mrb[3].mxu0 }
  0xfa   :  { %v2204_v6 = vadd.f32 %v2203_v5, %v2202_v2  ;;  %v2243_v7 = vpop.f32.mrb[3].mxu1  ;;  %v1316_v18 = vadd.f32 %v2201_v63, %v307_v15 }
  0xfb   :  { %v2244_v8 = vadd.f32 %v2243_v7, %v2242_v4 }
  0xfc   :  { %v1381_v23 = vadd.f32 %v2241_v3, %v1316_v18  ;;  %v1319_v27 = vadd.f32 %v2204_v6, %v312_v25 }
  0xfe   :  { %v2205_v9 = vpop.f32.mrb[4].mxu0  ;;  %v1384_v29 = vadd.f32 %v2244_v8, %v1319_v27 }
  0xff   :  { %v2245_v10 = vpop.f32.mrb[4].mxu1  ;;  %v2206_v11 = vpop.f32.mrb[5].mxu0 }
 0x100   :  { %v2207_v12 = vadd.f32 %v2206_v11, %v2205_v9  ;;  %v2246_v13 = vpop.f32.mrb[5].mxu1  ;;  %v2208_v14 = vpop.f32.mrb[6].mxu0 }
 0x101   :  { %v2247_v16 = vadd.f32 %v2246_v13, %v2245_v10  ;;  %v2248_v17 = vpop.f32.mrb[6].mxu1  ;;  %v2209_v19 = vpop.f32.mrb[7].mxu0 }
 0x102   :  { %v2249_v20 = vpop.f32.mrb[7].mxu1  ;;  %v2210_v21 = vadd.f32 %v2209_v19, %v2208_v14  ;;  %v1324_v26 = vadd.f32 %v2207_v12, %v317_v24 }
 0x103   :  { %v2250_v22 = vadd.f32 %v2249_v20, %v2248_v17 }
 0x104   :  { %v3294_v28 = vadd.f32 %v2247_v16, %v1324_v26  ;;  %v1327_v32 = vadd.f32 %v2210_v21, %v322_v30 }
 0x106   :  { %v2211_v31 = vpop.f32.mrb[8].mxu0  ;;  %v1392_v38 = vadd.f32 %v2250_v22, %v1327_v32 }
 0x107   :  { %v2251_v33 = vpop.f32.mrb[8].mxu1  ;;  %v2212_v34 = vpop.f32.mrb[9].mxu0 }
 0x108   :  { %v2213_v35 = vadd.f32 %v2212_v34, %v2211_v31  ;;  %v2252_v36 = vpop.f32.mrb[9].mxu1  ;;  %v2214_v37 = vpop.f32.mrb[10].mxu0 }
 0x109   :  { %v2253_v39 = vadd.f32 %v2252_v36, %v2251_v33  ;;  %v2254_v40 = vpop.f32.mrb[10].mxu1  ;;  %v2215_v43 = vpop.f32.mrb[11].mxu0 }
 0x10a   :  { %v1332_v42 = vadd.f32 %v2213_v35, %v327_v41  ;;  %v2255_v44 = vpop.f32.mrb[11].mxu1  ;;  %v2216_v45 = vadd.f32 %v2215_v43, %v2214_v37 }
 0x10b   :  { %v2256_v46 = vadd.f32 %v2255_v44, %v2254_v40 }
 0x10c   :  { %v3296_v48 = vadd.f32 %v2253_v39, %v1332_v42  ;;  %v1335_v49 = vadd.f32 %v2216_v45, %v332_v47 }
 0x10e   :  { %v3298_v50 = vadd.f32 %v2256_v46, %v1335_v49  ;;  %v2217_v52 = vpop.f32.mrb[12].mxu0 }
 0x10f   :  { %v2257_v53 = vpop.f32.mrb[12].mxu1  ;;  %v2218_v54 = vpop.f32.mrb[13].mxu0 }
 0x110   :  { %v2258_v55 = vpop.f32.mrb[13].mxu1  ;;  %v2219_v56 = vadd.f32 %v2218_v54, %v2217_v52  ;;  %v2220_v58 = vpop.f32.mrb[14].mxu0 }
 0x111   :  { %v2259_v57 = vadd.f32 %v2258_v55, %v2257_v53  ;;  %v2260_v59 = vpop.f32.mrb[14].mxu1  ;;  %v2221_v60 = vpop.f32.mrb[15].mxu0 }
 0x112   :  { %v2261_v61 = vpop.f32.mrb[15].mxu1  ;;  %v1340_v62 = vadd.f32 %v2219_v56, %v337_v1  ;;  %v2222_v63 = vadd.f32 %v2221_v60, %v2220_v58 }
 0x113   :  { %v2262_v0 = vadd.f32 %v2261_v61, %v2260_v59 }
 0x114   :  { %v1405_v2 = vadd.f32 %v2259_v57, %v1340_v62  ;;  %v1343_v3 = vadd.f32 %v2222_v63, %v342_v51 }
 0x116   :  { %v3300_v4 = vadd.f32 %v2262_v0, %v1343_v3  ;;  %v2279_v5 = vpop.f32.mrb[16].mxu0 }
 0x117   :  { %v2280_v6 = vpop.f32.mrb[17].mxu0  ;;  %v2319_v7 = vpop.f32.mrb[16].mxu1 }
 0x118   :  { %v2281_v8 = vadd.f32 %v2280_v6, %v2279_v5  ;;  %v2282_v9 = vpop.f32.mrb[18].mxu0  ;;  %v2320_v10 = vpop.f32.mrb[17].mxu1 }
 0x119   :  { %v2283_v11 = vpop.f32.mrb[19].mxu0  ;;  %v2321_v13 = vadd.f32 %v2320_v10, %v2319_v7  ;;  %v2322_v14 = vpop.f32.mrb[18].mxu1 }
 0x11a   :  { %v1446_v12 = vadd.f32 %v2281_v8, %v1381_v23  ;;  %v2284_v15 = vadd.f32 %v2283_v11, %v2282_v9  ;;  %v2323_v16 = vpop.f32.mrb[19].mxu1 }
 0x11b   :  { %v2324_v19 = vadd.f32 %v2323_v16, %v2322_v14 }
 0x11c   :  { %v1511_v17 = vadd.f32 %v2321_v13, %v1446_v12  ;;  %v1449_v18 = vadd.f32 %v2284_v15, %v1384_v29 }
 0x11e   :  { %v1514_v20 = vadd.f32 %v2324_v19, %v1449_v18  ;;  %v2285_v21 = vpop.f32.mrb[20].mxu0 }
 0x11f   :  { %v2325_v22 = vpop.f32.mrb[20].mxu1  ;;  %v2286_v24 = vpop.f32.mrb[21].mxu0 }
 0x120   :  { %v2287_v25 = vadd.f32 %v2286_v24, %v2285_v21  ;;  %v2326_v26 = vpop.f32.mrb[21].mxu1  ;;  %v2288_v27 = vpop.f32.mrb[22].mxu0 }
 0x121   :  { %v2327_v30 = vadd.f32 %v2326_v26, %v2325_v22  ;;  %v2328_v31 = vpop.f32.mrb[22].mxu1  ;;  %v2289_v32 = vpop.f32.mrb[23].mxu0 }
 0x122   :  { %v1454_v33 = vadd.f32 %v2287_v25, %v3294_v28  ;;  %v2290_v23 = vadd.f32 %v2289_v32, %v2288_v27  ;;  %v2329_v34 = vpop.f32.mrb[23].mxu1 }
 0x123   :  { %v2330_v35 = vadd.f32 %v2329_v34, %v2328_v31 }
 0x124   :  { %v1519_v36 = vadd.f32 %v2327_v30, %v1454_v33  ;;  %v1457_v37 = vadd.f32 %v2290_v23, %v1392_v38 }
 0x126   :  { %v1522_v39 = vadd.f32 %v2330_v35, %v1457_v37  ;;  %v2291_v29 = vpop.f32.mrb[24].mxu0 }
 0x127   :  { %v2331_v40 = vpop.f32.mrb[24].mxu1  ;;  %v2292_v41 = vpop.f32.mrb[25].mxu0 }
 0x128   :  { %v2332_v42 = vpop.f32.mrb[25].mxu1  ;;  %v2293_v43 = vadd.f32 %v2292_v41, %v2291_v29  ;;  %v2294_v45 = vpop.f32.mrb[26].mxu0 }
 0x129   :  { %v2333_v44 = vadd.f32 %v2332_v42, %v2331_v40  ;;  %v2334_v46 = vpop.f32.mrb[26].mxu1  ;;  %v2295_v47 = vpop.f32.mrb[27].mxu0 }
 0x12a   :  { %v2335_v49 = vpop.f32.mrb[27].mxu1  ;;  %v1462_v1 = vadd.f32 %v2293_v43, %v3296_v48  ;;  %v2296_v51 = vadd.f32 %v2295_v47, %v2294_v45 }
 0x12b   :  { %v2336_v28 = vadd.f32 %v2335_v49, %v2334_v46 }
 0x12c   :  { %v1527_v52 = vadd.f32 %v2333_v44, %v1462_v1  ;;  %v1465_v53 = vadd.f32 %v2296_v51, %v3298_v50 }
 0x12e   :  { %v1530_v54 = vadd.f32 %v2336_v28, %v1465_v53  ;;  %v2297_v38 = vpop.f32.mrb[28].mxu0 }
 0x12f   :  { %v2337_v55 = vpop.f32.mrb[28].mxu1  ;;  %v2298_v56 = vpop.f32.mrb[29].mxu0 }
 0x130   :  { %v2299_v57 = vadd.f32 %v2298_v56, %v2297_v38  ;;  %v2338_v58 = vpop.f32.mrb[29].mxu1  ;;  %v2300_v59 = vpop.f32.mrb[30].mxu0 }
 0x131   :  { %v2339_v60 = vadd.f32 %v2338_v58, %v2337_v55  ;;  %v2340_v61 = vpop.f32.mrb[30].mxu1  ;;  %v2301_v62 = vpop.f32.mrb[31].mxu0 }
 0x132   :  { %v1470_v63 = vadd.f32 %v2299_v57, %v1405_v2  ;;  %v2302_v0 = vadd.f32 %v2301_v62, %v2300_v59  ;;  %v2341_v3 = vpop.f32.mrb[31].mxu1 }
 0x133   :  { %v2342_v5 = vadd.f32 %v2341_v3, %v2340_v61 }
 0x134   :  { %v1535_v48 = vadd.f32 %v2339_v60, %v1470_v63  ;;  %v1473_v6 = vadd.f32 %v2302_v0, %v3300_v4 }
 0x136   :  { %v1538_v7 = vadd.f32 %v2342_v5, %v1473_v6  ;;  %v2359_v8 = vpop.f32.mrb[32].mxu0 }
 0x137   :  { %v2399_v50 = vpop.f32.mrb[32].mxu1  ;;  %v2360_v9 = vpop.f32.mrb[33].mxu0 }
 0x138   :  { %v2361_v10 = vadd.f32 %v2360_v9, %v2359_v8  ;;  %v2400_v11 = vpop.f32.mrb[33].mxu1  ;;  %v2362_v12 = vpop.f32.mrb[34].mxu0 }
 0x139   :  { %v2401_v13 = vadd.f32 %v2400_v11, %v2399_v50  ;;  %v2402_v14 = vpop.f32.mrb[34].mxu1  ;;  %v2363_v15 = vpop.f32.mrb[35].mxu0 }
 0x13a   :  { %v1576_v16 = vadd.f32 %v2361_v10, %v1511_v17  ;;  %v2364_v18 = vadd.f32 %v2363_v15, %v2362_v12  ;;  %v2403_v19 = vpop.f32.mrb[35].mxu1  ;;  %v1759_v10 = vpop.permute.xlu0 %1758 }
 0x13b   :  { %v2404_v2 = vadd.f32 %v2403_v19, %v2402_v14 }
 0x13c   :  { %v1579_v21 = vadd.f32 %v2364_v18, %v1514_v20  ;;  %v1641_v22 = vadd.f32 %v2401_v13, %v1576_v16 }
 0x13e   :  { %v2365_v24 = vpop.f32.mrb[36].mxu0  ;;  %v1644_v25 = vadd.f32 %v2404_v2, %v1579_v21  ;;  %v1769_v12 = vpop.permute.xlu0 %1768 }
 0x13f   :  { %v2366_v26 = vpop.f32.mrb[37].mxu0  ;;  %v2405_v4 = vpop.f32.mrb[36].mxu1 }
 0x140   :  { %v2367_v27 = vadd.f32 %v2366_v26, %v2365_v24  ;;  %v2368_v30 = vpop.f32.mrb[38].mxu0  ;;  %v2406_v31 = vpop.f32.mrb[37].mxu1 }
 0x141   :  { %v2369_v32 = vpop.f32.mrb[39].mxu0  ;;  %v2407_v33 = vadd.f32 %v2406_v31, %v2405_v4  ;;  %v2408_v23 = vpop.f32.mrb[38].mxu1 }
 0x142   :  { %v1584_v34 = vadd.f32 %v2367_v27, %v1519_v36  ;;  %v2370_v35 = vadd.f32 %v2369_v32, %v2368_v30  ;;  %v2409_v37 = vpop.f32.mrb[39].mxu1 }
 0x143   :  { %v2410_v29 = vadd.f32 %v2409_v37, %v2408_v23 }
 0x144   :  { %v1587_v17 = vadd.f32 %v2370_v35, %v1522_v39  ;;  %v1649_v40 = vadd.f32 %v2407_v33, %v1584_v34 }
 0x146   :  { %v2371_v41 = vpop.f32.mrb[40].mxu0  ;;  %v1652_v42 = vadd.f32 %v2410_v29, %v1587_v17 }
 0x147   :  { %v2372_v20 = vpop.f32.mrb[41].mxu0  ;;  %v2411_v43 = vpop.f32.mrb[40].mxu1 }
 0x148   :  { %v2373_v44 = vadd.f32 %v2372_v20, %v2371_v41  ;;  %v2374_v45 = vpop.f32.mrb[42].mxu0  ;;  %v2412_v46 = vpop.f32.mrb[41].mxu1 }
 0x149   :  { %v2375_v47 = vpop.f32.mrb[43].mxu0  ;;  %v2413_v49 = vadd.f32 %v2412_v46, %v2411_v43  ;;  %v2414_v1 = vpop.f32.mrb[42].mxu1 }
 0x14a   :  { %v1592_v51 = vadd.f32 %v2373_v44, %v1527_v52  ;;  %v2376_v28 = vadd.f32 %v2375_v47, %v2374_v45  ;;  %v2415_v53 = vpop.f32.mrb[43].mxu1 }
 0x14b   :  { %v2416_v38 = vadd.f32 %v2415_v53, %v2414_v1 }
 0x14c   :  { %v1595_v36 = vadd.f32 %v2376_v28, %v1530_v54  ;;  %v1657_v55 = vadd.f32 %v2413_v49, %v1592_v51  ;;  %v1764_v54 = vpop.permute.xlu1 %1763 }
 0x14e   :  { %v2377_v56 = vpop.f32.mrb[44].mxu0  ;;  %v3306_v57 = vadd.f32 %v2416_v38, %v1595_v36 }
 0x14f   :  { %v2378_v39 = vpop.f32.mrb[45].mxu0  ;;  %v2417_v58 = vpop.f32.mrb[44].mxu1 }
 0x150   :  { %v2379_v59 = vadd.f32 %v2378_v39, %v2377_v56  ;;  %v2380_v60 = vpop.f32.mrb[46].mxu0  ;;  %v2418_v61 = vpop.f32.mrb[45].mxu1 }
 0x151   :  { %v2381_v62 = vpop.f32.mrb[47].mxu0  ;;  %v2419_v63 = vadd.f32 %v2418_v61, %v2417_v58  ;;  %v2420_v0 = vpop.f32.mrb[46].mxu1 }
 0x152   :  { %v1600_v3 = vadd.f32 %v2379_v59, %v1535_v48  ;;  %v2382_v5 = vadd.f32 %v2381_v62, %v2380_v60  ;;  %v2421_v6 = vpop.f32.mrb[47].mxu1  ;;  %v1774_v11 = vpop.permute.xlu1 %1773 }
 0x153   :  { %v2422_v52 = vadd.f32 %v2421_v6, %v2420_v0 }
 0x154   :  { %v1603_v8 = vadd.f32 %v2382_v5, %v1538_v7  ;;  %v1665_v50 = vadd.f32 %v2419_v63, %v1600_v3  ;;  %v1779_v7 = vpop.permute.xlu0 %1778 }
 0x156   :  { %v1668_v9 = vadd.f32 %v2422_v52, %v1603_v8  ;;  %v1784_v27 = vpop.permute.xlu1 %1783 }
 0x158   :  { %v1789_v49 = vpop.permute.xlu0 %1788 }
 0x15a   :  { %v1794_v46 = vpop.permute.xlu1 %1793 }
 0x166   :  { %v1705_v13 = vpop.f32.mrb[48].mxu0 }
 0x167   :  { %v1706_v14 = vadd.f32 %v1705_v13, %v1641_v22  ;;  %v1729_v15 = vpop.f32.mrb[48].mxu1  ;;  %v1707_v16 = vpop.f32.mrb[49].mxu0 }
 0x168   :  { %v1730_v18 = vadd.f32 %v1729_v15, %v1665_v50  ;;  %v1731_v19 = vpop.f32.mrb[49].mxu1  ;;  %v1708_v2 = vpop.f32.mrb[50].mxu0 }
 0x169   :  { %v1709_v21 = vadd.f32 %v1708_v2, %v1644_v25  ;;  %v1732_v24 = vpop.f32.mrb[50].mxu1  ;;  %v1710_v48 = vpop.f32.mrb[51].mxu0 }
 0x16a   :  { %v1733_v26 = vadd.f32 %v1732_v24, %v1668_v9  ;;  %v1734_v4 = vpop.f32.mrb[51].mxu1 }
 0x16e   :  { %v1713_v30 = vpop.f32.mrb[52].mxu0 }
 0x16f   :  { %v1714_v31 = vadd.f32 %v1713_v30, %v1649_v40  ;;  %v2435_v32 = vpop.f32.mrb[52].mxu1  ;;  %v1715_v33 = vpop.f32.mrb[53].mxu0 }
 0x170   :  { %v1884_v23 = vadd.f32 %v2435_v32, %v1769_v12  ;;  %v1875_v34 = vpop.f32.mrb[53].mxu1  ;;  %v1716_v35 = vpop.f32.mrb[54].mxu0 }
 0x171   :  { %v1876_v22 = vadd.f32 %v1875_v34, %v1759_v10  ;;  %v1717_v37 = vadd.f32 %v1716_v35, %v1652_v42  ;;  %v2436_v29 = vpop.f32.mrb[54].mxu1  ;;  %v1718_v17 = vpop.f32.mrb[55].mxu0 }
 0x172   :  { %v1908_v41 = vadd.f32 %v1884_v23, %v1714_v31  ;;  %v1887_v20 = vadd.f32 %v2436_v29, %v1774_v11  ;;  %v1878_v25 = vpop.f32.mrb[55].mxu1 }
 0x173   :  { %v1906_v43 = vadd.f32 %v1876_v22, %v1706_v14  ;;  %v1879_v44 = vadd.f32 %v1878_v25, %v1764_v54 }
 0x174   :  { %v1909_v45 = vadd.f32 %v1887_v20, %v1717_v37  ;;  %v1916_v1 = vmax.f32 %v1908_v41, 0.0 }
 0x175   :  { %v1907_v47 = vadd.f32 %v1879_v44, %v1709_v21  ;;  %v1914_v28 = vmax.f32 %v1906_v43, 0.0 }
 0x176   :  { %v1917_v40 = vmax.f32 %v1909_v45, 0.0  ;;  %v1721_v51 = vpop.f32.mrb[56].mxu0 }
 0x177   :  { %v1915_v53 = vmax.f32 %v1907_v47, 0.0  ;;  %v1722_v38 = vadd.f32 %v1721_v51, %v1657_v55  ;;  %v2439_v36 = vpop.f32.mrb[56].mxu1  ;;  %v1723_v56 = vpop.f32.mrb[57].mxu0 }
 0x178   :  { %v2168_v42 = vpack.c.bf16 %v1917_v40, %v1916_v1  ;;  %v1900_v39 = vadd.f32 %v2439_v36, %v1789_v49  ;;  %v1891_v58 = vpop.f32.mrb[57].mxu1  ;;  %v1724_v59 = vpop.f32.mrb[58].mxu0 }
 0x179   :  { %v2163_v60 = vpack.c.bf16 %v1915_v53, %v1914_v28  ;;  %v1892_v61 = vadd.f32 %v1891_v58, %v1779_v7  ;;  %v1725_v62 = vadd.f32 %v1724_v59, %v3306_v57  ;;  %v2440_v63 = vpop.f32.mrb[58].mxu1  ;;  %v1726_v0 = vpop.f32.mrb[59].mxu0 }
 0x17a   :  { %2180 = vst [vmem:[%s3327_s6 + $0x8] sm:$0xff] %v2168_v42   ;;  %v1912_v3 = vadd.f32 %v1900_v39, %v1730_v18  ;;  %v1903_v5 = vadd.f32 %v2440_v63, %v1794_v46  ;;  %v1894_v6 = vpop.f32.mrb[59].mxu1 }
 0x17b   :  { %2164 = vst [vmem:[%s3327_s6] sm:$0xff] %v2163_v60   ;;  %v1910_v55 = vadd.f32 %v1892_v61, %v1722_v38  ;;  %v1895_v52 = vadd.f32 %v1894_v6, %v1784_v27 }
 0x17c   :  { %v1913_v8 = vadd.f32 %v1903_v5, %v1733_v26  ;;  %v1920_v9 = vmax.f32 %v1912_v3, 0.0 }
 0x17d   :  { %v1911_v50 = vadd.f32 %v1895_v52, %v1725_v62  ;;  %v1918_v57 = vmax.f32 %v1910_v55, 0.0 }
 0x17e   :  { %v1921_v54 = vmax.f32 %v1913_v8, 0.0 }
 0x17f   :  { %v1919_v10 = vmax.f32 %v1911_v50, 0.0 }
 0x180   :  { %v2178_v11 = vpack.c.bf16 %v1921_v54, %v1920_v9 }
 0x181   :  { %v2173_v12 = vpack.c.bf16 %v1919_v10, %v1918_v57 }
 0x182   :  { %2182 = vst [vmem:[%s3327_s6 + $0x18] sm:$0xff] %v2178_v11  }
 0x183   :  { %2181 = vst [vmem:[%s3327_s6 + $0x10] sm:$0xff] %v2173_v12  }

</bundles_post_ra>
